<compile_context>
chip_gen: v5e
topology: v5e:2x2
jax: 0.10.0
libtpu: 0.0.40
codegen_flags: <defaults>
</compile_context>

<pallas_src>
import functools

import numpy as np

import jax
import jax.numpy as jnp
from jax.experimental import pallas as pl
from jax.experimental.pallas import tpu as pltpu


PV_PAD = 128   # lane-padded width of the merged policy+value head output


# ----------------------------------------------------------------------------
# Fused forward kernel
# ----------------------------------------------------------------------------

def _fused_cnn_model_kernel(x_ref, pos_ref,
                            t1_ref, b1_ref, t2_ref, b2_ref,
                            wc_ref, bc_ref,
                            wl1_ref, bl1_ref, wl2_ref, bl2_ref,
                            wj_ref, bj_ref,
                            wpv_ref, bpv_ref,
                            out_ref,
                            col1, col2, fc_in, join_in):
    f32, bf16 = jnp.float32, jnp.bfloat16
    batch, height, width = x_ref.shape
    n1 = t1_ref.shape[1]              # wo1 * 16
    n2 = t2_ref.shape[1]              # wo2 * 32
    k1 = t1_ref.shape[0] // width     # 8
    k2 = t2_ref.shape[0] // n1        # 4
    ho1 = height - k1 + 1             # 9
    ho2 = ho1 - k2 + 1                # 6
    d_cnn = wc_ref.shape[1]           # 256
    d_lin = wl2_ref.shape[1]          # 256

    # ---- Conv2d(1->16, 8x8) + Tanh.  Width, in-channel AND kernel-height are all
    # folded into the contraction dim of the precomputed Toeplitz weight, so the
    # whole batched conv is ONE MXU matmul with K = k1*W = 128.
    for b in range(batch):
        for kh in range(k1):
            col1[b * ho1:(b + 1) * ho1, kh * width:(kh + 1) * width] = \
                x_ref[b, kh:kh + ho1, :]
    h1 = jnp.tanh(jnp.dot(col1[...].astype(bf16), t1_ref[...],
                          preferred_element_type=f32) + b1_ref[...])       # (B*ho1, n1)

    # ---- Conv2d(16->32, 4x4) + Tanh: same folding, ONE matmul with K = k2*n1 = 576.
    for b in range(batch):
        for kh in range(k2):
            col2[b * ho2:(b + 1) * ho2, kh * n1:(kh + 1) * n1] = \
                h1[b * ho1 + kh:b * ho1 + kh + ho2, :]
    h2 = jnp.tanh(jnp.dot(col2[...].astype(bf16), t2_ref[...],
                          preferred_element_type=f32) + b2_ref[...])       # (B*ho2, n2)

    # ---- nn.Flatten (NCHW order folded into the FC weight row order at init) +
    # Linear(flatten, 256) + Tanh as ONE (B, ho2*n2) @ (ho2*n2, 256) matmul.
    for b in range(batch):
        for i in range(ho2):
            fc_in[b:b + 1, i * n2:(i + 1) * n2] = \
                h2[b * ho2 + i:b * ho2 + i + 1, :]
    cnn_out = jnp.tanh(jnp.dot(fc_in[...].astype(bf16), wc_ref[...],
                               preferred_element_type=f32) + bc_ref[...])  # (B, 256)

    # ---- Linear branch: Linear(P,512)+Tanh, Linear(512,256)+Tanh (batched)
    l1 = jnp.tanh(jnp.dot(pos_ref[...].astype(bf16), wl1_ref[...],
                          preferred_element_type=f32) + bl1_ref[...])
    l2 = jnp.tanh(jnp.dot(l1.astype(bf16), wl2_ref[...],
                          preferred_element_type=f32) + bl2_ref[...])

    # ---- join: torch.cat((cnn_out, linear_out), 1) written lane-aligned into a
    # (B, 512) scratch, then ONE matmul with the original (512, 256) weight.
    join_in[:, 0:d_cnn] = cnn_out
    join_in[:, d_cnn:d_cnn + d_lin] = l2
    joined = jnp.tanh(jnp.dot(join_in[...].astype(bf16), wj_ref[...],
                              preferred_element_type=f32) + bj_ref[...])   # (B, 256)

    # ---- policy + value heads merged into one lane-padded (256, 128) matmul
    out_ref[...] = (jnp.dot(joined.astype(bf16), wpv_ref[...],
                            preferred_element_type=f32) + bpv_ref[...])


# ----------------------------------------------------------------------------
# pallas_call wrapper
# ----------------------------------------------------------------------------

def cnn_model_forward(params, positions, matrix, num_outputs):
    """positions: (B, P) f32; matrix: (B, H, W) f32 -> (policy (B, A), value (B, 1))."""
    b, h, w = matrix.shape
    k1w, n1 = params["t1"].shape
    k2n1, n2 = params["t2"].shape
    k1 = k1w // w
    k2 = k2n1 // n1
    ho1 = h - k1 + 1
    ho2 = ho1 - k2 + 1
    d_join = params["wj"].shape[0]                 # 512
    assert num_outputs + 1 <= PV_PAD, "merged policy+value head exceeds lane pad"

    vmem = pl.BlockSpec(memory_space=pltpu.MemorySpace.VMEM)
    out = pl.pallas_call(
        _fused_cnn_model_kernel,
        out_shape=jax.ShapeDtypeStruct((b, PV_PAD), jnp.float32),
        in_specs=[vmem] * 16,
        out_specs=vmem,
        scratch_shapes=[
            pltpu.VMEM((b * ho1, k1w), jnp.float32),     # conv1 im2col  (B*9, 128)
            pltpu.VMEM((b * ho2, k2n1), jnp.float32),    # conv2 im2col  (B*6, 576)
            pltpu.VMEM((b, ho2 * n2), jnp.float32),      # FC input      (B, 1152)
            pltpu.VMEM((b, d_join), jnp.float32),        # cat(cnn, lin) (B, 512)
        ],
    )(matrix, positions,
      params["t1"], params["b1_row"], params["t2"], params["b2_row"],
      params["wc"], params["bc_row"],
      params["wl1"], params["bl1_row"], params["wl2"], params["bl2_row"],
      params["wj"], params["bj_row"],
      params["wpv"], params["bpv_row"])
    policy = out[:, :num_outputs]
    value = out[:, num_outputs:num_outputs + 1]
    return policy, value


# ----------------------------------------------------------------------------
# Parameter construction
# ----------------------------------------------------------------------------

def init_torch_params(key, pos_dim, h, w, num_outputs):
    """Raw weights in PyTorch convention (Conv2d OIHW, Linear (out, in))."""
    ho2, wo2 = h - 7 - 3, w - 7 - 3
    flatten_size = 32 * ho2 * wo2
    ks = jax.random.split(key, 16)

    def rnd(k, shape, scale=0.05):
        return (scale * jax.random.normal(k, shape)).astype(jnp.float32)

    return dict(
        w1=rnd(ks[0], (16, 1, 8, 8)), b1=rnd(ks[1], (16,)),
        w2=rnd(ks[2], (32, 16, 4, 4)), b2=rnd(ks[3], (32,)),
        wc=rnd(ks[4], (256, flatten_size)), bc=rnd(ks[5], (256,)),
        wl1=rnd(ks[6], (512, pos_dim)), bl1=rnd(ks[7], (512,)),
        wl2=rnd(ks[8], (256, 512)), bl2=rnd(ks[9], (256,)),
        wj=rnd(ks[10], (256, 512)), bj=rnd(ks[11], (256,)),
        wp=rnd(ks[12], (num_outputs, 256)), bp=rnd(ks[13], (num_outputs,)),
        wv=rnd(ks[14], (1, 256)), bv=rnd(ks[15], (1,)),
    )


def pack_params(raw, h, w, num_outputs):
    """One-time repack of PyTorch-convention weights into the fused-kernel layout.

    Weights are stored as bf16 (the kernel is weight-DMA bound); biases stay f32.
    """
    assert num_outputs + 1 <= PV_PAD, "merged policy+value head exceeds lane pad"
    k1, c1 = 8, 16
    k2, c2 = 4, 32
    wo1, ho1 = w - k1 + 1, h - k1 + 1
    wo2, ho2 = wo1 - k2 + 1, ho1 - k2 + 1
    n1, n2 = wo1 * c1, wo2 * c2

    w1 = np.asarray(raw["w1"], np.float32)     # (16, 1, 8, 8)   OIHW
    w2 = np.asarray(raw["w2"], np.float32)     # (32, 16, 4, 4)  OIHW

    # conv1 Toeplitz-along-width with kernel-height folded into the rows:
    # T1[kh*W + wi, j*c1 + o] = w1[o, 0, kh, wi - j]  for 0 <= wi - j < k1
    t1 = np.zeros((k1, w, n1), np.float32)
    for kh in range(k1):
        for j in range(wo1):
            for kw in range(k1):
                t1[kh, j + kw, j * c1:(j + 1) * c1] = w1[:, 0, kh, kw]
    T1 = t1.reshape(k1 * w, n1)                                   # (128, 144)

    # conv2 Toeplitz, kh folded: T2[kh*n1 + jp*c1 + c, j*c2 + o] = w2[o, c, kh, jp-j]
    t2 = np.zeros((k2, n1, n2), np.float32)
    for kh in range(k2):
        for j in range(wo2):
            for kw in range(k2):
                jp = j + kw
                t2[kh, jp * c1:(jp + 1) * c1, j * c2:(j + 1) * c2] = w2[:, :, kh, kw].T
    T2 = t2.reshape(k2 * n1, n2)                                  # (576, 192)

    # cnn FC weight: fold the NCHW nn.Flatten order AND the spatial-row index into
    # the contraction dim: WC[i*n2 + j*c2 + c, m] = wc[m, c*ho2*wo2 + i*wo2 + j]
    wc = np.asarray(raw["wc"], np.float32)                        # (256, 32*ho2*wo2)
    WC = (wc.reshape(256, c2, ho2, wo2)
            .transpose(2, 3, 1, 0)
            .reshape(ho2 * n2, 256))                              # (1152, 256)

    # join uses the original (512, 256) weight: rows 0:256 <-> cnn_out lanes,
    # rows 256:512 <-> linear_out lanes (matches the in-kernel lane layout).
    wj = np.asarray(raw["wj"], np.float32).T                      # (512, 256)

    # merged & lane-padded policy+value head
    wpv = np.concatenate([np.asarray(raw["wp"], np.float32),
                          np.asarray(raw["wv"], np.float32)], axis=0)   # (A+1, 256)
    WPV = np.zeros((256, PV_PAD), np.float32)
    WPV[:, :num_outputs + 1] = wpv.T
    bpv_row = np.zeros((1, PV_PAD), np.float32)
    bpv_row[0, :num_outputs + 1] = np.concatenate(
        [np.asarray(raw["bp"], np.float32), np.asarray(raw["bv"], np.float32)])

    bf = lambda a: jnp.asarray(a, jnp.bfloat16)
    frow = lambda a: jnp.asarray(np.asarray(a, np.float32)[None, :], jnp.float32)

    return dict(
        t1=bf(T1), b1_row=frow(np.tile(np.asarray(raw["b1"], np.float32), wo1)),
        t2=bf(T2), b2_row=frow(np.tile(np.asarray(raw["b2"], np.float32), wo2)),
        wc=bf(WC), bc_row=frow(raw["bc"]),
        wl1=bf(np.asarray(raw["wl1"], np.float32).T), bl1_row=frow(raw["bl1"]),
        wl2=bf(np.asarray(raw["wl2"], np.float32).T), bl2_row=frow(raw["bl2"]),
        wj=bf(wj), bj_row=frow(raw["bj"]),
        wpv=bf(WPV), bpv_row=jnp.asarray(bpv_row, jnp.float32),
    )


# ----------------------------------------------------------------------------
# Independent pure-JAX reference (PyTorch semantics, f32, no Pallas, no repacking)
# ----------------------------------------------------------------------------

def _reference_forward(raw, positions, matrix):
    hp = jax.lax.Precision.HIGHEST
    dn = ("NCHW", "OIHW", "NCHW")
    x = matrix[:, None, :, :]
    a1 = jnp.tanh(jax.lax.conv_general_dilated(
        x, raw["w1"], window_strides=(1, 1), padding="VALID",
        dimension_numbers=dn, precision=hp) + raw["b1"][None, :, None, None])
    a2 = jnp.tanh(jax.lax.conv_general_dilated(
        a1, raw["w2"], window_strides=(1, 1), padding="VALID",
        dimension_numbers=dn, precision=hp) + raw["b2"][None, :, None, None])
    flat = a2.reshape(a2.shape[0], -1)                            # NCHW flatten
    cnn_out = jnp.tanh(jnp.dot(flat, raw["wc"].T, precision=hp) + raw["bc"])
    l1 = jnp.tanh(jnp.dot(positions, raw["wl1"].T, precision=hp) + raw["bl1"])
    l2 = jnp.tanh(jnp.dot(l1, raw["wl2"].T, precision=hp) + raw["bl2"])
    joined = jnp.tanh(jnp.dot(jnp.concatenate([cnn_out, l2], axis=1),
                              raw["wj"].T, precision=hp) + raw["bj"])
    policy = jnp.dot(joined, raw["wp"].T, precision=hp) + raw["bp"]
    value = jnp.dot(joined, raw["wv"].T, precision=hp) + raw["bv"]
    return policy, value


if __name__ == "__main__":
    B, P, H, W, NUM_OUTPUTS = 2, 8, 16, 16, 4   # obs[0]: (B,P); obs[1]: (B,H,W)

    key = jax.random.PRNGKey(0)
    k_params, k_pos, k_mat = jax.random.split(key, 3)
    raw = init_torch_params(k_params, P, H, W, NUM_OUTPUTS)
    params = pack_params(raw, H, W, NUM_OUTPUTS)

    positions = jax.random.normal(k_pos, (B, P), dtype=jnp.float32)
    matrix = jax.random.normal(k_mat, (B, H, W), dtype=jnp.float32)

    fwd = jax.jit(functools.partial(cnn_model_forward, num_outputs=NUM_OUTPUTS))
    policy, value = fwd(params, positions, matrix)
    jax.block_until_ready((policy, value))

    ref_policy, ref_value = _reference_forward(raw, positions, matrix)
    assert policy.shape == (B, NUM_OUTPUTS) and value.shape == (B, 1)
    # Tolerance re-validated for bf16 weight/activation-at-dot quantization against
    # the f32 HIGHEST-precision reference (observed error ~1e-2 worst case).
    assert jnp.allclose(policy, ref_policy, atol=4e-2, rtol=4e-2)
    assert jnp.allclose(value, ref_value, atol=4e-2, rtol=4e-2)

    print("KERNEL_OK")
</pallas_src>

<mosaic_0001>
module attributes {stable_mosaic.version = 11 : i64} {
  func.func @_fused_cnn_model_kernel(%arg0: memref<2x16x16xf32, #tpu.memory_space<vmem>>, %arg1: memref<2x8xf32, #tpu.memory_space<vmem>>, %arg2: memref<128x144xbf16, #tpu.memory_space<vmem>>, %arg3: memref<1x144xf32, #tpu.memory_space<vmem>>, %arg4: memref<576x192xbf16, #tpu.memory_space<vmem>>, %arg5: memref<1x192xf32, #tpu.memory_space<vmem>>, %arg6: memref<1152x256xbf16, #tpu.memory_space<vmem>>, %arg7: memref<1x256xf32, #tpu.memory_space<vmem>>, %arg8: memref<8x512xbf16, #tpu.memory_space<vmem>>, %arg9: memref<1x512xf32, #tpu.memory_space<vmem>>, %arg10: memref<512x256xbf16, #tpu.memory_space<vmem>>, %arg11: memref<1x256xf32, #tpu.memory_space<vmem>>, %arg12: memref<512x256xbf16, #tpu.memory_space<vmem>>, %arg13: memref<1x256xf32, #tpu.memory_space<vmem>>, %arg14: memref<256x128xbf16, #tpu.memory_space<vmem>>, %arg15: memref<1x128xf32, #tpu.memory_space<vmem>>, %arg16: memref<2x128xf32, #tpu.memory_space<vmem>>, %arg17: memref<18x128xf32, #tpu.memory_space<vmem>>, %arg18: memref<12x576xf32, #tpu.memory_space<vmem>>, %arg19: memref<2x1152xf32, #tpu.memory_space<vmem>>, %arg20: memref<2x512xf32, #tpu.memory_space<vmem>>) attributes {dimension_semantics = [], scalar_prefetch = 0 : i64, scratch_operands = 4 : i64, tpu.core_type = #tpu.core_type<tc>} {
    %c0 = arith.constant 0 : index
    %c0_0 = arith.constant 0 : index
    %c0_1 = arith.constant 0 : index
    %0 = vector.load %arg0[%c0, %c0_0, %c0_1] : memref<2x16x16xf32, #tpu.memory_space<vmem>>, vector<1x9x16xf32>
    %1 = vector.shape_cast %0 : vector<1x9x16xf32> to vector<9x16xf32>
    %c0_2 = arith.constant 0 : index
    %c0_3 = arith.constant 0 : index
    %2 = vector.load %arg17[%c0_2, %c0_3] : memref<18x128xf32, #tpu.memory_space<vmem>>, vector<9x16xf32>
    tpu.vector_store %arg17[%c0_2, %c0_3], %1 {strides = array<i32>} : memref<18x128xf32, #tpu.memory_space<vmem>>, vector<9x16xf32>,
    %c0_4 = arith.constant 0 : index
    %c1 = arith.constant 1 : index
    %c0_5 = arith.constant 0 : index
    %3 = vector.load %arg0[%c0_4, %c1, %c0_5] : memref<2x16x16xf32, #tpu.memory_space<vmem>>, vector<1x9x16xf32>
    %4 = vector.shape_cast %3 : vector<1x9x16xf32> to vector<9x16xf32>
    %c0_6 = arith.constant 0 : index
    %c16 = arith.constant 16 : index
    %5 = vector.load %arg17[%c0_6, %c16] : memref<18x128xf32, #tpu.memory_space<vmem>>, vector<9x16xf32>
    tpu.vector_store %arg17[%c0_6, %c16], %4 {strides = array<i32>} : memref<18x128xf32, #tpu.memory_space<vmem>>, vector<9x16xf32>,
    %c0_7 = arith.constant 0 : index
    %c2 = arith.constant 2 : index
    %c0_8 = arith.constant 0 : index
    %6 = vector.load %arg0[%c0_7, %c2, %c0_8] : memref<2x16x16xf32, #tpu.memory_space<vmem>>, vector<1x9x16xf32>
    %7 = vector.shape_cast %6 : vector<1x9x16xf32> to vector<9x16xf32>
    %c0_9 = arith.constant 0 : index
    %c32 = arith.constant 32 : index
    %8 = vector.load %arg17[%c0_9, %c32] : memref<18x128xf32, #tpu.memory_space<vmem>>, vector<9x16xf32>
    tpu.vector_store %arg17[%c0_9, %c32], %7 {strides = array<i32>} : memref<18x128xf32, #tpu.memory_space<vmem>>, vector<9x16xf32>,
    %c0_10 = arith.constant 0 : index
    %c3 = arith.constant 3 : index
    %c0_11 = arith.constant 0 : index
    %9 = vector.load %arg0[%c0_10, %c3, %c0_11] : memref<2x16x16xf32, #tpu.memory_space<vmem>>, vector<1x9x16xf32>
    %10 = vector.shape_cast %9 : vector<1x9x16xf32> to vector<9x16xf32>
    %c0_12 = arith.constant 0 : index
    %c48 = arith.constant 48 : index
    %11 = vector.load %arg17[%c0_12, %c48] : memref<18x128xf32, #tpu.memory_space<vmem>>, vector<9x16xf32>
    tpu.vector_store %arg17[%c0_12, %c48], %10 {strides = array<i32>} : memref<18x128xf32, #tpu.memory_space<vmem>>, vector<9x16xf32>,
    %c0_13 = arith.constant 0 : index
    %c4 = arith.constant 4 : index
    %c0_14 = arith.constant 0 : index
    %12 = vector.load %arg0[%c0_13, %c4, %c0_14] : memref<2x16x16xf32, #tpu.memory_space<vmem>>, vector<1x9x16xf32>
    %13 = vector.shape_cast %12 : vector<1x9x16xf32> to vector<9x16xf32>
    %c0_15 = arith.constant 0 : index
    %c64 = arith.constant 64 : index
    %14 = vector.load %arg17[%c0_15, %c64] : memref<18x128xf32, #tpu.memory_space<vmem>>, vector<9x16xf32>
    tpu.vector_store %arg17[%c0_15, %c64], %13 {strides = array<i32>} : memref<18x128xf32, #tpu.memory_space<vmem>>, vector<9x16xf32>,
    %c0_16 = arith.constant 0 : index
    %c5 = arith.constant 5 : index
    %c0_17 = arith.constant 0 : index
    %15 = vector.load %arg0[%c0_16, %c5, %c0_17] : memref<2x16x16xf32, #tpu.memory_space<vmem>>, vector<1x9x16xf32>
    %16 = vector.shape_cast %15 : vector<1x9x16xf32> to vector<9x16xf32>
    %c0_18 = arith.constant 0 : index
    %c80 = arith.constant 80 : index
    %17 = vector.load %arg17[%c0_18, %c80] : memref<18x128xf32, #tpu.memory_space<vmem>>, vector<9x16xf32>
    tpu.vector_store %arg17[%c0_18, %c80], %16 {strides = array<i32>} : memref<18x128xf32, #tpu.memory_space<vmem>>, vector<9x16xf32>,
    %c0_19 = arith.constant 0 : index
    %c6 = arith.constant 6 : index
    %c0_20 = arith.constant 0 : index
    %18 = vector.load %arg0[%c0_19, %c6, %c0_20] : memref<2x16x16xf32, #tpu.memory_space<vmem>>, vector<1x9x16xf32>
    %19 = vector.shape_cast %18 : vector<1x9x16xf32> to vector<9x16xf32>
    %c0_21 = arith.constant 0 : index
    %c96 = arith.constant 96 : index
    %20 = vector.load %arg17[%c0_21, %c96] : memref<18x128xf32, #tpu.memory_space<vmem>>, vector<9x16xf32>
    tpu.vector_store %arg17[%c0_21, %c96], %19 {strides = array<i32>} : memref<18x128xf32, #tpu.memory_space<vmem>>, vector<9x16xf32>,
    %c0_22 = arith.constant 0 : index
    %c7 = arith.constant 7 : index
    %c0_23 = arith.constant 0 : index
    %21 = vector.load %arg0[%c0_22, %c7, %c0_23] : memref<2x16x16xf32, #tpu.memory_space<vmem>>, vector<1x9x16xf32>
    %22 = vector.shape_cast %21 : vector<1x9x16xf32> to vector<9x16xf32>
    %c0_24 = arith.constant 0 : index
    %c112 = arith.constant 112 : index
    %23 = vector.load %arg17[%c0_24, %c112] : memref<18x128xf32, #tpu.memory_space<vmem>>, vector<9x16xf32>
    tpu.vector_store %arg17[%c0_24, %c112], %22 {strides = array<i32>} : memref<18x128xf32, #tpu.memory_space<vmem>>, vector<9x16xf32>,
    %c1_25 = arith.constant 1 : index
    %c0_26 = arith.constant 0 : index
    %c0_27 = arith.constant 0 : index
    %24 = vector.load %arg0[%c1_25, %c0_26, %c0_27] : memref<2x16x16xf32, #tpu.memory_space<vmem>>, vector<1x9x16xf32>
    %25 = vector.shape_cast %24 : vector<1x9x16xf32> to vector<9x16xf32>
    %c9 = arith.constant 9 : index
    %c0_28 = arith.constant 0 : index
    %26 = vector.load %arg17[%c9, %c0_28] : memref<18x128xf32, #tpu.memory_space<vmem>>, vector<9x16xf32>
    tpu.vector_store %arg17[%c9, %c0_28], %25 {strides = array<i32>} : memref<18x128xf32, #tpu.memory_space<vmem>>, vector<9x16xf32>,
    %c1_29 = arith.constant 1 : index
    %c1_30 = arith.constant 1 : index
    %c0_31 = arith.constant 0 : index
    %27 = vector.load %arg0[%c1_29, %c1_30, %c0_31] : memref<2x16x16xf32, #tpu.memory_space<vmem>>, vector<1x9x16xf32>
    %28 = vector.shape_cast %27 : vector<1x9x16xf32> to vector<9x16xf32>
    %c9_32 = arith.constant 9 : index
    %c16_33 = arith.constant 16 : index
    %29 = vector.load %arg17[%c9_32, %c16_33] : memref<18x128xf32, #tpu.memory_space<vmem>>, vector<9x16xf32>
    tpu.vector_store %arg17[%c9_32, %c16_33], %28 {strides = array<i32>} : memref<18x128xf32, #tpu.memory_space<vmem>>, vector<9x16xf32>,
    %c1_34 = arith.constant 1 : index
    %c2_35 = arith.constant 2 : index
    %c0_36 = arith.constant 0 : index
    %30 = vector.load %arg0[%c1_34, %c2_35, %c0_36] : memref<2x16x16xf32, #tpu.memory_space<vmem>>, vector<1x9x16xf32>
    %31 = vector.shape_cast %30 : vector<1x9x16xf32> to vector<9x16xf32>
    %c9_37 = arith.constant 9 : index
    %c32_38 = arith.constant 32 : index
    %32 = vector.load %arg17[%c9_37, %c32_38] : memref<18x128xf32, #tpu.memory_space<vmem>>, vector<9x16xf32>
    tpu.vector_store %arg17[%c9_37, %c32_38], %31 {strides = array<i32>} : memref<18x128xf32, #tpu.memory_space<vmem>>, vector<9x16xf32>,
    %c1_39 = arith.constant 1 : index
    %c3_40 = arith.constant 3 : index
    %c0_41 = arith.constant 0 : index
    %33 = vector.load %arg0[%c1_39, %c3_40, %c0_41] : memref<2x16x16xf32, #tpu.memory_space<vmem>>, vector<1x9x16xf32>
    %34 = vector.shape_cast %33 : vector<1x9x16xf32> to vector<9x16xf32>
    %c9_42 = arith.constant 9 : index
    %c48_43 = arith.constant 48 : index
    %35 = vector.load %arg17[%c9_42, %c48_43] : memref<18x128xf32, #tpu.memory_space<vmem>>, vector<9x16xf32>
    tpu.vector_store %arg17[%c9_42, %c48_43], %34 {strides = array<i32>} : memref<18x128xf32, #tpu.memory_space<vmem>>, vector<9x16xf32>,
    %c1_44 = arith.constant 1 : index
    %c4_45 = arith.constant 4 : index
    %c0_46 = arith.constant 0 : index
    %36 = vector.load %arg0[%c1_44, %c4_45, %c0_46] : memref<2x16x16xf32, #tpu.memory_space<vmem>>, vector<1x9x16xf32>
    %37 = vector.shape_cast %36 : vector<1x9x16xf32> to vector<9x16xf32>
    %c9_47 = arith.constant 9 : index
    %c64_48 = arith.constant 64 : index
    %38 = vector.load %arg17[%c9_47, %c64_48] : memref<18x128xf32, #tpu.memory_space<vmem>>, vector<9x16xf32>
    tpu.vector_store %arg17[%c9_47, %c64_48], %37 {strides = array<i32>} : memref<18x128xf32, #tpu.memory_space<vmem>>, vector<9x16xf32>,
    %c1_49 = arith.constant 1 : index
    %c5_50 = arith.constant 5 : index
    %c0_51 = arith.constant 0 : index
    %39 = vector.load %arg0[%c1_49, %c5_50, %c0_51] : memref<2x16x16xf32, #tpu.memory_space<vmem>>, vector<1x9x16xf32>
    %40 = vector.shape_cast %39 : vector<1x9x16xf32> to vector<9x16xf32>
    %c9_52 = arith.constant 9 : index
    %c80_53 = arith.constant 80 : index
    %41 = vector.load %arg17[%c9_52, %c80_53] : memref<18x128xf32, #tpu.memory_space<vmem>>, vector<9x16xf32>
    tpu.vector_store %arg17[%c9_52, %c80_53], %40 {strides = array<i32>} : memref<18x128xf32, #tpu.memory_space<vmem>>, vector<9x16xf32>,
    %c1_54 = arith.constant 1 : index
    %c6_55 = arith.constant 6 : index
    %c0_56 = arith.constant 0 : index
    %42 = vector.load %arg0[%c1_54, %c6_55, %c0_56] : memref<2x16x16xf32, #tpu.memory_space<vmem>>, vector<1x9x16xf32>
    %43 = vector.shape_cast %42 : vector<1x9x16xf32> to vector<9x16xf32>
    %c9_57 = arith.constant 9 : index
    %c96_58 = arith.constant 96 : index
    %44 = vector.load %arg17[%c9_57, %c96_58] : memref<18x128xf32, #tpu.memory_space<vmem>>, vector<9x16xf32>
    tpu.vector_store %arg17[%c9_57, %c96_58], %43 {strides = array<i32>} : memref<18x128xf32, #tpu.memory_space<vmem>>, vector<9x16xf32>,
    %c1_59 = arith.constant 1 : index
    %c7_60 = arith.constant 7 : index
    %c0_61 = arith.constant 0 : index
    %45 = vector.load %arg0[%c1_59, %c7_60, %c0_61] : memref<2x16x16xf32, #tpu.memory_space<vmem>>, vector<1x9x16xf32>
    %46 = vector.shape_cast %45 : vector<1x9x16xf32> to vector<9x16xf32>
    %c9_62 = arith.constant 9 : index
    %c112_63 = arith.constant 112 : index
    %47 = vector.load %arg17[%c9_62, %c112_63] : memref<18x128xf32, #tpu.memory_space<vmem>>, vector<9x16xf32>
    tpu.vector_store %arg17[%c9_62, %c112_63], %46 {strides = array<i32>} : memref<18x128xf32, #tpu.memory_space<vmem>>, vector<9x16xf32>,
    %c0_64 = arith.constant 0 : index
    %c0_65 = arith.constant 0 : index
    %48 = vector.load %arg17[%c0_64, %c0_65] : memref<18x128xf32, #tpu.memory_space<vmem>>, vector<18x128xf32>
    %49 = arith.truncf %48 : vector<18x128xf32> to vector<18x128xbf16>
    %c0_66 = arith.constant 0 : index
    %c0_67 = arith.constant 0 : index
    %50 = vector.load %arg2[%c0_66, %c0_67] : memref<128x144xbf16, #tpu.memory_space<vmem>>, vector<128x144xbf16>
    %cst = arith.constant dense<0.000000e+00> : vector<18x144xf32>
    %51 = tpu.matmul %49, %50, %cst {dimension_numbers = #tpu.dot_dimension_numbers<[1], [0], [0], [1], [0, 0, 1, 1], [], []>} : vector<18x128xbf16>, vector<128x144xbf16>, vector<18x144xf32> -> vector<18x144xf32>
    %c0_68 = arith.constant 0 : index
    %c0_69 = arith.constant 0 : index
    %52 = vector.load %arg3[%c0_68, %c0_69] : memref<1x144xf32, #tpu.memory_space<vmem>>, vector<1x144xf32>
    %53 = vector.broadcast %52 : vector<1x144xf32> to vector<18x144xf32>
    %54 = arith.addf %51, %53 : vector<18x144xf32>
    %55 = math.tanh %54 : vector<18x144xf32>
    %56 = vector.extract_strided_slice %55 {offsets = [0, 0], sizes = [6, 144], strides = [1, 1]} : vector<18x144xf32> to vector<6x144xf32>
    %c0_70 = arith.constant 0 : index
    %c0_71 = arith.constant 0 : index
    %57 = vector.load %arg18[%c0_70, %c0_71] : memref<12x576xf32, #tpu.memory_space<vmem>>, vector<6x144xf32>
    tpu.vector_store %arg18[%c0_70, %c0_71], %56 {strides = array<i32>} : memref<12x576xf32, #tpu.memory_space<vmem>>, vector<6x144xf32>,
    %58 = vector.extract_strided_slice %55 {offsets = [1, 0], sizes = [6, 144], strides = [1, 1]} : vector<18x144xf32> to vector<6x144xf32>
    %c0_72 = arith.constant 0 : index
    %c144 = arith.constant 144 : index
    %59 = vector.load %arg18[%c0_72, %c144] : memref<12x576xf32, #tpu.memory_space<vmem>>, vector<6x144xf32>
    tpu.vector_store %arg18[%c0_72, %c144], %58 {strides = array<i32>} : memref<12x576xf32, #tpu.memory_space<vmem>>, vector<6x144xf32>,
    %60 = vector.extract_strided_slice %55 {offsets = [2, 0], sizes = [6, 144], strides = [1, 1]} : vector<18x144xf32> to vector<6x144xf32>
    %c0_73 = arith.constant 0 : index
    %c288 = arith.constant 288 : index
    %61 = vector.load %arg18[%c0_73, %c288] : memref<12x576xf32, #tpu.memory_space<vmem>>, vector<6x144xf32>
    tpu.vector_store %arg18[%c0_73, %c288], %60 {strides = array<i32>} : memref<12x576xf32, #tpu.memory_space<vmem>>, vector<6x144xf32>,
    %62 = vector.extract_strided_slice %55 {offsets = [3, 0], sizes = [6, 144], strides = [1, 1]} : vector<18x144xf32> to vector<6x144xf32>
    %c0_74 = arith.constant 0 : index
    %c432 = arith.constant 432 : index
    %63 = vector.load %arg18[%c0_74, %c432] : memref<12x576xf32, #tpu.memory_space<vmem>>, vector<6x144xf32>
    tpu.vector_store %arg18[%c0_74, %c432], %62 {strides = array<i32>} : memref<12x576xf32, #tpu.memory_space<vmem>>, vector<6x144xf32>,
    %64 = vector.extract_strided_slice %55 {offsets = [9, 0], sizes = [6, 144], strides = [1, 1]} : vector<18x144xf32> to vector<6x144xf32>
    %c6_75 = arith.constant 6 : index
    %c0_76 = arith.constant 0 : index
    %65 = vector.load %arg18[%c6_75, %c0_76] : memref<12x576xf32, #tpu.memory_space<vmem>>, vector<6x144xf32>
    tpu.vector_store %arg18[%c6_75, %c0_76], %64 {strides = array<i32>} : memref<12x576xf32, #tpu.memory_space<vmem>>, vector<6x144xf32>,
    %66 = vector.extract_strided_slice %55 {offsets = [10, 0], sizes = [6, 144], strides = [1, 1]} : vector<18x144xf32> to vector<6x144xf32>
    %c6_77 = arith.constant 6 : index
    %c144_78 = arith.constant 144 : index
    %67 = vector.load %arg18[%c6_77, %c144_78] : memref<12x576xf32, #tpu.memory_space<vmem>>, vector<6x144xf32>
    tpu.vector_store %arg18[%c6_77, %c144_78], %66 {strides = array<i32>} : memref<12x576xf32, #tpu.memory_space<vmem>>, vector<6x144xf32>,
    %68 = vector.extract_strided_slice %55 {offsets = [11, 0], sizes = [6, 144], strides = [1, 1]} : vector<18x144xf32> to vector<6x144xf32>
    %c6_79 = arith.constant 6 : index
    %c288_80 = arith.constant 288 : index
    %69 = vector.load %arg18[%c6_79, %c288_80] : memref<12x576xf32, #tpu.memory_space<vmem>>, vector<6x144xf32>
    tpu.vector_store %arg18[%c6_79, %c288_80], %68 {strides = array<i32>} : memref<12x576xf32, #tpu.memory_space<vmem>>, vector<6x144xf32>,
    %70 = vector.extract_strided_slice %55 {offsets = [12, 0], sizes = [6, 144], strides = [1, 1]} : vector<18x144xf32> to vector<6x144xf32>
    %c6_81 = arith.constant 6 : index
    %c432_82 = arith.constant 432 : index
    %71 = vector.load %arg18[%c6_81, %c432_82] : memref<12x576xf32, #tpu.memory_space<vmem>>, vector<6x144xf32>
    tpu.vector_store %arg18[%c6_81, %c432_82], %70 {strides = array<i32>} : memref<12x576xf32, #tpu.memory_space<vmem>>, vector<6x144xf32>,
    %c0_83 = arith.constant 0 : index
    %c0_84 = arith.constant 0 : index
    %72 = vector.load %arg18[%c0_83, %c0_84] : memref<12x576xf32, #tpu.memory_space<vmem>>, vector<12x576xf32>
    %73 = arith.truncf %72 : vector<12x576xf32> to vector<12x576xbf16>
    %c0_85 = arith.constant 0 : index
    %c0_86 = arith.constant 0 : index
    %74 = vector.load %arg4[%c0_85, %c0_86] : memref<576x192xbf16, #tpu.memory_space<vmem>>, vector<576x192xbf16>
    %cst_87 = arith.constant dense<0.000000e+00> : vector<12x192xf32>
    %75 = tpu.matmul %73, %74, %cst_87 {dimension_numbers = #tpu.dot_dimension_numbers<[1], [0], [0], [1], [0, 0, 1, 1], [], []>} : vector<12x576xbf16>, vector<576x192xbf16>, vector<12x192xf32> -> vector<12x192xf32>
    %c0_88 = arith.constant 0 : index
    %c0_89 = arith.constant 0 : index
    %76 = vector.load %arg5[%c0_88, %c0_89] : memref<1x192xf32, #tpu.memory_space<vmem>>, vector<1x192xf32>
    %77 = vector.broadcast %76 : vector<1x192xf32> to vector<12x192xf32>
    %78 = arith.addf %75, %77 : vector<12x192xf32>
    %79 = math.tanh %78 : vector<12x192xf32>
    %80 = vector.extract_strided_slice %79 {offsets = [0, 0], sizes = [1, 192], strides = [1, 1]} : vector<12x192xf32> to vector<1x192xf32>
    %c0_90 = arith.constant 0 : index
    %c0_91 = arith.constant 0 : index
    %81 = vector.load %arg19[%c0_90, %c0_91] : memref<2x1152xf32, #tpu.memory_space<vmem>>, vector<1x192xf32>
    tpu.vector_store %arg19[%c0_90, %c0_91], %80 {strides = array<i32>} : memref<2x1152xf32, #tpu.memory_space<vmem>>, vector<1x192xf32>,
    %82 = vector.extract_strided_slice %79 {offsets = [1, 0], sizes = [1, 192], strides = [1, 1]} : vector<12x192xf32> to vector<1x192xf32>
    %c0_92 = arith.constant 0 : index
    %c192 = arith.constant 192 : index
    %83 = vector.load %arg19[%c0_92, %c192] : memref<2x1152xf32, #tpu.memory_space<vmem>>, vector<1x192xf32>
    tpu.vector_store %arg19[%c0_92, %c192], %82 {strides = array<i32>} : memref<2x1152xf32, #tpu.memory_space<vmem>>, vector<1x192xf32>,
    %84 = vector.extract_strided_slice %79 {offsets = [2, 0], sizes = [1, 192], strides = [1, 1]} : vector<12x192xf32> to vector<1x192xf32>
    %c0_93 = arith.constant 0 : index
    %c384 = arith.constant 384 : index
    %85 = vector.load %arg19[%c0_93, %c384] : memref<2x1152xf32, #tpu.memory_space<vmem>>, vector<1x192xf32>
    tpu.vector_store %arg19[%c0_93, %c384], %84 {strides = array<i32>} : memref<2x1152xf32, #tpu.memory_space<vmem>>, vector<1x192xf32>,
    %86 = vector.extract_strided_slice %79 {offsets = [3, 0], sizes = [1, 192], strides = [1, 1]} : vector<12x192xf32> to vector<1x192xf32>
    %c0_94 = arith.constant 0 : index
    %c576 = arith.constant 576 : index
    %87 = vector.load %arg19[%c0_94, %c576] : memref<2x1152xf32, #tpu.memory_space<vmem>>, vector<1x192xf32>
    tpu.vector_store %arg19[%c0_94, %c576], %86 {strides = array<i32>} : memref<2x1152xf32, #tpu.memory_space<vmem>>, vector<1x192xf32>,
    %88 = vector.extract_strided_slice %79 {offsets = [4, 0], sizes = [1, 192], strides = [1, 1]} : vector<12x192xf32> to vector<1x192xf32>
    %c0_95 = arith.constant 0 : index
    %c768 = arith.constant 768 : index
    %89 = vector.load %arg19[%c0_95, %c768] : memref<2x1152xf32, #tpu.memory_space<vmem>>, vector<1x192xf32>
    tpu.vector_store %arg19[%c0_95, %c768], %88 {strides = array<i32>} : memref<2x1152xf32, #tpu.memory_space<vmem>>, vector<1x192xf32>,
    %90 = vector.extract_strided_slice %79 {offsets = [5, 0], sizes = [1, 192], strides = [1, 1]} : vector<12x192xf32> to vector<1x192xf32>
    %c0_96 = arith.constant 0 : index
    %c960 = arith.constant 960 : index
    %91 = vector.load %arg19[%c0_96, %c960] : memref<2x1152xf32, #tpu.memory_space<vmem>>, vector<1x192xf32>
    tpu.vector_store %arg19[%c0_96, %c960], %90 {strides = array<i32>} : memref<2x1152xf32, #tpu.memory_space<vmem>>, vector<1x192xf32>,
    %92 = vector.extract_strided_slice %79 {offsets = [6, 0], sizes = [1, 192], strides = [1, 1]} : vector<12x192xf32> to vector<1x192xf32>
    %c1_97 = arith.constant 1 : index
    %c0_98 = arith.constant 0 : index
    %93 = vector.load %arg19[%c1_97, %c0_98] : memref<2x1152xf32, #tpu.memory_space<vmem>>, vector<1x192xf32>
    tpu.vector_store %arg19[%c1_97, %c0_98], %92 {strides = array<i32>} : memref<2x1152xf32, #tpu.memory_space<vmem>>, vector<1x192xf32>,
    %94 = vector.extract_strided_slice %79 {offsets = [7, 0], sizes = [1, 192], strides = [1, 1]} : vector<12x192xf32> to vector<1x192xf32>
    %c1_99 = arith.constant 1 : index
    %c192_100 = arith.constant 192 : index
    %95 = vector.load %arg19[%c1_99, %c192_100] : memref<2x1152xf32, #tpu.memory_space<vmem>>, vector<1x192xf32>
    tpu.vector_store %arg19[%c1_99, %c192_100], %94 {strides = array<i32>} : memref<2x1152xf32, #tpu.memory_space<vmem>>, vector<1x192xf32>,
    %96 = vector.extract_strided_slice %79 {offsets = [8, 0], sizes = [1, 192], strides = [1, 1]} : vector<12x192xf32> to vector<1x192xf32>
    %c1_101 = arith.constant 1 : index
    %c384_102 = arith.constant 384 : index
    %97 = vector.load %arg19[%c1_101, %c384_102] : memref<2x1152xf32, #tpu.memory_space<vmem>>, vector<1x192xf32>
    tpu.vector_store %arg19[%c1_101, %c384_102], %96 {strides = array<i32>} : memref<2x1152xf32, #tpu.memory_space<vmem>>, vector<1x192xf32>,
    %98 = vector.extract_strided_slice %79 {offsets = [9, 0], sizes = [1, 192], strides = [1, 1]} : vector<12x192xf32> to vector<1x192xf32>
    %c1_103 = arith.constant 1 : index
    %c576_104 = arith.constant 576 : index
    %99 = vector.load %arg19[%c1_103, %c576_104] : memref<2x1152xf32, #tpu.memory_space<vmem>>, vector<1x192xf32>
    tpu.vector_store %arg19[%c1_103, %c576_104], %98 {strides = array<i32>} : memref<2x1152xf32, #tpu.memory_space<vmem>>, vector<1x192xf32>,
    %100 = vector.extract_strided_slice %79 {offsets = [10, 0], sizes = [1, 192], strides = [1, 1]} : vector<12x192xf32> to vector<1x192xf32>
    %c1_105 = arith.constant 1 : index
    %c768_106 = arith.constant 768 : index
    %101 = vector.load %arg19[%c1_105, %c768_106] : memref<2x1152xf32, #tpu.memory_space<vmem>>, vector<1x192xf32>
    tpu.vector_store %arg19[%c1_105, %c768_106], %100 {strides = array<i32>} : memref<2x1152xf32, #tpu.memory_space<vmem>>, vector<1x192xf32>,
    %102 = vector.extract_strided_slice %79 {offsets = [11, 0], sizes = [1, 192], strides = [1, 1]} : vector<12x192xf32> to vector<1x192xf32>
    %c1_107 = arith.constant 1 : index
    %c960_108 = arith.constant 960 : index
    %103 = vector.load %arg19[%c1_107, %c960_108] : memref<2x1152xf32, #tpu.memory_space<vmem>>, vector<1x192xf32>
    tpu.vector_store %arg19[%c1_107, %c960_108], %102 {strides = array<i32>} : memref<2x1152xf32, #tpu.memory_space<vmem>>, vector<1x192xf32>,
    %c0_109 = arith.constant 0 : index
    %c0_110 = arith.constant 0 : index
    %104 = vector.load %arg19[%c0_109, %c0_110] : memref<2x1152xf32, #tpu.memory_space<vmem>>, vector<2x1152xf32>
    %105 = arith.truncf %104 : vector<2x1152xf32> to vector<2x1152xbf16>
    %c0_111 = arith.constant 0 : index
    %c0_112 = arith.constant 0 : index
    %106 = vector.load %arg6[%c0_111, %c0_112] : memref<1152x256xbf16, #tpu.memory_space<vmem>>, vector<1152x256xbf16>
    %cst_113 = arith.constant dense<0.000000e+00> : vector<2x256xf32>
    %107 = tpu.matmul %105, %106, %cst_113 {dimension_numbers = #tpu.dot_dimension_numbers<[1], [0], [0], [1], [0, 0, 1, 1], [], []>} : vector<2x1152xbf16>, vector<1152x256xbf16>, vector<2x256xf32> -> vector<2x256xf32>
    %c0_114 = arith.constant 0 : index
    %c0_115 = arith.constant 0 : index
    %108 = vector.load %arg7[%c0_114, %c0_115] : memref<1x256xf32, #tpu.memory_space<vmem>>, vector<1x256xf32>
    %109 = vector.broadcast %108 : vector<1x256xf32> to vector<2x256xf32>
    %110 = arith.addf %107, %109 : vector<2x256xf32>
    %111 = math.tanh %110 : vector<2x256xf32>
    %c0_116 = arith.constant 0 : index
    %c0_117 = arith.constant 0 : index
    %112 = vector.load %arg1[%c0_116, %c0_117] : memref<2x8xf32, #tpu.memory_space<vmem>>, vector<2x8xf32>
    %113 = arith.truncf %112 : vector<2x8xf32> to vector<2x8xbf16>
    %c0_118 = arith.constant 0 : index
    %c0_119 = arith.constant 0 : index
    %114 = vector.load %arg8[%c0_118, %c0_119] : memref<8x512xbf16, #tpu.memory_space<vmem>>, vector<8x512xbf16>
    %cst_120 = arith.constant dense<0.000000e+00> : vector<2x512xf32>
    %115 = tpu.matmul %113, %114, %cst_120 {dimension_numbers = #tpu.dot_dimension_numbers<[1], [0], [0], [1], [0, 0, 1, 1], [], []>} : vector<2x8xbf16>, vector<8x512xbf16>, vector<2x512xf32> -> vector<2x512xf32>
    %c0_121 = arith.constant 0 : index
    %c0_122 = arith.constant 0 : index
    %116 = vector.load %arg9[%c0_121, %c0_122] : memref<1x512xf32, #tpu.memory_space<vmem>>, vector<1x512xf32>
    %117 = vector.broadcast %116 : vector<1x512xf32> to vector<2x512xf32>
    %118 = arith.addf %115, %117 : vector<2x512xf32>
    %119 = math.tanh %118 : vector<2x512xf32>
    %120 = arith.truncf %119 : vector<2x512xf32> to vector<2x512xbf16>
    %c0_123 = arith.constant 0 : index
    %c0_124 = arith.constant 0 : index
    %121 = vector.load %arg10[%c0_123, %c0_124] : memref<512x256xbf16, #tpu.memory_space<vmem>>, vector<512x256xbf16>
    %cst_125 = arith.constant dense<0.000000e+00> : vector<2x256xf32>
    %122 = tpu.matmul %120, %121, %cst_125 {dimension_numbers = #tpu.dot_dimension_numbers<[1], [0], [0], [1], [0, 0, 1, 1], [], []>} : vector<2x512xbf16>, vector<512x256xbf16>, vector<2x256xf32> -> vector<2x256xf32>
    %c0_126 = arith.constant 0 : index
    %c0_127 = arith.constant 0 : index
    %123 = vector.load %arg11[%c0_126, %c0_127] : memref<1x256xf32, #tpu.memory_space<vmem>>, vector<1x256xf32>
    %124 = vector.broadcast %123 : vector<1x256xf32> to vector<2x256xf32>
    %125 = arith.addf %122, %124 : vector<2x256xf32>
    %126 = math.tanh %125 : vector<2x256xf32>
    %c0_128 = arith.constant 0 : index
    %c0_129 = arith.constant 0 : index
    %127 = vector.load %arg20[%c0_128, %c0_129] : memref<2x512xf32, #tpu.memory_space<vmem>>, vector<2x256xf32>
    tpu.vector_store %arg20[%c0_128, %c0_129], %111 {strides = array<i32>} : memref<2x512xf32, #tpu.memory_space<vmem>>, vector<2x256xf32>,
    %c0_130 = arith.constant 0 : index
    %c256 = arith.constant 256 : index
    %128 = vector.load %arg20[%c0_130, %c256] : memref<2x512xf32, #tpu.memory_space<vmem>>, vector<2x256xf32>
    tpu.vector_store %arg20[%c0_130, %c256], %126 {strides = array<i32>} : memref<2x512xf32, #tpu.memory_space<vmem>>, vector<2x256xf32>,
    %c0_131 = arith.constant 0 : index
    %c0_132 = arith.constant 0 : index
    %129 = vector.load %arg20[%c0_131, %c0_132] : memref<2x512xf32, #tpu.memory_space<vmem>>, vector<2x512xf32>
    %130 = arith.truncf %129 : vector<2x512xf32> to vector<2x512xbf16>
    %c0_133 = arith.constant 0 : index
    %c0_134 = arith.constant 0 : index
    %131 = vector.load %arg12[%c0_133, %c0_134] : memref<512x256xbf16, #tpu.memory_space<vmem>>, vector<512x256xbf16>
    %cst_135 = arith.constant dense<0.000000e+00> : vector<2x256xf32>
    %132 = tpu.matmul %130, %131, %cst_135 {dimension_numbers = #tpu.dot_dimension_numbers<[1], [0], [0], [1], [0, 0, 1, 1], [], []>} : vector<2x512xbf16>, vector<512x256xbf16>, vector<2x256xf32> -> vector<2x256xf32>
    %c0_136 = arith.constant 0 : index
    %c0_137 = arith.constant 0 : index
    %133 = vector.load %arg13[%c0_136, %c0_137] : memref<1x256xf32, #tpu.memory_space<vmem>>, vector<1x256xf32>
    %134 = vector.broadcast %133 : vector<1x256xf32> to vector<2x256xf32>
    %135 = arith.addf %132, %134 : vector<2x256xf32>
    %136 = math.tanh %135 : vector<2x256xf32>
    %137 = arith.truncf %136 : vector<2x256xf32> to vector<2x256xbf16>
    %c0_138 = arith.constant 0 : index
    %c0_139 = arith.constant 0 : index
    %138 = vector.load %arg14[%c0_138, %c0_139] : memref<256x128xbf16, #tpu.memory_space<vmem>>, vector<256x128xbf16>
    %cst_140 = arith.constant dense<0.000000e+00> : vector<2x128xf32>
    %139 = tpu.matmul %137, %138, %cst_140 {dimension_numbers = #tpu.dot_dimension_numbers<[1], [0], [0], [1], [0, 0, 1, 1], [], []>} : vector<2x256xbf16>, vector<256x128xbf16>, vector<2x128xf32> -> vector<2x128xf32>
    %c0_141 = arith.constant 0 : index
    %c0_142 = arith.constant 0 : index
    %140 = vector.load %arg15[%c0_141, %c0_142] : memref<1x128xf32, #tpu.memory_space<vmem>>, vector<1x128xf32>
    %141 = vector.broadcast %140 : vector<1x128xf32> to vector<2x128xf32>
    %142 = arith.addf %139, %141 : vector<2x128xf32>
    %c0_143 = arith.constant 0 : index
    %c0_144 = arith.constant 0 : index
    %143 = vector.load %arg16[%c0_143, %c0_144] : memref<2x128xf32, #tpu.memory_space<vmem>>, vector<2x128xf32>
    tpu.vector_store %arg16[%c0_143, %c0_144], %142 {strides = array<i32>} : memref<2x128xf32, #tpu.memory_space<vmem>>, vector<2x128xf32>,
    return
  }
}

</mosaic_0001>

<bundles_post_ra>
// kernel: cnn_model_forward.1
= control target key start
LH: loop header
LB: loop body
LE: loop exit
PB: predicated region body
PF: predicated region fallthrough
CT: control target
= control target key end

     0   :  { %s7668_s0 = inlined_call_operand.vmem [shape: f32[2,16,16], index: 0, kind: input, shape index: {}]   ;;  %s7669_s1 = inlined_call_operand.vmem [shape: f32[2,8], index: 1, kind: input, shape index: {}]   ;;  %s7670_s2 = inlined_call_operand.vmem [shape: bf16[128,144], index: 2, kind: input, shape index: {}]   ;;  %s7671_s3 = inlined_call_operand.vmem [shape: f32[1,144], index: 3, kind: input, shape index: {}]   ;;  %s7672_s4 = inlined_call_operand.vmem [shape: bf16[576,192], index: 4, kind: input, shape index: {}]   ;;  %s7673_s5 = inlined_call_operand.vmem [shape: f32[1,192], index: 5, kind: input, shape index: {}]   ;;  %s7674_s6 = inlined_call_operand.vmem [shape: bf16[1152,256], index: 6, kind: input, shape index: {}]   ;;  %s7675_s7 = inlined_call_operand.vmem [shape: f32[1,256], index: 7, kind: input, shape index: {}]   ;;  %s7676_s8 = inlined_call_operand.vmem [shape: bf16[8,512], index: 8, kind: input, shape index: {}]   ;;  %s7677_s9 = inlined_call_operand.vmem [shape: f32[1,512], index: 9, kind: input, shape index: {}]   ;;  %s7678_s10 = inlined_call_operand.hbm [shape: bf16[512,256], index: 10, kind: input, shape index: {}]   ;;  %s7679_s11 = inlined_call_operand.vmem [shape: f32[1,256], index: 11, kind: input, shape index: {}]   ;;  %s7680_s12 = inlined_call_operand.hbm [shape: bf16[512,256], index: 12, kind: input, shape index: {}]   ;;  %s7681_s13 = inlined_call_operand.vmem [shape: f32[1,256], index: 13, kind: input, shape index: {}]   ;;  %s7682_s14 = inlined_call_operand.hbm [shape: bf16[256,128], index: 14, kind: input, shape index: {}]   ;;  %s7683_s15 = inlined_call_operand.vmem [shape: f32[1,128], index: 15, kind: input, shape index: {}]   ;;  %s7684_s16 = inlined_call_operand.vmem [shape: f32[2,128], index: 16, kind: output, shape index: {}]  }
   0x1   :  { %7686 = sst [smem:[#allocation13_spill]] %s7668_s0 }
   0x2   :  { %21 = vsyncpa [#allocation7], 0 }
   0x3   :  { %22 = vsyncpa [#allocation9], 0  ;;  %s62_s23 = sshll.u32 %s7680_s12, 4  ;;  %s5759_s24 = smov [#allocation8]   ;;  %s63_s23 = int_to_ptr.hbm [resolvable:$true] %s62_s23 }
   0x4   :  { %s64_s25 = sshll.u32 %s5759_s24, 4  ;;  %s47_s28 = sshll.u32 %s7678_s10, 4  ;;  %s65_s25 = int_to_ptr.vmem [resolvable:$true] %s64_s25  ;;  %s48_s28 = int_to_ptr.hbm [resolvable:$true] %s47_s28 }
   0x5   :  { %s5760_s29 = smov 128   ;;  %s5761_s30 = smov 8  }
   0x6   :  { %70 = dma.hbm_to_vmem [thread:$0]  %s63_s23, 8192, %s65_s25, [#allocation9], %s5760_s29, %s5760_s29, %s5761_s30  }
   0x7   :  { %s5762_s0 = smov [#allocation6]   ;;  %s77_s20 = sshll.u32 %s7682_s14, 4  ;;  %s78_s20 = int_to_ptr.hbm [resolvable:$true] %s77_s20 }
   0x8   :  { %s49_s17 = sshll.u32 %s5762_s0, 4  ;;  %s5763_s12 = smov [#allocation10]   ;;  %s50_s17 = int_to_ptr.vmem [resolvable:$true] %s49_s17 }
   0x9   :  { %55 = dma.hbm_to_vmem [thread:$0]  %s48_s28, 8192, %s50_s17, [#allocation7], %s5760_s29, %s5760_s29, %s5761_s30  }
   0xa   :  { %s79_s21 = sshll.u32 %s5763_s12, 4  ;;  %s5764_s22 = smov 64   ;;  %s80_s21 = int_to_ptr.vmem [resolvable:$true] %s79_s21 }
   0xb   :  { %s5765_s24 = smov 4  }
   0xc   :  { %85 = dma.hbm_to_vmem [thread:$0]  %s78_s20, 2048, %s80_s21, [#allocation9], %s5764_s22, %s5764_s22, %s5765_s24  }
   0xd   :  { %5755 = dma.done.wait [#allocation7], 8192  }
   0xe   :  { %5756 = vsyncadd [#allocation7], 4294959104 }
   0xf   :  { %5757 = dma.done.wait [#allocation9], 10240  }
  0x10   :  { %5758 = vsyncadd [#allocation9], 4294957056  ;;  %s7687_s25 = sld [smem:[#allocation13_spill]]  ;;  %s5766_s27 = smov 16   ;;  %vm103_vm0 = vcmask 130048   ;;  %vm105_vm1 = vcmask 122880  }
  0x11   :  { %s5767_s30 = smov 32   ;;  %s5768_s28 = smov 48   ;;  %v3801_v34 = vld [vmem:[%s7670_s2 + $0x70] sm:$0xf]  ;;  %v5268_v35 = vld [vmem:[%s7670_s2 + $0x74] sm:$0xf0] }
  0x12   :  { %s5769_s26 = smov 80   ;;  %s5770_s12 = smov 96   ;;  %v5267_v36 = vld [vmem:[%s7670_s2 + $0x74] sm:$0xf]  ;;  %v3802_v37 = vor.u32 %v5268_v35, %v3801_v34  ;;  %v3803_v38 = vld [vmem:[%s7670_s2 + $0x78] sm:$0xf0] }
  0x13   :  { %s5771_s0 = smov 112   ;;  %v3793_v39 = vld [vmem:[%s7670_s2 + $0x60] sm:$0xf]  ;;  %v5266_v40 = vld [vmem:[%s7670_s2 + $0x64] sm:$0xf0]  ;;  %v3806_v41 = vor.u32 %v5267_v36, %v3803_v38  ;;  %vm117_vm2 = vcmask 261248  }
  0x14   :  { %v5265_v42 = vld [vmem:[%s7670_s2 + $0x64] sm:$0xf]  ;;  %v3795_v43 = vld [vmem:[%s7670_s2 + $0x68] sm:$0xf0]  ;;  %401 = vmatpush.bf16.msra.mxu0 %v3802_v37  ;;  %v3794_v44 = vor.u32 %v5266_v40, %v3793_v39  ;;  %vm131_vm3 = vcmask 392448   ;;  %vm145_vm4 = vcmask 523648  }
  0x15   :  { %419 = vmatpush.bf16.msra.mxu1 %v3806_v41  ;;  %v3798_v45 = vor.u32 %v5265_v42, %v3795_v43  ;;  %vm159_vm5 = vcmask 654848   ;;  %v3785_v49 = vld [vmem:[%s7670_s2 + $0x50] sm:$0xf]  ;;  %v5264_v50 = vld [vmem:[%s7670_s2 + $0x54] sm:$0xf0]  ;;  %vm119_vm6 = vcmask 254080  }
  0x16   :  { %v3729_v0 = vld [vmem:[%s7687_s25 + $0x11] sm:$0xff]  ;;  %v107_v1 = vld [vmem:[%s7687_s25 + $0x1] sm:$0xff]  ;;  %v122_v2 = vld [vmem:[%s7687_s25 + $0xa] sm:$0x1]  ;;  %v3786_v51 = vor.u32 %v5264_v50, %v3785_v49  ;;  %vm133_vm7 = vcmask 385280   ;;  %vm173_vm8 = vcmask 786048  }
  0x17   :  { %214 = vrot.lane.b32.xlu1 %v3729_v0, %s5766_s27  ;;  %111 = vrot.lane.b32.xlu0 %v107_v1, %s5766_s27  ;;  %v121_v3 = vld [vmem:[%s7687_s25 + $0x2] sm:$0xff]  ;;  %v3731_v5 = vld [vmem:[%s7687_s25 + $0x12] sm:$0xff]  ;;  %vm147_vm9 = vcmask 516480   ;;  %vm187_vm10 = vcmask 917248   ;;  %vm161_vm11 = vcmask 647680   ;;  %vm201_vm12 = vcmask 1048448  }
  0x18   :  { %127 = vrot.lane.b32.xlu2 %v122_v2, %s5767_s30  ;;  %v108_v4 = vld [vmem:[%s7687_s25 + $0x9] sm:$0x1]  ;;  %v136_v6 = vld [vmem:[%s7687_s25 + $0xb] sm:$0x1]  ;;  %v3733_v8 = vld [vmem:[%s7687_s25 + $0x13] sm:$0xff]  ;;  %402 = vmatpush.bf16.msra.mxu0 %v3794_v44  ;;  %vm175_vm13 = vcmask 778880  }
  0x19   :  { %v135_v7 = vld [vmem:[%s7687_s25 + $0x3] sm:$0xff]  ;;  %v150_v9 = vld [vmem:[%s7687_s25 + $0xc] sm:$0x1]  ;;  %v3735_v11 = vld [vmem:[%s7687_s25 + $0x14] sm:$0xff]  ;;  %420 = vmatpush.bf16.msra.mxu1 %v3798_v45  ;;  %vm189_vm14 = vcmask 910080   ;;  %vm203_vm15 = vcmask 1041280  }
  0x1a   :  { %v149_v10 = vld [vmem:[%s7687_s25 + $0x4] sm:$0xff]  ;;  %v164_v12 = vld [vmem:[%s7687_s25 + $0xd] sm:$0x1]  ;;  %v3737_v14 = vld [vmem:[%s7687_s25 + $0x15] sm:$0xff] }
  0x1b   :  { %v163_v13 = vld [vmem:[%s7687_s25 + $0x5] sm:$0xff]  ;;  %v178_v15 = vld [vmem:[%s7687_s25 + $0xe] sm:$0x1]  ;;  %v3739_v17 = vld [vmem:[%s7687_s25 + $0x16] sm:$0xff] }
  0x1c   :  { %v177_v16 = vld [vmem:[%s7687_s25 + $0x6] sm:$0xff]  ;;  %v192_v18 = vld [vmem:[%s7687_s25 + $0xf] sm:$0x1]  ;;  %v3741_v20 = vld [vmem:[%s7687_s25 + $0x17] sm:$0xff]  ;;  %403 = vmatpush.bf16.msra.mxu0 %v3786_v51 }
  0x1d   :  { %v191_v19 = vld [vmem:[%s7687_s25 + $0x7] sm:$0xff]  ;;  %v3730_v21 = vld [vmem:[%s7687_s25 + $0x19] sm:$0x1]  ;;  %v3732_v22 = vld [vmem:[%s7687_s25 + $0x1a] sm:$0x1] }
  0x1e   :  { %v3734_v23 = vld [vmem:[%s7687_s25 + $0x1b] sm:$0x1]  ;;  %v3736_v24 = vld [vmem:[%s7687_s25 + $0x1c] sm:$0x1]  ;;  %v3738_v25 = vld [vmem:[%s7687_s25 + $0x1d] sm:$0x1] }
  0x1f   :  { %125 = vrot.lane.b32.xlu1 %v121_v3, %s5767_s30  ;;  %113 = vrot.lane.b32.xlu0 %v108_v4, %s5766_s27  ;;  %v3740_v26 = vld [vmem:[%s7687_s25 + $0x1e] sm:$0x1]  ;;  %v3742_v27 = vld [vmem:[%s7687_s25 + $0x1f] sm:$0x1] }
  0x20   :  { %226 = vrot.lane.b32.xlu2 %v3731_v5, %s5767_s30  ;;  %v101_v28 = vld [vmem:[%s7687_s25] sm:$0xff]  ;;  %v3727_v29 = vld [vmem:[%s7687_s25 + $0x10] sm:$0xff]  ;;  %v102_v30 = vld [vmem:[%s7687_s25 + $0x8] sm:$0x1] }
  0x21   :  { %104 = vst.msk [vmem:[#allocation2] sm:$0xff] %vm103_vm0, %v101_v28  ;;  %v5263_v52 = vld [vmem:[%s7670_s2 + $0x54] sm:$0xf]  ;;  %v3787_v53 = vld [vmem:[%s7670_s2 + $0x58] sm:$0xf0] }
  0x22   :  { %208 = vst.msk [vmem:[#allocation2 + $0x9] sm:$0xff] %vm103_vm0, %v3727_v29  ;;  %v3790_v54 = vor.u32 %v5263_v52, %v3787_v53  ;;  %v3777_v55 = vld [vmem:[%s7670_s2 + $0x40] sm:$0xf]  ;;  %v5262_v56 = vld [vmem:[%s7670_s2 + $0x44] sm:$0xf0] }
  0x23   :  { %106 = vst.msk [vmem:[#allocation2 + $0x8] sm:$0x1] %vm105_vm1, %v102_v30  ;;  %v3778_v57 = vor.u32 %v5262_v56, %v3777_v55  ;;  %v5261_v58 = vld [vmem:[%s7670_s2 + $0x44] sm:$0xf]  ;;  %v3779_v59 = vld [vmem:[%s7670_s2 + $0x48] sm:$0xf0] }
  0x24   :  { %421 = vmatpush.bf16.msra.mxu1 %v3790_v54  ;;  %v3782_v60 = vor.u32 %v5261_v58, %v3779_v59  ;;  %v3769_v0 = vld [vmem:[%s7670_s2 + $0x30] sm:$0xf]  ;;  %v5260_v1 = vld [vmem:[%s7670_s2 + $0x34] sm:$0xf0]  ;;  %v5259_v3 = vld [vmem:[%s7670_s2 + $0x34] sm:$0xf] }
  0x25   :  { %404 = vmatpush.bf16.msra.mxu0 %v3778_v57  ;;  %v3770_v2 = vor.u32 %v5260_v1, %v3769_v0  ;;  %v3771_v4 = vld [vmem:[%s7670_s2 + $0x38] sm:$0xf0]  ;;  %v3865_v37 = vld [vmem:[%s7672_s4 + $0x70] sm:$0xf]  ;;  %v5284_v38 = vld [vmem:[%s7672_s4 + $0x74] sm:$0xf0] }
  0x26   :  { %v3774_v5 = vor.u32 %v5259_v3, %v3771_v4  ;;  %v3866_v39 = vor.u32 %v5284_v38, %v3865_v37  ;;  %v3857_v52 = vld [vmem:[%s7672_s4 + $0x60] sm:$0xf]  ;;  %v5282_v53 = vld [vmem:[%s7672_s4 + $0x64] sm:$0xf0]  ;;  %v3849_v55 = vld [vmem:[%s7672_s4 + $0x50] sm:$0xf] }
  0x27   :  { %141 = vrot.lane.b32.xlu1 %v136_v6, %s5768_s28  ;;  %139 = vrot.lane.b32.xlu0 %v135_v7, %s5768_s28  ;;  %v3761_v6 = vld [vmem:[%s7670_s2 + $0x20] sm:$0xf]  ;;  %v5258_v7 = vld [vmem:[%s7670_s2 + $0x24] sm:$0xf0]  ;;  %v3858_v54 = vor.u32 %v5282_v53, %v3857_v52 }
  0x28   :  { %238 = vrot.lane.b32.xlu2 %v3733_v8, %s5768_s28  ;;  %422 = vmatpush.bf16.msra.mxu1 %v3782_v60  ;;  %v3762_v8 = vor.u32 %v5258_v7, %v3761_v6  ;;  %v5280_v56 = vld [vmem:[%s7672_s4 + $0x54] sm:$0xf0]  ;;  %v3841_v58 = vld [vmem:[%s7672_s4 + $0x40] sm:$0xf]  ;;  %v5278_v59 = vld [vmem:[%s7672_s4 + $0x44] sm:$0xf0] }
  0x29   :  { %405 = vmatpush.bf16.msra.mxu0 %v3770_v2  ;;  %1038 = vmatpush.bf16.msra.mxu2 %v3866_v39  ;;  %v3850_v57 = vor.u32 %v5280_v56, %v3849_v55  ;;  %v3842_v60 = vor.u32 %v5278_v59, %v3841_v58  ;;  %v5274_v1 = vld [vmem:[%s7672_s4 + $0x24] sm:$0xf0]  ;;  %v3817_v3 = vld [vmem:[%s7672_s4 + $0x10] sm:$0xf]  ;;  %v5272_v4 = vld [vmem:[%s7672_s4 + $0x14] sm:$0xf0] }
  0x2a   :  { %v3809_v6 = vld [vmem:[%s7672_s4] sm:$0xf]  ;;  %v5270_v7 = vld [vmem:[%s7672_s4 + $0x4] sm:$0xf0] }
  0x2b   :  { %v5298_v37 = vld [vmem:[%s7672_s4 + $0xe4] sm:$0xf0] }
  0x2c   :  { %423 = vmatpush.bf16.msra.mxu1 %v3774_v5  ;;  %v3818_v5 = vor.u32 %v5272_v4, %v3817_v3  ;;  %v5294_v55 = vld [vmem:[%s7672_s4 + $0xc4] sm:$0xf0] }
  0x2d   :  { %406 = vmatpush.bf16.msra.mxu0 %v3762_v8  ;;  %1039 = vmatpush.bf16.msra.mxu2 %v3858_v54  ;;  %v315_v8 = vld [vmem:[%s7671_s3] sm:$0x3] }
  0x2e   :  { %v3905_v54 = vld [vmem:[%s7672_s4 + $0xc0] sm:$0xf] }
  0x2f   :  { %155 = vrot.lane.b32.xlu1 %v150_v9, %s5764_s22  ;;  %153 = vrot.lane.b32.xlu0 %v149_v10, %s5764_s22  ;;  %v5257_v9 = vld [vmem:[%s7670_s2 + $0x24] sm:$0xf]  ;;  %v3763_v10 = vld [vmem:[%s7670_s2 + $0x28] sm:$0xf0] }
  0x30   :  { %250 = vrot.lane.b32.xlu2 %v3735_v11, %s5764_s22  ;;  %v3766_v11 = vor.u32 %v5257_v9, %v3763_v10  ;;  %v3810_v9 = vor.u32 %v5270_v7, %v3809_v6  ;;  %v317_v10 = vperm.slane %v315_v8, 0 }
  0x31   :  { %1040 = vmatpush.bf16.msra.mxu2 %v3850_v57 }
  0x32   :  { %424 = vmatpush.bf16.msra.mxu1 %v3766_v11  ;;  %v318_v11 = vperm.slane %v315_v8, 1 }
  0x35   :  { %1041 = vmatpush.bf16.msra.mxu2 %v3842_v60  ;;  %v3906_v60 = vor.u32 %v5294_v55, %v3905_v54 }
  0x37   :  { %169 = vrot.lane.b32.xlu1 %v164_v12, %s5769_s26  ;;  %167 = vrot.lane.b32.xlu0 %v163_v13, %s5769_s26 }
  0x38   :  { %262 = vrot.lane.b32.xlu2 %v3737_v14, %s5769_s26 }
  0x3f   :  { %183 = vrot.lane.b32.xlu1 %v178_v15, %s5770_s12  ;;  %181 = vrot.lane.b32.xlu0 %v177_v16, %s5770_s12  ;;  %v3753_v15 = vld [vmem:[%s7670_s2 + $0x10] sm:$0xf]  ;;  %v5256_v16 = vld [vmem:[%s7670_s2 + $0x14] sm:$0xf0] }
  0x40   :  { %274 = vrot.lane.b32.xlu2 %v3739_v17, %s5770_s12  ;;  %v3754_v17 = vor.u32 %v5256_v16, %v3753_v15 }
  0x42   :  { %407 = vmatpush.bf16.msra.mxu0 %v3754_v17 }
  0x47   :  { %197 = vrot.lane.b32.xlu1 %v192_v18, %s5771_s0  ;;  %195 = vrot.lane.b32.xlu0 %v191_v19, %s5771_s0  ;;  %v5255_v18 = vld [vmem:[%s7670_s2 + $0x14] sm:$0xf]  ;;  %v3755_v19 = vld [vmem:[%s7670_s2 + $0x18] sm:$0xf0] }
  0x48   :  { %286 = vrot.lane.b32.xlu2 %v3741_v20, %s5771_s0  ;;  %v3758_v20 = vor.u32 %v5255_v18, %v3755_v19 }
  0x4a   :  { %425 = vmatpush.bf16.msra.mxu1 %v3758_v20 }
  0x4f   :  { %216 = vrot.lane.b32.xlu0 %v3730_v21, %s5766_s27  ;;  %228 = vrot.lane.b32.xlu1 %v3732_v22, %s5767_s30  ;;  %v3745_v21 = vld [vmem:[%s7670_s2] sm:$0xf]  ;;  %v5254_v22 = vld [vmem:[%s7670_s2 + $0x4] sm:$0xf0] }
  0x50   :  { %240 = vrot.lane.b32.xlu2 %v3734_v23, %s5768_s28  ;;  %v5253_v23 = vld [vmem:[%s7670_s2 + $0x4] sm:$0xf] }
  0x57   :  { %252 = vrot.lane.b32.xlu0 %v3736_v24, %s5764_s22  ;;  %264 = vrot.lane.b32.xlu1 %v3738_v25, %s5769_s26  ;;  %v3746_v24 = vor.u32 %v5254_v22, %v3745_v21  ;;  %v3747_v25 = vld [vmem:[%s7670_s2 + $0x8] sm:$0xf0] }
  0x58   :  { %276 = vrot.lane.b32.xlu2 %v3740_v26, %s5770_s12  ;;  %v3728_v26 = vld [vmem:[%s7687_s25 + $0x18] sm:$0x1] }
  0x59   :  { %209 = vst.msk [vmem:[#allocation2 + $0x11] sm:$0x1] %vm105_vm1, %v3728_v26  ;;  %408 = vmatpush.bf16.msra.mxu0 %v3746_v24  ;;  %vm444_vm1 = vcmask 128000  }
  0x5f   :  { %288 = vrot.lane.b32.xlu0 %v3742_v27, %s5771_s0  ;;  %v3750_v27 = vor.u32 %v5253_v23, %v3747_v25 }
  0x61   :  { %426 = vmatpush.bf16.msra.mxu1 %v3750_v27 }
  0x72   :  { %v128_v31 = vpop.permute.xlu2 %127 }
  0x7a   :  { %v227_v32 = vpop.permute.xlu2 %226 }
  0x82   :  { %v239_v33 = vpop.permute.xlu2 %238 }
  0x89   :  { %v215_v46 = vpop.permute.xlu1 %214  ;;  %v112_v47 = vpop.permute.xlu0 %111 }
  0x8a   :  { %220 = vst.msk [vmem:[#allocation2 + $0x9] sm:$0xff] %vm117_vm2, %v215_v46  ;;  %v251_v48 = vpop.permute.xlu2 %250 }
  0x8b   :  { %118 = vst.msk [vmem:[#allocation2] sm:$0xff] %vm117_vm2, %v112_v47  ;;  %vm499_vm2 = vcmask 130054  }
  0x8c   :  { %232 = vst.msk [vmem:[#allocation2 + $0x9] sm:$0xff] %vm131_vm3, %v227_v32 }
  0x8d   :  { %244 = vst.msk [vmem:[#allocation2 + $0x9] sm:$0xff] %vm145_vm4, %v239_v33 }
  0x8e   :  { %256 = vst.msk [vmem:[#allocation2 + $0x9] sm:$0xff] %vm159_vm5, %v251_v48 }
  0x91   :  { %v126_v61 = vpop.permute.xlu1 %125  ;;  %v114_v62 = vpop.permute.xlu0 %113 }
  0x92   :  { %132 = vst.msk [vmem:[#allocation2] sm:$0xff] %vm131_vm3, %v126_v61  ;;  %v263_v63 = vpop.permute.xlu2 %262  ;;  %v3833_v61 = vld [vmem:[%s7672_s4 + $0x30] sm:$0xf]  ;;  %vm502_vm3 = vcmask 125952  }
  0x93   :  { %120 = vst.msk [vmem:[#allocation2 + $0x8] sm:$0x1] %vm119_vm6, %v114_v62  ;;  %v5276_v62 = vld [vmem:[%s7672_s4 + $0x34] sm:$0xf0] }
  0x94   :  { %134 = vst.msk [vmem:[#allocation2 + $0x8] sm:$0x1] %vm133_vm7, %v128_v31  ;;  %v3834_v0 = vor.u32 %v5276_v62, %v3833_v61 }
  0x95   :  { %268 = vst.msk [vmem:[#allocation2 + $0x9] sm:$0xff] %vm173_vm8, %v263_v63  ;;  %v3825_v63 = vld [vmem:[%s7672_s4 + $0x20] sm:$0xf] }
  0x96   :  { %1042 = vmatpush.bf16.msra.mxu2 %v3834_v0  ;;  %v3826_v2 = vor.u32 %v5274_v1, %v3825_v63  ;;  %v3897_v63 = vld [vmem:[%s7672_s4 + $0xb0] sm:$0xf]  ;;  %v5292_v0 = vld [vmem:[%s7672_s4 + $0xb4] sm:$0xf0] }
  0x99   :  { %v142_v12 = vpop.permute.xlu1 %141  ;;  %v140_v13 = vpop.permute.xlu0 %139 }
  0x9a   :  { %148 = vst.msk [vmem:[#allocation2 + $0x8] sm:$0x1] %vm147_vm9, %v142_v12  ;;  %v275_v14 = vpop.permute.xlu2 %274  ;;  %1043 = vmatpush.bf16.msra.mxu2 %v3826_v2  ;;  %v3898_v2 = vor.u32 %v5292_v0, %v3897_v63  ;;  %v3827_v0 = vld [vmem:[%s7672_s4 + $0x28] sm:$0xf0] }
  0x9b   :  { %146 = vst.msk [vmem:[#allocation2] sm:$0xff] %vm145_vm4, %v140_v13  ;;  %vm477_vm4 = vcmask 1044480  }
  0x9c   :  { %280 = vst.msk [vmem:[#allocation2 + $0x9] sm:$0xff] %vm187_vm10, %v275_v14 }
  0x9e   :  { %1044 = vmatpush.bf16.msra.mxu2 %v3818_v5 }
  0xa1   :  { %v156_v28 = vpop.permute.xlu1 %155  ;;  %v154_v29 = vpop.permute.xlu0 %153 }
  0xa2   :  { %162 = vst.msk [vmem:[#allocation2 + $0x8] sm:$0x1] %vm161_vm11, %v156_v28  ;;  %v287_v30 = vpop.permute.xlu2 %286  ;;  %1045 = vmatpush.bf16.msra.mxu2 %v3810_v9 }
  0xa3   :  { %160 = vst.msk [vmem:[#allocation2] sm:$0xff] %vm159_vm5, %v154_v29  ;;  %vm552_vm5 = vcmask 1041408  }
  0xa4   :  { %292 = vst.msk [vmem:[#allocation2 + $0x9] sm:$0xff] %vm201_vm12, %v287_v30 }
  0xa9   :  { %v170_v31 = vpop.permute.xlu1 %169  ;;  %v168_v32 = vpop.permute.xlu0 %167 }
  0xaa   :  { %176 = vst.msk [vmem:[#allocation2 + $0x8] sm:$0x1] %vm175_vm13, %v170_v31  ;;  %v241_v40 = vpop.permute.xlu2 %240  ;;  %v3929_v31 = vld [vmem:[%s7672_s4 + $0xf0] sm:$0xf] }
  0xab   :  { %174 = vst.msk [vmem:[#allocation2] sm:$0xff] %vm173_vm8, %v168_v32  ;;  %v5300_v32 = vld [vmem:[%s7672_s4 + $0xf4] sm:$0xf0]  ;;  %vm517_vm8 = vcmask 1043584  }
  0xb1   :  { %v184_v33 = vpop.permute.xlu1 %183  ;;  %v182_v34 = vpop.permute.xlu0 %181 }
  0xb2   :  { %190 = vst.msk [vmem:[#allocation2 + $0x8] sm:$0x1] %vm189_vm14, %v184_v33  ;;  %v277_v46 = vpop.permute.xlu2 %276 }
  0xb3   :  { %188 = vst.msk [vmem:[#allocation2] sm:$0xff] %vm187_vm10, %v182_v34  ;;  %vm459_vm10 = vcmask 259072  }
  0xb9   :  { %v198_v35 = vpop.permute.xlu1 %197  ;;  %v196_v36 = vpop.permute.xlu0 %195 }
  0xba   :  { %204 = vst.msk [vmem:[#allocation2 + $0x8] sm:$0x1] %vm203_vm15, %v198_v35  ;;  %v3930_v35 = vor.u32 %v5300_v32, %v3929_v31  ;;  %v3851_v32 = vld [vmem:[%s7672_s4 + $0x58] sm:$0xf0] }
  0xbb   :  { %202 = vst.msk [vmem:[#allocation2] sm:$0xff] %vm201_vm12, %v196_v36  ;;  %v3921_v36 = vld [vmem:[%s7672_s4 + $0xe0] sm:$0xf]  ;;  %vm575_vm12 = vcmask 523270  }
  0xbc   :  { %1052 = vmatpush.bf16.msra.mxu3 %v3930_v35 }
  0xc1   :  { %v217_v41 = vpop.permute.xlu0 %216  ;;  %v295_v42 = vld [vmem:[#allocation2 + $0x8] sm:$0xff]  ;;  %v229_v43 = vpop.permute.xlu1 %228 }
  0xc2   :  { %221 = vst.msk [vmem:[#allocation2 + $0x11] sm:$0x1] %vm119_vm6, %v217_v41  ;;  %v294_v44 = vld [vmem:[#allocation2] sm:$0xff]  ;;  %vm523_vm6 = vcmask 1042432  }
  0xc3   :  { %v297_v45 = vpack.c.bf16 %v295_v42, %v294_v44  ;;  %233 = vst.msk [vmem:[#allocation2 + $0x11] sm:$0x1] %vm133_vm7, %v229_v43  ;;  %v3922_v43 = vor.u32 %v5298_v37, %v3921_v36  ;;  %v5277_v36 = vld [vmem:[%s7672_s4 + $0x44] sm:$0xf]  ;;  %v3843_v37 = vld [vmem:[%s7672_s4 + $0x48] sm:$0xf0] }
  0xc4   :  { %245 = vst.msk [vmem:[#allocation2 + $0x11] sm:$0x1] %vm147_vm9, %v241_v40  ;;  %vm513_vm7 = vcmask 1047686   ;;  %vm457_vm9 = vcmask 1045632  }
  0xc5   :  { %409 = vmatmul.bf16.vlgmr.msra.gmra.mxu0 %v297_v45  ;;  %427 = vmatmul.bf16.vlgmr.msra.gmra.mxu1 %v297_v45  ;;  %v3913_v45 = vld [vmem:[%s7672_s4 + $0xd0] sm:$0xf] }
  0xc6   :  { %1053 = vmatpush.bf16.msra.mxu3 %v3922_v43  ;;  %v4057_v43 = vld [vmem:[%s7672_s4 + $0x1f0] sm:$0xf] }
  0xc9   :  { %v253_v47 = vpop.permute.xlu0 %252  ;;  %v265_v48 = vpop.permute.xlu1 %264 }
  0xca   :  { %257 = vst.msk [vmem:[#allocation2 + $0x11] sm:$0x1] %vm161_vm11, %v253_v47  ;;  %vm488_vm11 = vcmask 392192  }
  0xcb   :  { %269 = vst.msk [vmem:[#allocation2 + $0x11] sm:$0x1] %vm175_vm13, %v265_v48  ;;  %vm515_vm13 = vcmask 261126  }
  0xcc   :  { %281 = vst.msk [vmem:[#allocation2 + $0x11] sm:$0x1] %vm189_vm14, %v277_v46  ;;  %v5296_v46 = vld [vmem:[%s7672_s4 + $0xd4] sm:$0xf0]  ;;  %vm519_vm14 = vcmask 257024  }
  0xd1   :  { %v289_v49 = vpop.permute.xlu0 %288 }
  0xd2   :  { %293 = vst.msk [vmem:[#allocation2 + $0x11] sm:$0x1] %vm203_vm15, %v289_v49  ;;  %vm471_vm15 = vcmask 1045760  }
  0xd9   :  { %v296_v50 = vld [vmem:[#allocation2 + $0x10] sm:$0x3] }
  0xda   :  { %v298_v51 = vpack.c.bf16 %v296_v50, %v296_v50 }
  0xdc   :  { %414 = vmatmul.bf16.gmra.mxu0 %v298_v51  ;;  %432 = vmatmul.bf16.gmra.mxu1 %v298_v51  ;;  %v3914_v51 = vor.u32 %v5296_v46, %v3913_v45  ;;  %v3969_v46 = vld [vmem:[%s7672_s4 + $0x140] sm:$0xf] }
  0xde   :  { %1054 = vmatpush.bf16.msra.mxu3 %v3914_v51  ;;  %v3835_v51 = vld [vmem:[%s7672_s4 + $0x38] sm:$0xf0] }
  0xe2   :  { %1055 = vmatpush.bf16.msra.mxu3 %v3906_v60 }
  0xe6   :  { %1056 = vmatpush.bf16.msra.mxu3 %v3898_v2  ;;  %v4073_v2 = vld [vmem:[%s7672_s4 + $0x210] sm:$0xf] }
 0x142   :  { %v410_v12 = vpop.f32.mrf.mxu0  ;;  %v428_v13 = vpop.f32.mrf.mxu1 }
 0x143   :  { %v411_v14 = vadd.f32 %v410_v12, %v317_v10  ;;  %v429_v15 = vadd.f32 %v428_v13, %v318_v11  ;;  %v3881_v12 = vld [vmem:[%s7672_s4 + $0x90] sm:$0xf] }
 0x145   :  { %5643 = vtanh.f32 %v411_v14  ;;  %v5288_v14 = vld [vmem:[%s7672_s4 + $0x94] sm:$0xf0] }
 0x146   :  { %5645 = vtanh.f32 %v429_v15  ;;  %v3882_v15 = vor.u32 %v5288_v14, %v3881_v12  ;;  %v3819_v12 = vld [vmem:[%s7672_s4 + $0x18] sm:$0xf0] }
 0x14a   :  { %v412_v16 = vpop.f32.mrf.mxu0  ;;  %v430_v17 = vpop.f32.mrf.mxu1 }
 0x14b   :  { %v6157_v18 = vpop.eup %5643  ;;  %v413_v19 = vadd.f32 %v412_v16, %v317_v10  ;;  %v431_v20 = vadd.f32 %v430_v17, %v318_v11  ;;  %v3873_v16 = vld [vmem:[%s7672_s4 + $0x80] sm:$0xf]  ;;  %v5286_v17 = vld [vmem:[%s7672_s4 + $0x84] sm:$0xf0] }
 0x14c   :  { %v6159_v21 = vpop.eup %5645  ;;  %443 = vst [vmem:[#allocation3] sm:$0x3f] %v6157_v18  ;;  %v448_v22 = vrot.slane %v6157_v18, 1  ;;  %v478_v40 = vrot.slane %v6157_v18, 3  ;;  %v461_v5 = vrot.slane %v6157_v18, 2 }
 0x14d   :  { %5647 = vtanh.f32 %v413_v19  ;;  %v449_v23 = vrot.slane %v6159_v21, 1  ;;  %445 = vst.msk [vmem:[#allocation3 + $0x8] sm:$0x3f] %vm444_vm1, %v6159_v21  ;;  %v481_v42 = vrot.slane %v6159_v21, 3  ;;  %v462_v61 = vrot.slane %v6159_v21, 2 }
 0x14e   :  { %5649 = vtanh.f32 %v431_v20  ;;  %450 = vrot.lane.b32.xlu1 %v448_v22, %s5766_s27  ;;  %v5283_v18 = vld [vmem:[%s7672_s4 + $0x74] sm:$0xf]  ;;  %v3874_v19 = vor.u32 %v5286_v17, %v3873_v16  ;;  %v3867_v20 = vld [vmem:[%s7672_s4 + $0x78] sm:$0xf0]  ;;  %v3993_v21 = vld [vmem:[%s7672_s4 + $0x170] sm:$0xf] }
 0x14f   :  { %452 = vrot.lane.b32.xlu0 %v449_v23, %s5766_s27  ;;  %v5316_v22 = vld [vmem:[%s7672_s4 + $0x174] sm:$0xf0]  ;;  %v3870_v23 = vor.u32 %v5283_v18, %v3867_v20  ;;  %v4033_v16 = vld [vmem:[%s7672_s4 + $0x1c0] sm:$0xf]  ;;  %v5326_v17 = vld [vmem:[%s7672_s4 + $0x1c4] sm:$0xf0] }
 0x150   :  { %v3931_v20 = vld [vmem:[%s7672_s4 + $0xf8] sm:$0xf0]  ;;  %vm494_vm1 = vcmask 521216  }
 0x153   :  { %v6167_v24 = vpop.eup %5647 }
 0x154   :  { %v6169_v25 = vpop.eup %5649  ;;  %v504_v26 = vrot.slane %v6167_v24, 4  ;;  %v479_v27 = vrot.slane %v6167_v24, 3  ;;  %v553_v41 = vrot.slane %v6167_v24, 6  ;;  %v524_v4 = vrot.slane %v6167_v24, 5 }
 0x155   :  { %v554_v28 = vrot.slane %v6169_v25, 6  ;;  %v505_v29 = vrot.slane %v6169_v25, 4  ;;  %v482_v30 = vrot.slane %v6169_v25, 3  ;;  %v525_v8 = vrot.slane %v6169_v25, 5  ;;  %v5281_v25 = vld [vmem:[%s7672_s4 + $0x64] sm:$0xf] }
 0x156   :  { %506 = vrot.lane.b32.xlu2 %v504_v26, %s5766_s27  ;;  %498 = vst [vmem:[#allocation3] sm:$0xc0] %v479_v27  ;;  %v480_v47 = vsel %vm477_vm4, %v478_v40, %v479_v27  ;;  %v3994_v24 = vor.u32 %v5316_v22, %v3993_v21  ;;  %v3859_v26 = vld [vmem:[%s7672_s4 + $0x68] sm:$0xf0]  ;;  %v4089_v40 = vld [vmem:[%s7672_s4 + $0x230] sm:$0xf] }
 0x157   :  { %561 = vrot.lane.b32.xlu0 %v554_v28, %s5768_s28  ;;  %508 = vrot.lane.b32.xlu1 %v505_v29, %s5766_s27  ;;  %501 = vst [vmem:[#allocation3 + $0x28] sm:$0xf] %v479_v27  ;;  %v483_v48 = vsel %vm477_vm4, %v481_v42, %v482_v30  ;;  %v3862_v27 = vor.u32 %v5281_v25, %v3859_v26  ;;  %v5314_v29 = vld [vmem:[%s7672_s4 + $0x164] sm:$0xf0]  ;;  %v3945_v21 = vld [vmem:[%s7672_s4 + $0x110] sm:$0xf] }
 0x158   :  { %500 = vst.msk [vmem:[#allocation3 + $0x8] sm:$0xc0] %vm499_vm2, %v482_v30  ;;  %1066 = vmatpush.bf16.msrb.mxu0 %v3994_v24  ;;  %v5304_v25 = vld [vmem:[%s7672_s4 + $0x114] sm:$0xf0]  ;;  %v5269_v26 = vld [vmem:[%s7672_s4 + $0x4] sm:$0xf] }
 0x159   :  { %v415_v33 = vpop.f32.mrf.mxu0  ;;  %v433_v34 = vpop.f32.mrf.mxu1  ;;  %503 = vst.msk [vmem:[#allocation3 + $0x30] sm:$0xf] %vm502_vm3, %v482_v30  ;;  %v5279_v30 = vld [vmem:[%s7672_s4 + $0x54] sm:$0xf]  ;;  %vm473_vm2 = vcmask 390144   ;;  %vm492_vm3 = vcmask 1045888  }
 0x15a   :  { %v416_v38 = vadd.f32 %v415_v33, %v317_v10  ;;  %v434_v39 = vadd.f32 %v433_v34, %v318_v11  ;;  %v3889_v10 = vld [vmem:[%s7672_s4 + $0xa0] sm:$0xf]  ;;  %v5290_v11 = vld [vmem:[%s7672_s4 + $0xa4] sm:$0xf0]  ;;  %v3977_v33 = vld [vmem:[%s7672_s4 + $0x150] sm:$0xf]  ;;  %v3854_v35 = vor.u32 %v5279_v30, %v3851_v32 }
 0x15b   :  { %v3890_v13 = vor.u32 %v5290_v11, %v3889_v10  ;;  %v5312_v34 = vld [vmem:[%s7672_s4 + $0x154] sm:$0xf0]  ;;  %v5271_v11 = vld [vmem:[%s7672_s4 + $0x14] sm:$0xf]  ;;  %v4025_v30 = vld [vmem:[%s7672_s4 + $0x1b0] sm:$0xf] }
 0x15c   :  { %5651 = vtanh.f32 %v416_v38  ;;  %v3978_v38 = vor.u32 %v5312_v34, %v3977_v33  ;;  %v3822_v14 = vor.u32 %v5271_v11, %v3819_v12  ;;  %v5297_v32 = vld [vmem:[%s7672_s4 + $0xe4] sm:$0xf]  ;;  %v3923_v34 = vld [vmem:[%s7672_s4 + $0xe8] sm:$0xf0]  ;;  %vm579_vm4 = vcmask 519168  }
 0x15d   :  { %5653 = vtanh.f32 %v434_v39  ;;  %v581_v44 = vld [vmem:[#allocation3] sm:$0xff]  ;;  %1057 = vmatpush.bf16.msra.mxu3 %v3890_v13  ;;  %v3846_v39 = vor.u32 %v5277_v36, %v3843_v37  ;;  %v5302_v36 = vld [vmem:[%s7672_s4 + $0x104] sm:$0xf0]  ;;  %v3926_v37 = vor.u32 %v5297_v32, %v3923_v34  ;;  %v4051_v34 = vld [vmem:[%s7672_s4 + $0x1e8] sm:$0xf0] }
 0x15e   :  { %559 = vrot.lane.b32.xlu2 %v553_v41, %s5768_s28  ;;  %v586_v49 = vld [vmem:[#allocation3 + $0x28] sm:$0xf]  ;;  %v4065_v13 = vld [vmem:[%s7672_s4 + $0x200] sm:$0xf] }
 0x15f   :  { %484 = vrot.lane.b32.xlu0 %v480_v47, %s5768_s28  ;;  %486 = vrot.lane.b32.xlu1 %v483_v48, %s5768_s28  ;;  %v6203_v50 = vpack.c.bf16 %v586_v49, %v581_v44  ;;  %v5332_v44 = vld [vmem:[%s7672_s4 + $0x1f4] sm:$0xf0]  ;;  %v5310_v47 = vld [vmem:[%s7672_s4 + $0x144] sm:$0xf0] }
 0x160   :  { %v4058_v45 = vor.u32 %v5332_v44, %v4057_v43  ;;  %v5275_v48 = vld [vmem:[%s7672_s4 + $0x34] sm:$0xf]  ;;  %v3970_v49 = vor.u32 %v5310_v47, %v3969_v46  ;;  %v5322_v43 = vld [vmem:[%s7672_s4 + $0x1a4] sm:$0xf0] }
 0x161   :  { %1046 = vmatmul.bf16.vlgmr.msra.gmra.mxu2 %v6203_v50  ;;  %v417_v52 = vpop.f32.mrf.mxu0  ;;  %v435_v53 = vpop.f32.mrf.mxu1  ;;  %1058 = vmatpush.bf16.msra.mxu3 %v3882_v15  ;;  %v3838_v55 = vor.u32 %v5275_v48, %v3835_v51  ;;  %v5334_v15 = vld [vmem:[%s7672_s4 + $0x204] sm:$0xf0]  ;;  %v5295_v48 = vld [vmem:[%s7672_s4 + $0xd4] sm:$0xf] }
 0x162   :  { %v5652_v56 = vpop.eup %5651  ;;  %v4081_v52 = vld [vmem:[%s7672_s4 + $0x220] sm:$0xf]  ;;  %v5338_v53 = vld [vmem:[%s7672_s4 + $0x224] sm:$0xf0]  ;;  %1080 = vmatpush.bf16.msrb.mxu1 %v4058_v45  ;;  %v4066_v18 = vor.u32 %v5334_v15, %v4065_v13  ;;  %v3899_v15 = vld [vmem:[%s7672_s4 + $0xb8] sm:$0xf0] }
 0x163   :  { %v5654_v57 = vpop.eup %5653  ;;  %v555_v58 = vrot.slane %v5652_v56, 6  ;;  %v526_v3 = vrot.slane %v5652_v56, 5  ;;  %v4082_v56 = vor.u32 %v5338_v53, %v4081_v52  ;;  %v5313_v53 = vld [vmem:[%s7672_s4 + $0x164] sm:$0xf]  ;;  %v5318_v13 = vld [vmem:[%s7672_s4 + $0x184] sm:$0xf0] }
 0x164   :  { %v557_v59 = vrot.slane %v5654_v57, 6  ;;  %v528_v7 = vrot.slane %v5654_v57, 5  ;;  %v4049_v57 = vld [vmem:[%s7672_s4 + $0x1e0] sm:$0xf] }
 0x165   :  { %v556_v62 = vsel %vm552_vm5, %v553_v41, %v555_v58  ;;  %v527_v6 = vsel %vm523_vm6, %v524_v4, %v526_v3  ;;  %1059 = vmatpush.bf16.msra.mxu3 %v3874_v19  ;;  %v5340_v41 = vld [vmem:[%s7672_s4 + $0x234] sm:$0xf0]  ;;  %v5330_v58 = vld [vmem:[%s7672_s4 + $0x1e4] sm:$0xf0]  ;;  %v5299_v19 = vld [vmem:[%s7672_s4 + $0xf4] sm:$0xf] }
 0x166   :  { %v558_v1 = vsel %vm552_vm5, %v554_v28, %v557_v59  ;;  %v529_v9 = vsel %vm523_vm6, %v525_v8, %v528_v7  ;;  %v3985_v28 = vld [vmem:[%s7672_s4 + $0x160] sm:$0xf]  ;;  %v4090_v42 = vor.u32 %v5340_v41, %v4089_v40  ;;  %v3961_v59 = vld [vmem:[%s7672_s4 + $0x130] sm:$0xf]  ;;  %v4050_v60 = vor.u32 %v5330_v58, %v4049_v57  ;;  %v5336_v3 = vld [vmem:[%s7672_s4 + $0x214] sm:$0xf0] }
 0x167   :  { %465 = vrot.lane.b32.xlu0 %v462_v61, %s5767_s30  ;;  %565 = vrot.lane.b32.xlu2 %v558_v1, %s5768_s28  ;;  %v3986_v31 = vor.u32 %v5314_v29, %v3985_v28  ;;  %v5308_v61 = vld [vmem:[%s7672_s4 + $0x134] sm:$0xf0]  ;;  %v3953_v7 = vld [vmem:[%s7672_s4 + $0x120] sm:$0xf]  ;;  %v3934_v24 = vor.u32 %v5299_v19, %v3931_v20  ;;  %v3946_v28 = vor.u32 %v5304_v25, %v3945_v21  ;;  %vm548_vm6 = vcmask 1043712  }
 0x168   :  { %563 = vrot.lane.b32.xlu1 %v556_v62, %s5768_s28  ;;  %1098 = vmatpush.bf16.msrb.mxu2 %v4090_v42  ;;  %v5273_v62 = vld [vmem:[%s7672_s4 + $0x24] sm:$0xf]  ;;  %v3962_v63 = vor.u32 %v5308_v61, %v3961_v59  ;;  %v3995_v41 = vld [vmem:[%s7672_s4 + $0x178] sm:$0xf0]  ;;  %v4017_v42 = vld [vmem:[%s7672_s4 + $0x1a0] sm:$0xf] }
 0x169   :  { %1108 = vmatpush.bf16.msrb.mxu3 %v3870_v23  ;;  %1067 = vmatpush.bf16.msrb.mxu0 %v3986_v31  ;;  %v3830_v1 = vor.u32 %v5273_v62, %v3827_v0  ;;  %v4034_v23 = vor.u32 %v5326_v17, %v4033_v16  ;;  %v5324_v31 = vld [vmem:[%s7672_s4 + $0x1b4] sm:$0xf0]  ;;  %v4018_v47 = vor.u32 %v5322_v43, %v4017_v42  ;;  %v4091_v57 = vld [vmem:[%s7672_s4 + $0x238] sm:$0xf0]  ;;  %v4009_v59 = vld [vmem:[%s7672_s4 + $0x190] sm:$0xf] }
 0x16a   :  { %1081 = vmatpush.bf16.msrb.mxu1 %v4050_v60  ;;  %v4026_v33 = vor.u32 %v5324_v31, %v4025_v30  ;;  %v5320_v60 = vld [vmem:[%s7672_s4 + $0x194] sm:$0xf0]  ;;  %v5293_v61 = vld [vmem:[%s7672_s4 + $0xc4] sm:$0xf]  ;;  %v3907_v0 = vld [vmem:[%s7672_s4 + $0xc8] sm:$0xf0] }
 0x16b   :  { %v5331_v20 = vld [vmem:[%s7672_s4 + $0x1f4] sm:$0xf]  ;;  %v4059_v21 = vld [vmem:[%s7672_s4 + $0x1f8] sm:$0xf0]  ;;  %v5309_v25 = vld [vmem:[%s7672_s4 + $0x144] sm:$0xf] }
 0x16c   :  { %1099 = vmatpush.bf16.msrb.mxu2 %v4082_v56  ;;  %v5339_v56 = vld [vmem:[%s7672_s4 + $0x234] sm:$0xf]  ;;  %v5289_v30 = vld [vmem:[%s7672_s4 + $0xa4] sm:$0xf]  ;;  %v3891_v31 = vld [vmem:[%s7672_s4 + $0xa8] sm:$0xf0] }
 0x16d   :  { %1109 = vmatpush.bf16.msrb.mxu3 %v3862_v27  ;;  %1068 = vmatpush.bf16.msrb.mxu0 %v3978_v38  ;;  %v3811_v27 = vld [vmem:[%s7672_s4 + $0x8] sm:$0xf0]  ;;  %v3894_v32 = vor.u32 %v5289_v30, %v3891_v31  ;;  %v3883_v43 = vld [vmem:[%s7672_s4 + $0x98] sm:$0xf0] }
 0x16e   :  { %v3814_v29 = vor.u32 %v5269_v26, %v3811_v27  ;;  %v4075_v27 = vld [vmem:[%s7672_s4 + $0x218] sm:$0xf0] }
 0x16f   :  { %534 = vrot.lane.b32.xlu0 %v527_v6, %s5767_s30  ;;  %463 = vrot.lane.b32.xlu2 %v461_v5, %s5767_s30  ;;  %v4074_v5 = vor.u32 %v5336_v3, %v4073_v2  ;;  %v5328_v6 = vld [vmem:[%s7672_s4 + $0x1d4] sm:$0xf0]  ;;  %v4083_v2 = vld [vmem:[%s7672_s4 + $0x228] sm:$0xf0]  ;;  %v3910_v3 = vor.u32 %v5293_v61, %v3907_v0 }
 0x170   :  { %530 = vrot.lane.b32.xlu1 %v524_v4, %s5767_s30  ;;  %v4041_v4 = vld [vmem:[%s7672_s4 + $0x1d0] sm:$0xf]  ;;  %v5303_v0 = vld [vmem:[%s7672_s4 + $0x114] sm:$0xf] }
 0x171   :  { %1110 = vmatpush.bf16.msrb.mxu3 %v3854_v35  ;;  %1069 = vmatpush.bf16.msrb.mxu0 %v3970_v49  ;;  %v3937_v35 = vld [vmem:[%s7672_s4 + $0x100] sm:$0xf]  ;;  %v3915_v49 = vld [vmem:[%s7672_s4 + $0xd8] sm:$0xf0] }
 0x172   :  { %1100 = vmatpush.bf16.msrb.mxu2 %v4074_v5  ;;  %v3938_v38 = vor.u32 %v5302_v36, %v3937_v35  ;;  %v3918_v52 = vor.u32 %v5295_v48, %v3915_v49  ;;  %v5333_v35 = vld [vmem:[%s7672_s4 + $0x204] sm:$0xf]  ;;  %v4067_v36 = vld [vmem:[%s7672_s4 + $0x208] sm:$0xf0] }
 0x173   :  { %v4070_v61 = vor.u32 %v5333_v35, %v4067_v36 }
 0x175   :  { %1111 = vmatpush.bf16.msrb.mxu3 %v3846_v39  ;;  %1070 = vmatpush.bf16.msrb.mxu0 %v3962_v63  ;;  %v5315_v39 = vld [vmem:[%s7672_s4 + $0x174] sm:$0xf]  ;;  %v4010_v63 = vor.u32 %v5320_v60, %v4009_v59  ;;  %v4035_v59 = vld [vmem:[%s7672_s4 + $0x1c8] sm:$0xf0] }
 0x176   :  { %1101 = vmatpush.bf16.msrb.mxu2 %v4066_v18  ;;  %v3998_v46 = vor.u32 %v5315_v39, %v3995_v41  ;;  %v3963_v39 = vld [vmem:[%s7672_s4 + $0x138] sm:$0xf0] }
 0x177   :  { %532 = vrot.lane.b32.xlu2 %v525_v8, %s5767_s30  ;;  %v5306_v8 = vld [vmem:[%s7672_s4 + $0x124] sm:$0xf0] }
 0x178   :  { %536 = vrot.lane.b32.xlu1 %v529_v9, %s5767_s30  ;;  %v4042_v9 = vor.u32 %v5328_v6, %v4041_v4  ;;  %v3954_v10 = vor.u32 %v5306_v8, %v3953_v7  ;;  %v5311_v4 = vld [vmem:[%s7672_s4 + $0x154] sm:$0xf]  ;;  %v4094_v6 = vor.u32 %v5339_v56, %v4091_v57  ;;  %v3979_v7 = vld [vmem:[%s7672_s4 + $0x158] sm:$0xf0]  ;;  %v4001_v8 = vld [vmem:[%s7672_s4 + $0x180] sm:$0xf] }
 0x179   :  { %1112 = vmatpush.bf16.msrb.mxu3 %v3838_v55  ;;  %v3987_v55 = vld [vmem:[%s7672_s4 + $0x168] sm:$0xf0]  ;;  %v3982_v12 = vor.u32 %v5311_v4, %v3979_v7  ;;  %v4002_v18 = vor.u32 %v5318_v13, %v4001_v8  ;;  %v4027_v4 = vld [vmem:[%s7672_s4 + $0x1b8] sm:$0xf0] }
 0x17a   :  { %1082 = vmatpush.bf16.msrb.mxu1 %v4042_v9  ;;  %1071 = vmatpush.bf16.msrb.mxu0 %v3954_v10  ;;  %v3990_v58 = vor.u32 %v5313_v53, %v3987_v55  ;;  %v3955_v53 = vld [vmem:[%s7672_s4 + $0x128] sm:$0xf0]  ;;  %v5285_v55 = vld [vmem:[%s7672_s4 + $0x84] sm:$0xf] }
 0x17b   :  { %1122 = vmatpush.bf16.msra.mxu2 %v3934_v24  ;;  %v4062_v24 = vor.u32 %v5331_v20, %v4059_v21  ;;  %v3875_v57 = vld [vmem:[%s7672_s4 + $0x88] sm:$0xf0]  ;;  %v5317_v21 = vld [vmem:[%s7672_s4 + $0x184] sm:$0xf] }
 0x17c   :  { %v4019_v13 = vld [vmem:[%s7672_s4 + $0x1a8] sm:$0xf0] }
 0x17d   :  { %1113 = vmatpush.bf16.msrb.mxu3 %v3830_v1  ;;  %v5337_v1 = vld [vmem:[%s7672_s4 + $0x224] sm:$0xf] }
 0x17e   :  { %1083 = vmatpush.bf16.msrb.mxu1 %v4034_v23  ;;  %1072 = vmatpush.bf16.msrb.mxu0 %v3946_v28  ;;  %v4086_v26 = vor.u32 %v5337_v1, %v4083_v2  ;;  %v3971_v28 = vld [vmem:[%s7672_s4 + $0x148] sm:$0xf0]  ;;  %v3947_v1 = vld [vmem:[%s7672_s4 + $0x118] sm:$0xf0]  ;;  %v5323_v2 = vld [vmem:[%s7672_s4 + $0x1b4] sm:$0xf] }
 0x17f   :  { %1123 = vmatpush.bf16.msra.mxu2 %v3926_v37  ;;  %v4030_v8 = vor.u32 %v5323_v2, %v4027_v4 }
 0x181   :  { %1114 = vmatpush.bf16.msrb.mxu3 %v3822_v14  ;;  %v5291_v14 = vld [vmem:[%s7672_s4 + $0xb4] sm:$0xf] }
 0x182   :  { %1084 = vmatpush.bf16.msrb.mxu1 %v4026_v33  ;;  %1073 = vmatpush.bf16.msrb.mxu0 %v3938_v38  ;;  %v3902_v19 = vor.u32 %v5291_v14, %v3899_v15  ;;  %v5329_v33 = vld [vmem:[%s7672_s4 + $0x1e4] sm:$0xf]  ;;  %v5307_v38 = vld [vmem:[%s7672_s4 + $0x134] sm:$0xf] }
 0x183   :  { %1124 = vmatpush.bf16.msra.mxu2 %v3918_v52  ;;  %v4054_v37 = vor.u32 %v5329_v33, %v4051_v34  ;;  %v3966_v42 = vor.u32 %v5307_v38, %v3963_v39  ;;  %v5305_v52 = vld [vmem:[%s7672_s4 + $0x124] sm:$0xf]  ;;  %v668_v39 = vld [vmem:[%s7673_s5] sm:$0x3] }
 0x184   :  { %v3958_v60 = vor.u32 %v5305_v52, %v3955_v53  ;;  %v671_v53 = vperm.slane %v668_v39, 1 }
 0x185   :  { %1115 = vmatpush.bf16.msrb.mxu3 %v3814_v29  ;;  %v3974_v29 = vor.u32 %v5309_v25, %v3971_v28 }
 0x186   :  { %1136 = vmatpush.bf16.msra.mxu0 %v3998_v46  ;;  %1085 = vmatpush.bf16.msrb.mxu1 %v4018_v47  ;;  %v4043_v46 = vld [vmem:[%s7672_s4 + $0x1d8] sm:$0xf0] }
 0x187   :  { %1125 = vmatpush.bf16.msra.mxu2 %v3910_v3  ;;  %v3950_v3 = vor.u32 %v5303_v0, %v3947_v1 }
 0x18a   :  { %1137 = vmatpush.bf16.msra.mxu0 %v3990_v58  ;;  %1086 = vmatpush.bf16.msrb.mxu1 %v4010_v63  ;;  %v5325_v58 = vld [vmem:[%s7672_s4 + $0x1c4] sm:$0xf] }
 0x18b   :  { %1126 = vmatpush.bf16.msra.mxu2 %v3902_v19  ;;  %v4038_v63 = vor.u32 %v5325_v58, %v4035_v59 }
 0x18e   :  { %1138 = vmatpush.bf16.msra.mxu0 %v3982_v12  ;;  %1087 = vmatpush.bf16.msrb.mxu1 %v4002_v18  ;;  %v5321_v12 = vld [vmem:[%s7672_s4 + $0x1a4] sm:$0xf]  ;;  %v4011_v18 = vld [vmem:[%s7672_s4 + $0x198] sm:$0xf0] }
 0x18f   :  { %1127 = vmatpush.bf16.msra.mxu2 %v3894_v32 }
 0x192   :  { %1150 = vmatpush.bf16.msra.mxu1 %v4062_v24  ;;  %1139 = vmatpush.bf16.msra.mxu0 %v3974_v29 }
 0x196   :  { %1151 = vmatpush.bf16.msra.mxu1 %v4054_v37  ;;  %1140 = vmatpush.bf16.msra.mxu0 %v3966_v42  ;;  %v670_v42 = vperm.slane %v668_v39, 0  ;;  %v5356_v39 = vld [vmem:[%s7674_s6 + $0x74] sm:$0xf0] }
 0x19a   :  { %1141 = vmatpush.bf16.msra.mxu0 %v3958_v60 }
 0x19e   :  { %1142 = vmatpush.bf16.msra.mxu0 %v3950_v3 }
 0x1b0   :  { %v6322_v54 = vpop.permute.xlu2 %506 }
 0x1b1   :  { %514 = vst.msk [vmem:[#allocation3 + $0x8] sm:$0xc0] %vm513_vm7, %v6322_v54  ;;  %vm544_vm7 = vcmask 1047814  }
 0x1b2   :  { %518 = vst.msk [vmem:[#allocation3 + $0x30] sm:$0xf] %vm517_vm8, %v6322_v54  ;;  %vm546_vm8 = vcmask 392198  }
 0x1b8   :  { %v6391_v22 = vpop.permute.xlu2 %559 }
 0x1b9   :  { %v587_v62 = vld [vmem:[#allocation3 + $0x30] sm:$0xf] }
 0x1c0   :  { %v451_v40 = vpop.permute.xlu1 %450 }
 0x1c1   :  { %v453_v44 = vpop.permute.xlu0 %452  ;;  %458 = vst.msk [vmem:[#allocation3 + $0x8] sm:$0x3f] %vm457_vm9, %v451_v40  ;;  %v6433_v45 = vpop.permute.xlu2 %565  ;;  %vm573_vm9 = vcmask 1047942  }
 0x1c2   :  { %v454_v51 = vsel %vm103_vm0, %v451_v40, %v453_v44  ;;  %v5287_v40 = vld [vmem:[%s7672_s4 + $0x94] sm:$0xf] }
 0x1c3   :  { %460 = vst.msk [vmem:[#allocation3 + $0x10] sm:$0x3f] %vm459_vm10, %v454_v51  ;;  %v5327_v44 = vld [vmem:[%s7672_s4 + $0x1d4] sm:$0xf]  ;;  %v3886_v49 = vor.u32 %v5287_v40, %v3883_v43  ;;  %vm1034_vm10 = vcmask 523264  }
 0x1c4   :  { %v4046_v51 = vor.u32 %v5327_v44, %v4043_v46 }
 0x1c5   :  { %1128 = vmatpush.bf16.msra.mxu2 %v3886_v49 }
 0x1c6   :  { %1152 = vmatpush.bf16.msra.mxu1 %v4046_v51 }
 0x1c8   :  { %v582_v5 = vld [vmem:[#allocation3 + $0x8] sm:$0xff] }
 0x1c9   :  { %v562_v9 = vpop.permute.xlu0 %561  ;;  %v509_v10 = vpop.permute.xlu1 %508  ;;  %v6482_v11 = vpack.c.bf16 %v587_v62, %v582_v5  ;;  %v3878_v62 = vor.u32 %v5285_v55, %v3875_v57  ;;  %v5301_v5 = vld [vmem:[%s7672_s4 + $0x104] sm:$0xf] }
 0x1ca   :  { %v567_v16 = vsel %vm488_vm11, %v6391_v22, %v562_v9  ;;  %v510_v17 = vsel %vm103_vm0, %v6322_v54, %v509_v10  ;;  %v6504_v23 = vpop.permute.xlu2 %463  ;;  %v5335_v54 = vld [vmem:[%s7672_s4 + $0x214] sm:$0xf]  ;;  %vm467_vm0 = vcmask 261120   ;;  %1153 = vmatpush.bf16.msra.mxu1 %v4038_v63 }
 0x1cb   :  { %576 = vst.msk [vmem:[#allocation3 + $0x20] sm:$0xc0] %vm575_vm12, %v567_v16  ;;  %1060 = vmatmul.bf16.vlgmr.msra.gmra.mxu3 %v6482_v11  ;;  %v4078_v41 = vor.u32 %v5335_v54, %v4075_v27  ;;  %1129 = vmatpush.bf16.msra.mxu2 %v3878_v62  ;;  %v4022_v16 = vor.u32 %v5321_v12, %v4019_v13  ;;  %vm577_vm12 = vcmask 1043840  }
 0x1cc   :  { %516 = vst.msk [vmem:[#allocation3 + $0x10] sm:$0xc0] %vm515_vm13, %v510_v17  ;;  %1168 = vmatpush.bf16.msra.mxu3 %v4094_v6  ;;  %v3939_v6 = vld [vmem:[%s7672_s4 + $0x108] sm:$0xf0]  ;;  %vm1185_vm13 = vcmask 1040384  }
 0x1cd   :  { %520 = vst.msk [vmem:[#allocation3 + $0x38] sm:$0xf] %vm519_vm14, %v510_v17  ;;  %v3942_v15 = vor.u32 %v5301_v5, %v3939_v6  ;;  %v5319_v17 = vld [vmem:[%s7672_s4 + $0x194] sm:$0xf] }
 0x1ce   :  { %472 = vst.msk [vmem:[#allocation3 + $0x10] sm:$0x3f] %vm471_vm15, %v6504_v23  ;;  %1154 = vmatpush.bf16.msra.mxu1 %v4030_v8 }
 0x1cf   :  { %1143 = vmatpush.bf16.msra.mxu0 %v3942_v15 }
 0x1d0   :  { %1169 = vmatpush.bf16.msra.mxu3 %v4086_v26 }
 0x1d1   :  { %v485_v47 = vpop.permute.xlu0 %484  ;;  %v487_v48 = vpop.permute.xlu1 %486 }
 0x1d2   :  { %v489_v56 = vsel %vm488_vm11, %v485_v47, %v487_v48  ;;  %1155 = vmatpush.bf16.msra.mxu1 %v4022_v16  ;;  %v533_v19 = vpop.permute.xlu2 %532 }
 0x1d3   :  { %495 = vst.msk [vmem:[#allocation3 + $0x20] sm:$0x3f] %vm494_vm1, %v489_v56 }
 0x1d4   :  { %1170 = vmatpush.bf16.msra.mxu3 %v4078_v41 }
 0x1d8   :  { %1171 = vmatpush.bf16.msra.mxu3 %v4070_v61 }
 0x1d9   :  { %v466_v7 = vpop.permute.xlu0 %465 }
 0x1da   :  { %v468_v9 = vsel %vm467_vm0, %v6504_v23, %v466_v7  ;;  %v564_v10 = vpop.permute.xlu1 %563  ;;  %v4003_v23 = vld [vmem:[%s7672_s4 + $0x188] sm:$0xf0]  ;;  %v585_v24 = vld [vmem:[#allocation3 + $0x20] sm:$0xff] }
 0x1db   :  { %474 = vst.msk [vmem:[#allocation3 + $0x18] sm:$0x3f] %vm473_vm2, %v468_v9  ;;  %v568_v14 = vsel %vm488_vm11, %v564_v10, %v6433_v45  ;;  %1116 = vmatmul.bf16.vlgmr.msrb.gmra.mxu3 %v6203_v50  ;;  %v4014_v50 = vor.u32 %v5319_v17, %v4011_v18  ;;  %v4006_v27 = vor.u32 %v5317_v21, %v4003_v23  ;;  %vm550_vm11 = vcmask 388096  }
 0x1dc   :  { %493 = vst.msk [vmem:[#allocation3 + $0x18] sm:$0x3f] %vm492_vm3, %v485_v47  ;;  %vm2468_vm2 = vcmask 1043456   ;;  %vm2464_vm3 = vcmask 64512  }
 0x1dd   :  { %580 = vst.msk [vmem:[#allocation3 + $0x48] sm:$0xf] %vm579_vm4, %v568_v14  ;;  %1156 = vmatpush.bf16.msra.mxu1 %v4014_v50  ;;  %v1188_v14 = vlaneseq }
 0x1df   :  { %vm6630_vm14 = vcmp.lt.s32.totalorder %v1188_v14, 192  ;;  %vm1202_vm15 = vcmp.ge.s32.totalorder %v1188_v14, 64  ;;  %vm1203_vm1 = vcmp.lt.s32.totalorder %v1188_v14, 256  ;;  %v5350_v14 = vld [vmem:[%s7674_s6 + $0x44] sm:$0xf0] }
 0x1e1   :  { %v535_v45 = vpop.permute.xlu0 %534  ;;  %1157 = vmatpush.bf16.msra.mxu1 %v4006_v27 }
 0x1e2   :  { %549 = vst.msk [vmem:[#allocation3 + $0x38] sm:$0xf] %vm548_vm6, %v535_v45  ;;  %v531_v20 = vpop.permute.xlu1 %530 }
 0x1e3   :  { %v538_v54 = vsel %vm467_vm0, %v531_v20, %v533_v19  ;;  %545 = vst.msk [vmem:[#allocation3 + $0x10] sm:$0xc0] %vm544_vm7, %v531_v20  ;;  %v5398_v19 = vld [vmem:[%s7674_s6 + $0x1c4] sm:$0xf0] }
 0x1e4   :  { %547 = vst.msk [vmem:[#allocation3 + $0x18] sm:$0xc0] %vm546_vm8, %v538_v54  ;;  %v590_v25 = vld [vmem:[#allocation3 + $0x48] sm:$0xf]  ;;  %v1047_v35 = vpop.f32.mrf.mxu2 }
 0x1e5   :  { %574 = vst.msk [vmem:[#allocation3 + $0x18] sm:$0xc0] %vm573_vm9, %v6391_v22  ;;  %v595_v26 = vpack.c.bf16 %v590_v25, %v585_v24  ;;  %v1048_v43 = vadd.f32 %v1047_v35, %v670_v42  ;;  %v5347_v35 = vld [vmem:[%s7674_s6 + $0x34] sm:$0xf] }
 0x1e7   :  { %4095 = vmatmul.msk.bf16.vlgmr.msrb.gmra.mxu2 %vm1034_vm10, %v595_v26 }
 0x1e9   :  { %v588_v28 = vld [vmem:[#allocation3 + $0x38] sm:$0xf] }
 0x1ea   :  { %v537_v29 = vpop.permute.xlu1 %536  ;;  %v583_v30 = vld [vmem:[#allocation3 + $0x10] sm:$0xff] }
 0x1eb   :  { %v539_v31 = vsel %vm467_vm0, %v535_v45, %v537_v29  ;;  %4096 = vmatmul.msk.bf16.vlgmr.msra.gmra.mxu3 %vm1034_vm10, %v595_v26  ;;  %v593_v32 = vpack.c.bf16 %v588_v28, %v583_v30  ;;  %vm6652_vm0 = vmand %vm1202_vm15, %vm1203_vm1 }
 0x1ec   :  { %551 = vst.msk [vmem:[#allocation3 + $0x40] sm:$0xf] %vm550_vm11, %v539_v31  ;;  %v584_v22 = vld [vmem:[#allocation3 + $0x18] sm:$0xff]  ;;  %v1049_v37 = vpop.f32.mrf.mxu2 }
 0x1ed   :  { %578 = vst.msk [vmem:[#allocation3 + $0x40] sm:$0xf] %vm577_vm12, %v564_v10  ;;  %1074 = vmatmul.bf16.vlgmr.msrb.gmra.mxu0 %v593_v32  ;;  %v1050_v2 = vadd.f32 %v1049_v37, %v670_v42  ;;  %v5372_v42 = vld [vmem:[%s7674_s6 + $0xf4] sm:$0xf0] }
 0x1f4   :  { %v589_v33 = vld [vmem:[#allocation3 + $0x40] sm:$0xf] }
 0x1f5   :  { %v594_v34 = vpack.c.bf16 %v589_v33, %v584_v22 }
 0x1f7   :  { %1130 = vmatmul.bf16.vlgmr.msra.gmra.mxu2 %v6482_v11  ;;  %1088 = vmatmul.bf16.vlgmr.msrb.gmra.mxu1 %v594_v34 }
 0x1fd   :  { %1144 = vmatmul.bf16.vlgmr.msra.gmra.mxu0 %v593_v32 }
 0x207   :  { %1158 = vmatmul.bf16.vlgmr.msra.gmra.mxu1 %v594_v34 }
 0x24e   :  { %v1061_v36 = vpop.f32.mrf.mxu3 }
 0x24f   :  { %v1062_v46 = vadd.f32 %v1061_v36, %v1048_v43  ;;  %v4283_v43 = vld [vmem:[%s7674_s6 + $0x170] sm:$0xf] }
 0x256   :  { %v1063_v38 = vpop.f32.mrf.mxu3 }
 0x257   :  { %v1064_v5 = vadd.f32 %v1063_v38, %v1050_v2  ;;  %v4155_v38 = vld [vmem:[%s7674_s6 + $0x70] sm:$0xf] }
 0x258   :  { %v4203_v2 = vld [vmem:[%s7674_s6 + $0xd0] sm:$0xf] }
 0x25e   :  { %v1117_v44 = vpop.f32.mrf.mxu3 }
 0x25f   :  { %v1118_v58 = vadd.f32 %v1117_v44, %v671_v53  ;;  %v5388_v44 = vld [vmem:[%s7674_s6 + $0x174] sm:$0xf0] }
 0x266   :  { %v1119_v55 = vpop.f32.mrf.mxu3 }
 0x267   :  { %v1120_v3 = vadd.f32 %v1119_v55, %v671_v53  ;;  %v4211_v53 = vld [vmem:[%s7674_s6 + $0xe0] sm:$0xf]  ;;  %v5370_v55 = vld [vmem:[%s7674_s6 + $0xe4] sm:$0xf0] }
 0x26a   :  { %v1103_v40 = vpop.f32.mrf.mxu2  ;;  %v1075_v41 = vpop.f32.mrf.mxu0 }
 0x26b   :  { %v1076_v48 = vadd.f32 %v1075_v41, %v1062_v46  ;;  %v4156_v41 = vor.u32 %v5356_v39, %v4155_v38  ;;  %v5362_v38 = vld [vmem:[%s7674_s6 + $0xa4] sm:$0xf0]  ;;  %v4243_v39 = vld [vmem:[%s7674_s6 + $0x120] sm:$0xf] }
 0x26d   :  { %2204 = vmatpush.bf16.msrb.mxu2 %v4156_v41  ;;  %v4307_v41 = vld [vmem:[%s7674_s6 + $0x1a0] sm:$0xf] }
 0x26e   :  { %v1173_v62 = vpop.f32.mrf.mxu3 }
 0x272   :  { %v1105_v47 = vpop.f32.mrf.mxu2  ;;  %v1077_v11 = vpop.f32.mrf.mxu0 }
 0x273   :  { %v1078_v9 = vadd.f32 %v1077_v11, %v1064_v5  ;;  %v5404_v11 = vld [vmem:[%s7674_s6 + $0x1f4] sm:$0xf0]  ;;  %v4267_v5 = vld [vmem:[%s7674_s6 + $0x150] sm:$0xf] }
 0x274   :  { %v1089_v49 = vpop.f32.mrf.mxu1 }
 0x275   :  { %v1090_v51 = vadd.f32 %v1089_v49, %v1076_v48  ;;  %v4347_v48 = vld [vmem:[%s7674_s6 + $0x1f0] sm:$0xf]  ;;  %v4147_v49 = vld [vmem:[%s7674_s6 + $0x60] sm:$0xf] }
 0x276   :  { %v1175_v16 = vpop.f32.mrf.mxu3 }
 0x277   :  { %v1104_v52 = vadd.f32 %v1103_v40, %v1090_v51  ;;  %v4219_v40 = vld [vmem:[%s7674_s6 + $0xf0] sm:$0xf]  ;;  %v4348_v51 = vor.u32 %v5404_v11, %v4347_v48  ;;  %v5344_v48 = vld [vmem:[%s7674_s6 + $0x14] sm:$0xf0] }
 0x278   :  { %v4220_v46 = vor.u32 %v5372_v42, %v4219_v40  ;;  %v5378_v40 = vld [vmem:[%s7674_s6 + $0x124] sm:$0xf0]  ;;  %v4171_v11 = vld [vmem:[%s7674_s6 + $0x90] sm:$0xf] }
 0x279   :  { %5655 = vtanh.f32 %v1104_v52  ;;  %v5354_v52 = vld [vmem:[%s7674_s6 + $0x64] sm:$0xf0]  ;;  %2243 = vmatpush.bf16.msrb.mxu1 %v4348_v51  ;;  %v5360_v51 = vld [vmem:[%s7674_s6 + $0x94] sm:$0xf0] }
 0x27a   :  { %v1131_v56 = vpop.f32.mrf.mxu2  ;;  %v1145_v59 = vpop.f32.mrf.mxu0  ;;  %2217 = vmatpush.bf16.msrb.mxu3 %v4220_v46  ;;  %v5394_v42 = vld [vmem:[%s7674_s6 + $0x1a4] sm:$0xf0]  ;;  %v4244_v46 = vor.u32 %v5378_v40, %v4243_v39  ;;  %v5416_v39 = vld [vmem:[%s7674_s6 + $0x254] sm:$0xf0]  ;;  %v4459_v40 = vld [vmem:[%s7674_s6 + $0x2d0] sm:$0xf] }
 0x27b   :  { %v1132_v61 = vadd.f32 %v1131_v56, %v1118_v58  ;;  %v4148_v56 = vor.u32 %v5354_v52, %v4147_v49  ;;  %v4275_v58 = vld [vmem:[%s7674_s6 + $0x160] sm:$0xf]  ;;  %v4308_v49 = vor.u32 %v5394_v42, %v4307_v41  ;;  %v4235_v52 = vld [vmem:[%s7674_s6 + $0x110] sm:$0xf]  ;;  %v5432_v42 = vld [vmem:[%s7674_s6 + $0x2d4] sm:$0xf0] }
 0x27c   :  { %v1091_v57 = vpop.f32.mrf.mxu1 }
 0x27d   :  { %v1146_v63 = vadd.f32 %v1145_v59, %v1132_v61  ;;  %v1092_v10 = vadd.f32 %v1091_v57, %v1078_v9  ;;  %v4212_v57 = vor.u32 %v5370_v55, %v4211_v53  ;;  %v5386_v59 = vld [vmem:[%s7674_s6 + $0x164] sm:$0xf0]  ;;  %2205 = vmatpush.bf16.msrb.mxu2 %v4148_v56  ;;  %v4331_v9 = vld [vmem:[%s7674_s6 + $0x1d0] sm:$0xf]  ;;  %v5376_v53 = vld [vmem:[%s7674_s6 + $0x114] sm:$0xf0] }
 0x27e   :  { %v4276_v61 = vor.u32 %v5386_v59, %v4275_v58  ;;  %v4299_v55 = vld [vmem:[%s7674_s6 + $0x190] sm:$0xf]  ;;  %v5392_v56 = vld [vmem:[%s7674_s6 + $0x194] sm:$0xf0]  ;;  %v4099_v58 = vld [vmem:[%s7674_s6] sm:$0xf] }
 0x27f   :  { %v5656_v60 = vpop.eup %5655  ;;  %v1106_v18 = vadd.f32 %v1105_v47, %v1092_v10  ;;  %v4284_v47 = vor.u32 %v5388_v44, %v4283_v43  ;;  %2218 = vmatpush.bf16.msrb.mxu3 %v4212_v57  ;;  %v5400_v10 = vld [vmem:[%s7674_s6 + $0x1d4] sm:$0xf0]  ;;  %v5342_v59 = vld [vmem:[%s7674_s6 + $0x4] sm:$0xf0] }
 0x280   :  { %1193 = vst [vmem:[#allocation1] sm:$0xff] %v5656_v60 }
 0x281   :  { %2230 = vmatpush.bf16.msrb.mxu0 %v4284_v47  ;;  %v4107_v47 = vld [vmem:[%s7674_s6 + $0x10] sm:$0xf] }
 0x282   :  { %v1133_v0 = vpop.f32.mrf.mxu2  ;;  %v1147_v8 = vpop.f32.mrf.mxu0  ;;  %v4108_v57 = vor.u32 %v5344_v48, %v4107_v47  ;;  %v4587_v48 = vld [vmem:[%s7674_s6 + $0x3d0] sm:$0xf] }
 0x283   :  { %v1134_v6 = vadd.f32 %v1133_v0, %v1120_v3  ;;  %v4139_v0 = vld [vmem:[%s7674_s6 + $0x50] sm:$0xf] }
 0x284   :  { %v1159_v1 = vpop.f32.mrf.mxu1 }
 0x285   :  { %v1160_v4 = vadd.f32 %v1159_v1, %v1146_v63  ;;  %v1148_v12 = vadd.f32 %v1147_v8, %v1134_v6  ;;  %v5352_v1 = vld [vmem:[%s7674_s6 + $0x54] sm:$0xf0]  ;;  %2231 = vmatpush.bf16.msrb.mxu0 %v4276_v61  ;;  %v4236_v61 = vor.u32 %v5376_v53, %v4235_v52  ;;  %v5414_v52 = vld [vmem:[%s7674_s6 + $0x244] sm:$0xf0]  ;;  %v4451_v53 = vld [vmem:[%s7674_s6 + $0x2c0] sm:$0xf] }
 0x286   :  { %v4140_v3 = vor.u32 %v5352_v1, %v4139_v0  ;;  %v5384_v6 = vld [vmem:[%s7674_s6 + $0x154] sm:$0xf0]  ;;  %v4227_v0 = vld [vmem:[%s7674_s6 + $0x100] sm:$0xf]  ;;  %v4300_v1 = vor.u32 %v5392_v56, %v4299_v55  ;;  %v5430_v55 = vld [vmem:[%s7674_s6 + $0x2c4] sm:$0xf0] }
 0x287   :  { %v1174_v7 = vadd.f32 %v1173_v62, %v1160_v4  ;;  %v5402_v62 = vld [vmem:[%s7674_s6 + $0x1e4] sm:$0xf0]  ;;  %v5368_v4 = vld [vmem:[%s7674_s6 + $0xd4] sm:$0xf0]  ;;  %v4268_v8 = vor.u32 %v5384_v6, %v4267_v5  ;;  %v4411_v5 = vld [vmem:[%s7674_s6 + $0x270] sm:$0xf] }
 0x288   :  { %2206 = vmatpush.bf16.msrb.mxu2 %v4140_v3  ;;  %v4291_v3 = vld [vmem:[%s7674_s6 + $0x180] sm:$0xf]  ;;  %v5420_v6 = vld [vmem:[%s7674_s6 + $0x274] sm:$0xf0] }
 0x289   :  { %5657 = vtanh.f32 %v1174_v7  ;;  %v4204_v7 = vor.u32 %v5368_v4, %v4203_v2  ;;  %2232 = vmatpush.bf16.msrb.mxu0 %v4268_v8  ;;  %v5374_v2 = vld [vmem:[%s7674_s6 + $0x104] sm:$0xf0]  ;;  %v4100_v8 = vor.u32 %v5342_v59, %v4099_v58  ;;  %v4515_v58 = vld [vmem:[%s7674_s6 + $0x340] sm:$0xf] }
 0x28a   :  { %v5390_v4 = vld [vmem:[%s7674_s6 + $0x184] sm:$0xf0] }
 0x28b   :  { %2219 = vmatpush.bf16.msrb.mxu3 %v4204_v7  ;;  %v4475_v7 = vld [vmem:[%s7674_s6 + $0x2f0] sm:$0xf]  ;;  %v5446_v59 = vld [vmem:[%s7674_s6 + $0x344] sm:$0xf0] }
 0x28c   :  { %v1161_v13 = vpop.f32.mrf.mxu1 }
 0x28d   :  { %v1162_v15 = vadd.f32 %v1161_v13, %v1148_v12  ;;  %v4131_v12 = vld [vmem:[%s7674_s6 + $0x40] sm:$0xf]  ;;  %v4332_v13 = vor.u32 %v5400_v10, %v4331_v9  ;;  %v5436_v9 = vld [vmem:[%s7674_s6 + $0x2f4] sm:$0xf0]  ;;  %v4539_v10 = vld [vmem:[%s7674_s6 + $0x370] sm:$0xf] }
 0x28f   :  { %v5658_v17 = vpop.eup %5657  ;;  %v1176_v45 = vadd.f32 %v1175_v16, %v1162_v15  ;;  %v4195_v15 = vld [vmem:[%s7674_s6 + $0xc0] sm:$0xf]  ;;  %v5366_v16 = vld [vmem:[%s7674_s6 + $0xc4] sm:$0xf0] }
 0x290   :  { %1194 = vst [vmem:[#allocation1 + $0x9] sm:$0xff] %v5658_v17  ;;  %v1184_v50 = vrot.slane %v5658_v17, 7 }
 0x291   :  { %5659 = vtanh.f32 %v1176_v45  ;;  %v4323_v45 = vld [vmem:[%s7674_s6 + $0x1c0] sm:$0xf] }
 0x292   :  { %v1186_v20 = vsel %vm1185_vm13, %v5656_v60, %v1184_v50  ;;  %5661 = vtanh.f32 %v1106_v18  ;;  %v5382_v18 = vld [vmem:[%s7674_s6 + $0x144] sm:$0xf0]  ;;  %v4132_v50 = vor.u32 %v5350_v14, %v4131_v12  ;;  %v5452_v12 = vld [vmem:[%s7674_s6 + $0x374] sm:$0xf0] }
 0x293   :  { %1192 = vst.msk [vmem:[#allocation4] ss:$2 sm:$0x3] %vm6630_vm14, %v1186_v20  ;;  %v4196_v20 = vor.u32 %v5366_v16, %v4195_v15  ;;  %v4228_v15 = vor.u32 %v5374_v2, %v4227_v0  ;;  %v4603_v16 = vld [vmem:[%s7674_s6 + $0x3f0] sm:$0xf] }
 0x294   :  { %2207 = vmatpush.bf16.msrb.mxu2 %v4132_v50  ;;  %v4412_v50 = vor.u32 %v5420_v6, %v4411_v5  ;;  %v4379_v0 = vld [vmem:[%s7674_s6 + $0x230] sm:$0xf]  ;;  %v5444_v6 = vld [vmem:[%s7674_s6 + $0x334] sm:$0xf0] }
 0x295   :  { %2220 = vmatpush.bf16.msrb.mxu3 %v4196_v20  ;;  %v4476_v20 = vor.u32 %v5436_v9, %v4475_v7  ;;  %v4443_v2 = vld [vmem:[%s7674_s6 + $0x2b0] sm:$0xf] }
 0x296   :  { %v4507_v5 = vld [vmem:[%s7674_s6 + $0x330] sm:$0xf] }
 0x297   :  { %v5660_v21 = vpop.eup %5659  ;;  %v1196_v23 = vld [vmem:[#allocation1 + $0x1] ss:$9 sm:$0xff] }
 0x298   :  { %1207 = vst [vmem:[#allocation1] sm:$0xff] %v5656_v60  ;;  %1197 = vrot.lane.b32.xlu2 %v1196_v23, %s5764_s22  ;;  %v1263_v54 = vrot.slane %v5660_v21, 7  ;;  %v5662_v24 = vpop.eup %5661  ;;  %v4123_v23 = vld [vmem:[%s7674_s6 + $0x30] sm:$0xf] }
 0x299   :  { %1208 = vst [vmem:[#allocation1 + $0x9] sm:$0xff] %v5658_v17  ;;  %v4571_v9 = vld [vmem:[%s7674_s6 + $0x3b0] sm:$0xf] }
 0x29a   :  { %v1264_v25 = vsel %vm1185_vm13, %v5662_v24, %v1263_v54  ;;  %v5348_v54 = vld [vmem:[%s7674_s6 + $0x34] sm:$0xf0] }
 0x29b   :  { %1267 = vst.msk [vmem:[#allocation4 + $0x7] ss:$2 sm:$0x3] %vm6630_vm14, %v1264_v25  ;;  %v4324_v25 = vor.u32 %v5398_v19, %v4323_v45  ;;  %v4292_v45 = vor.u32 %v5390_v4, %v4291_v3  ;;  %v4403_v19 = vld [vmem:[%s7674_s6 + $0x260] sm:$0xf] }
 0x29c   :  { %v5428_v4 = vld [vmem:[%s7674_s6 + $0x2b4] sm:$0xf0] }
 0x29d   :  { %v4444_v7 = vor.u32 %v5428_v4, %v4443_v2  ;;  %v4659_v2 = vld [vmem:[%s7674_s6 + $0x460] sm:$0xf] }
 0x2a0   :  { %v1210_v26 = vld [vmem:[#allocation1 + $0x2] ss:$9 sm:$0xff] }
 0x2a1   :  { %1215 = vst [vmem:[#allocation1 + $0x9] sm:$0xff] %v5658_v17 }
 0x2a2   :  { %1214 = vst [vmem:[#allocation1] sm:$0xff] %v5656_v60 }
 0x2a3   :  { %1213 = vst.msk [vmem:[#allocation4 + $0x6] ss:$2 sm:$0x3] %vm6630_vm14, %v1210_v26  ;;  %v5364_v26 = vld [vmem:[%s7674_s6 + $0xb4] sm:$0xf0] }
 0x2a9   :  { %v1217_v27 = vld [vmem:[#allocation1 + $0x3] ss:$9 sm:$0xff] }
 0x2aa   :  { %1218 = vrot.lane.b32.xlu1 %v1217_v27, %s5764_s22  ;;  %1225 = vst [vmem:[#allocation1] sm:$0xff] %v5656_v60  ;;  %v4251_v27 = vld [vmem:[%s7674_s6 + $0x130] sm:$0xf] }
 0x2ab   :  { %1226 = vst [vmem:[#allocation1 + $0x9] sm:$0xff] %v5658_v17 }
 0x2b2   :  { %v1228_v28 = vld [vmem:[#allocation1 + $0x4] ss:$9 sm:$0xff] }
 0x2b3   :  { %1232 = vst [vmem:[#allocation1] sm:$0xff] %v5656_v60 }
 0x2b4   :  { %1233 = vst [vmem:[#allocation1 + $0x9] sm:$0xff] %v5658_v17 }
 0x2b5   :  { %1231 = vst.msk [vmem:[#allocation4 + $0xc] ss:$2 sm:$0x3] %vm6630_vm14, %v1228_v28  ;;  %v5380_v28 = vld [vmem:[%s7674_s6 + $0x134] sm:$0xf0] }
 0x2bb   :  { %v1235_v29 = vld [vmem:[#allocation1 + $0x5] ss:$9 sm:$0xff] }
 0x2bc   :  { %1236 = vrot.lane.b32.xlu2 %v1235_v29, %s5764_s22  ;;  %1243 = vst [vmem:[#allocation1] sm:$0xff] %v5656_v60  ;;  %v4315_v29 = vld [vmem:[%s7674_s6 + $0x1b0] sm:$0xf] }
 0x2bd   :  { %1244 = vst [vmem:[#allocation1 + $0x9] sm:$0xff] %v5658_v17 }
 0x2c4   :  { %v1246_v30 = vld [vmem:[#allocation1 + $0x6] ss:$9 sm:$0xff] }
 0x2c5   :  { %1250 = vst [vmem:[#allocation1] sm:$0xff] %v5656_v60  ;;  %v4339_v60 = vld [vmem:[%s7674_s6 + $0x1e0] sm:$0xf] }
 0x2c6   :  { %1251 = vst [vmem:[#allocation1 + $0x9] sm:$0xff] %v5658_v17  ;;  %v4340_v63 = vor.u32 %v5402_v62, %v4339_v60  ;;  %v4259_v17 = vld [vmem:[%s7674_s6 + $0x140] sm:$0xf]  ;;  %v4172_v60 = vor.u32 %v5360_v51, %v4171_v11  ;;  %v5464_v11 = vld [vmem:[%s7674_s6 + $0x3d4] sm:$0xf0] }
 0x2c7   :  { %1249 = vst.msk [vmem:[#allocation4 + $0x1] ss:$2 sm:$0x3] %vm6630_vm14, %v1246_v30  ;;  %v5396_v30 = vld [vmem:[%s7674_s6 + $0x1b4] sm:$0xf0]  ;;  %v4588_v51 = vor.u32 %v5464_v11, %v4587_v48 }
 0x2c8   :  { %2244 = vmatpush.bf16.msrb.mxu1 %v4340_v63  ;;  %v4163_v62 = vld [vmem:[%s7674_s6 + $0x80] sm:$0xf]  ;;  %v5358_v63 = vld [vmem:[%s7674_s6 + $0x84] sm:$0xf0] }
 0x2c9   :  { %v4164_v14 = vor.u32 %v5358_v63, %v4163_v62  ;;  %v5462_v62 = vld [vmem:[%s7674_s6 + $0x3c4] sm:$0xf0] }
 0x2cc   :  { %2245 = vmatpush.bf16.msrb.mxu1 %v4332_v13 }
 0x2cd   :  { %v1253_v31 = vld [vmem:[#allocation1 + $0x7] ss:$9 sm:$0xff] }
 0x2ce   :  { %1254 = vrot.lane.b32.xlu0 %v1253_v31, %s5764_s22  ;;  %1268 = vst [vmem:[#allocation1] sm:$0xff] %v5662_v24  ;;  %v4124_v31 = vor.u32 %v5348_v54, %v4123_v23  ;;  %v5418_v23 = vld [vmem:[%s7674_s6 + $0x264] sm:$0xf0]  ;;  %v4467_v54 = vld [vmem:[%s7674_s6 + $0x2e0] sm:$0xf] }
 0x2cf   :  { %1269 = vst [vmem:[#allocation1 + $0x9] sm:$0xff] %v5660_v21 }
 0x2d0   :  { %2246 = vmatpush.bf16.msrb.mxu1 %v4324_v25  ;;  %2208 = vmatpush.bf16.msrb.mxu2 %v4124_v31  ;;  %v4404_v31 = vor.u32 %v5418_v23, %v4403_v19  ;;  %v4363_v23 = vld [vmem:[%s7674_s6 + $0x210] sm:$0xf] }
 0x2d6   :  { %v1271_v32 = vld [vmem:[#allocation1 + $0x1] ss:$9 sm:$0xff] }
 0x2d7   :  { %1272 = vrot.lane.b32.xlu0 %v1271_v32, %s5764_s22  ;;  %1279 = vst [vmem:[#allocation1] sm:$0xff] %v5662_v24 }
 0x2d8   :  { %1280 = vst [vmem:[#allocation1 + $0x9] sm:$0xff] %v5660_v21 }
 0x2df   :  { %v1282_v22 = vld [vmem:[#allocation1 + $0x2] ss:$9 sm:$0xff] }
 0x2e0   :  { %1286 = vst [vmem:[#allocation1] sm:$0xff] %v5662_v24  ;;  %v4187_v24 = vld [vmem:[%s7674_s6 + $0xb0] sm:$0xf] }
 0x2e1   :  { %1287 = vst [vmem:[#allocation1 + $0x9] sm:$0xff] %v5660_v21  ;;  %v4260_v21 = vor.u32 %v5382_v18, %v4259_v17  ;;  %v4188_v32 = vor.u32 %v5364_v26, %v4187_v24  ;;  %v5468_v17 = vld [vmem:[%s7674_s6 + $0x3f4] sm:$0xf0]  ;;  %v5434_v24 = vld [vmem:[%s7674_s6 + $0x2e4] sm:$0xf0] }
 0x2e2   :  { %1285 = vst.msk [vmem:[#allocation4 + $0xd] ss:$2 sm:$0x3] %vm6630_vm14, %v1282_v22  ;;  %v4252_v22 = vor.u32 %v5380_v28, %v4251_v27  ;;  %v4604_v26 = vor.u32 %v5468_v17, %v4603_v16  ;;  %v4531_v27 = vld [vmem:[%s7674_s6 + $0x360] sm:$0xf] }
 0x2e3   :  { %2233 = vmatpush.bf16.msrb.mxu0 %v4260_v21  ;;  %2221 = vmatpush.bf16.msrb.mxu3 %v4188_v32  ;;  %v4540_v21 = vor.u32 %v5452_v12, %v4539_v10  ;;  %v5450_v28 = vld [vmem:[%s7674_s6 + $0x364] sm:$0xf0]  ;;  %v5460_v10 = vld [vmem:[%s7674_s6 + $0x3b4] sm:$0xf0] }
 0x2e4   :  { %v4572_v12 = vor.u32 %v5460_v10, %v4571_v9  ;;  %v5426_v17 = vld [vmem:[%s7674_s6 + $0x2a4] sm:$0xf0] }
 0x2e7   :  { %2234 = vmatpush.bf16.msrb.mxu0 %v4252_v22  ;;  %v4468_v22 = vor.u32 %v5434_v24, %v4467_v54  ;;  %v5408_v24 = vld [vmem:[%s7674_s6 + $0x214] sm:$0xf0] }
 0x2e8   :  { %v1289_v33 = vld [vmem:[#allocation1 + $0x3] ss:$9 sm:$0xff] }
 0x2e9   :  { %1290 = vrot.lane.b32.xlu1 %v1289_v33, %s5764_s22  ;;  %v4115_v33 = vld [vmem:[%s7674_s6 + $0x20] sm:$0xf] }
 0x2eb   :  { %2235 = vmatpush.bf16.msrb.mxu0 %v4244_v46  ;;  %v4460_v46 = vor.u32 %v5432_v42, %v4459_v40  ;;  %v5438_v40 = vld [vmem:[%s7674_s6 + $0x304] sm:$0xf0] }
 0x2ec   :  { %v5454_v42 = vld [vmem:[%s7674_s6 + $0x384] sm:$0xf0] }
 0x2ef   :  { %2236 = vmatpush.bf16.msrb.mxu0 %v4236_v61  ;;  %v4516_v61 = vor.u32 %v5446_v59, %v4515_v58  ;;  %v5355_v58 = vld [vmem:[%s7674_s6 + $0x74] sm:$0xf]  ;;  %v4157_v59 = vld [vmem:[%s7674_s6 + $0x78] sm:$0xf0] }
 0x2f0   :  { %v4160_v9 = vor.u32 %v5355_v58, %v4157_v59  ;;  %v4253_v58 = vld [vmem:[%s7674_s6 + $0x138] sm:$0xf0]  ;;  %v4627_v59 = vld [vmem:[%s7674_s6 + $0x420] sm:$0xf] }
 0x2f2   :  { %v1198_v34 = vpop.permute.xlu2 %1197 }
 0x2f3   :  { %v1199_v36 = vrot.slane %v1198_v34, 7  ;;  %2237 = vmatpush.bf16.msrb.mxu0 %v4228_v15  ;;  %v4435_v15 = vld [vmem:[%s7674_s6 + $0x2a0] sm:$0xf] }
 0x2f5   :  { %v1200_v37 = vsel %vm1034_vm10, %v1199_v36, %v1198_v34  ;;  %v5346_v34 = vld [vmem:[%s7674_s6 + $0x24] sm:$0xf0]  ;;  %v4179_v36 = vld [vmem:[%s7674_s6 + $0xa0] sm:$0xf] }
 0x2f6   :  { %1206 = vst.msk [vmem:[#allocation4 + $0x2] ss:$2 sm:$0x3] %vm6652_vm0, %v1200_v37  ;;  %v4316_v37 = vor.u32 %v5396_v30, %v4315_v29  ;;  %v4116_v43 = vor.u32 %v5346_v34, %v4115_v33  ;;  %v4180_v44 = vor.u32 %v5362_v38, %v4179_v36  ;;  %v4595_v29 = vld [vmem:[%s7674_s6 + $0x3e0] sm:$0xf]  ;;  %v4532_v33 = vor.u32 %v5450_v28, %v4531_v27 }
 0x2f7   :  { %v5466_v30 = vld [vmem:[%s7674_s6 + $0x3e4] sm:$0xf0]  ;;  %2282 = vmatpush.bf16.msra.mxu0 %v4540_v21  ;;  %v4395_v38 = vld [vmem:[%s7674_s6 + $0x250] sm:$0xf]  ;;  %v4364_v27 = vor.u32 %v5408_v24, %v4363_v23  ;;  %v5480_v23 = vld [vmem:[%s7674_s6 + $0x454] sm:$0xf0] }
 0x2f8   :  { %2247 = vmatpush.bf16.msrb.mxu1 %v4316_v37  ;;  %2209 = vmatpush.bf16.msrb.mxu2 %v4116_v43  ;;  %v4596_v36 = vor.u32 %v5466_v30, %v4595_v29  ;;  %v4396_v41 = vor.u32 %v5416_v39, %v4395_v38  ;;  %v4523_v43 = vld [vmem:[%s7674_s6 + $0x350] sm:$0xf]  ;;  %v5458_v21 = vld [vmem:[%s7674_s6 + $0x3a4] sm:$0xf0]  ;;  %v5440_v29 = vld [vmem:[%s7674_s6 + $0x314] sm:$0xf0] }
 0x2f9   :  { %2222 = vmatpush.bf16.msrb.mxu3 %v4180_v44  ;;  %v5448_v44 = vld [vmem:[%s7674_s6 + $0x354] sm:$0xf0]  ;;  %v4491_v28 = vld [vmem:[%s7674_s6 + $0x310] sm:$0xf]  ;;  %v5422_v38 = vld [vmem:[%s7674_s6 + $0x284] sm:$0xf0] }
 0x2fa   :  { %v4524_v47 = vor.u32 %v5448_v44, %v4523_v43  ;;  %v4555_v30 = vld [vmem:[%s7674_s6 + $0x390] sm:$0xf]  ;;  %v4483_v39 = vld [vmem:[%s7674_s6 + $0x300] sm:$0xf] }
 0x2fb   :  { %2283 = vmatpush.bf16.msra.mxu0 %v4532_v33  ;;  %v4355_v33 = vld [vmem:[%s7674_s6 + $0x200] sm:$0xf] }
 0x2fc   :  { %2248 = vmatpush.bf16.msrb.mxu1 %v4308_v49  ;;  %2210 = vmatpush.bf16.msrb.mxu2 %v4108_v57  ;;  %v4387_v49 = vld [vmem:[%s7674_s6 + $0x240] sm:$0xf]  ;;  %v4452_v57 = vor.u32 %v5430_v55, %v4451_v53 }
 0x2fd   :  { %2223 = vmatpush.bf16.msrb.mxu3 %v4172_v60  ;;  %v4388_v56 = vor.u32 %v5414_v52, %v4387_v49  ;;  %v4579_v60 = vld [vmem:[%s7674_s6 + $0x3c0] sm:$0xf] }
 0x2fe   :  { %v4580_v63 = vor.u32 %v5462_v62, %v4579_v60  ;;  %v5371_v60 = vld [vmem:[%s7674_s6 + $0xf4] sm:$0xf] }
 0x2ff   :  { %2284 = vmatpush.bf16.msra.mxu0 %v4524_v47  ;;  %v5387_v62 = vld [vmem:[%s7674_s6 + $0x174] sm:$0xf] }
 0x300   :  { %2249 = vmatpush.bf16.msrb.mxu1 %v4300_v1  ;;  %2211 = vmatpush.bf16.msrb.mxu2 %v4100_v8  ;;  %v5412_v1 = vld [vmem:[%s7674_s6 + $0x234] sm:$0xf0]  ;;  %v4508_v8 = vor.u32 %v5444_v6, %v4507_v5 }
 0x301   :  { %2224 = vmatpush.bf16.msrb.mxu3 %v4164_v14  ;;  %v4380_v3 = vor.u32 %v5412_v1, %v4379_v0  ;;  %v5410_v14 = vld [vmem:[%s7674_s6 + $0x224] sm:$0xf0] }
 0x303   :  { %2285 = vmatpush.bf16.msra.mxu0 %v4516_v61  ;;  %v4221_v61 = vld [vmem:[%s7674_s6 + $0xf8] sm:$0xf0] }
 0x304   :  { %2250 = vmatpush.bf16.msrb.mxu1 %v4292_v45  ;;  %2256 = vmatpush.bf16.msra.mxu2 %v4412_v50  ;;  %v5442_v45 = vld [vmem:[%s7674_s6 + $0x324] sm:$0xf0]  ;;  %v4436_v50 = vor.u32 %v5426_v17, %v4435_v15  ;;  %v5353_v15 = vld [vmem:[%s7674_s6 + $0x64] sm:$0xf] }
 0x305   :  { %2269 = vmatpush.bf16.msra.mxu3 %v4476_v20  ;;  %v4563_v20 = vld [vmem:[%s7674_s6 + $0x3a0] sm:$0xf]  ;;  %v5369_v17 = vld [vmem:[%s7674_s6 + $0xe4] sm:$0xf] }
 0x306   :  { %v4564_v54 = vor.u32 %v5458_v21, %v4563_v20  ;;  %v4651_v21 = vld [vmem:[%s7674_s6 + $0x450] sm:$0xf] }
 0x307   :  { %2286 = vmatpush.bf16.msra.mxu0 %v4508_v8 }
 0x308   :  { %2295 = vmatpush.bf16.msra.mxu1 %v4604_v26  ;;  %2257 = vmatpush.bf16.msra.mxu2 %v4404_v31  ;;  %v5424_v26 = vld [vmem:[%s7674_s6 + $0x294] sm:$0xf0] }
 0x309   :  { %2270 = vmatpush.bf16.msra.mxu3 %v4468_v22  ;;  %v5456_v22 = vld [vmem:[%s7674_s6 + $0x394] sm:$0xf0] }
 0x30c   :  { %2296 = vmatpush.bf16.msra.mxu1 %v4596_v36  ;;  %2258 = vmatpush.bf16.msra.mxu2 %v4396_v41  ;;  %v4556_v36 = vor.u32 %v5456_v22, %v4555_v30  ;;  %v4547_v41 = vld [vmem:[%s7674_s6 + $0x380] sm:$0xf]  ;;  %v4269_v30 = vld [vmem:[%s7674_s6 + $0x158] sm:$0xf0]  ;;  %v4652_v22 = vor.u32 %v5480_v23, %v4651_v21  ;;  %v5375_v23 = vld [vmem:[%s7674_s6 + $0x114] sm:$0xf] }
 0x30d   :  { %2271 = vmatpush.bf16.msra.mxu3 %v4460_v46  ;;  %v4484_v46 = vor.u32 %v5438_v40, %v4483_v39  ;;  %v4548_v47 = vor.u32 %v5454_v42, %v4547_v41  ;;  %v5349_v39 = vld [vmem:[%s7674_s6 + $0x44] sm:$0xf]  ;;  %v4133_v40 = vld [vmem:[%s7674_s6 + $0x48] sm:$0xf0]  ;;  %v4173_v21 = vld [vmem:[%s7674_s6 + $0x98] sm:$0xf0] }
 0x30e   :  { %v5365_v41 = vld [vmem:[%s7674_s6 + $0xc4] sm:$0xf] }
 0x310   :  { %2297 = vmatpush.bf16.msra.mxu1 %v4588_v51  ;;  %2259 = vmatpush.bf16.msra.mxu2 %v4388_v56  ;;  %v4667_v56 = vld [vmem:[%s7674_s6 + $0x470] sm:$0xf] }
 0x311   :  { %2272 = vmatpush.bf16.msra.mxu3 %v4452_v57  ;;  %v5484_v57 = vld [vmem:[%s7674_s6 + $0x474] sm:$0xf0] }
 0x312   :  { %v4668_v8 = vor.u32 %v5484_v57, %v4667_v56  ;;  %v4189_v56 = vld [vmem:[%s7674_s6 + $0xb8] sm:$0xf0]  ;;  %v5379_v57 = vld [vmem:[%s7674_s6 + $0x134] sm:$0xf] }
 0x314   :  { %2298 = vmatpush.bf16.msra.mxu1 %v4580_v63  ;;  %2260 = vmatpush.bf16.msra.mxu2 %v4380_v3  ;;  %v4285_v63 = vld [vmem:[%s7674_s6 + $0x178] sm:$0xf0]  ;;  %v5482_v3 = vld [vmem:[%s7674_s6 + $0x464] sm:$0xf0] }
 0x315   :  { %2273 = vmatpush.bf16.msra.mxu3 %v4444_v7 }
 0x316   :  { %v1237_v13 = vpop.permute.xlu2 %1236 }
 0x317   :  { %v1238_v18 = vrot.slane %v1237_v13, 7 }
 0x318   :  { %2299 = vmatpush.bf16.msra.mxu1 %v4572_v12 }
 0x319   :  { %v1239_v25 = vsel %vm1034_vm10, %v1238_v18, %v1237_v13  ;;  %v4371_v13 = vld [vmem:[%s7674_s6 + $0x220] sm:$0xf]  ;;  %2274 = vmatpush.bf16.msra.mxu3 %v4436_v50  ;;  %v4277_v50 = vld [vmem:[%s7674_s6 + $0x168] sm:$0xf0] }
 0x31a   :  { %1242 = vst.msk [vmem:[#allocation4 + $0xe] ss:$2 sm:$0x3] %vm6652_vm0, %v1239_v25  ;;  %v4372_v16 = vor.u32 %v5410_v14, %v4371_v13  ;;  %v4499_v18 = vld [vmem:[%s7674_s6 + $0x320] sm:$0xf]  ;;  %v4224_v13 = vor.u32 %v5371_v60, %v4221_v61  ;;  %v4288_v14 = vor.u32 %v5387_v62, %v4285_v63 }
 0x31b   :  { %v4500_v19 = vor.u32 %v5442_v45, %v4499_v18  ;;  %v4427_v25 = vld [vmem:[%s7674_s6 + $0x290] sm:$0xf]  ;;  %v4213_v18 = vld [vmem:[%s7674_s6 + $0xe8] sm:$0xf0]  ;;  %v5385_v45 = vld [vmem:[%s7674_s6 + $0x164] sm:$0xf] }
 0x31c   :  { %v1219_v32 = vpop.permute.xlu1 %1218  ;;  %2261 = vmatpush.bf16.msra.mxu2 %v4372_v16  ;;  %v4428_v31 = vor.u32 %v5424_v26, %v4427_v25  ;;  %2300 = vmatpush.bf16.msra.mxu1 %v4564_v54  ;;  %v4149_v16 = vld [vmem:[%s7674_s6 + $0x68] sm:$0xf0]  ;;  %v4216_v54 = vor.u32 %v5369_v17, %v4213_v18  ;;  %v4280_v24 = vor.u32 %v5385_v45, %v4277_v50  ;;  %v5351_v25 = vld [vmem:[%s7674_s6 + $0x54] sm:$0xf]  ;;  %v4141_v26 = vld [vmem:[%s7674_s6 + $0x58] sm:$0xf0] }
 0x31d   :  { %v1220_v34 = vrot.slane %v1219_v32, 7  ;;  %2287 = vmatpush.bf16.msra.mxu0 %v4500_v19  ;;  %v4660_v19 = vor.u32 %v5482_v3, %v4659_v2  ;;  %v4152_v20 = vor.u32 %v5353_v15, %v4149_v16  ;;  %v5474_v62 = vld [vmem:[%s7674_s6 + $0x424] sm:$0xf0]  ;;  %v5345_v63 = vld [vmem:[%s7674_s6 + $0x24] sm:$0xf]  ;;  %v4256_v2 = vor.u32 %v5379_v57, %v4253_v58 }
 0x31e   :  { %2275 = vmatpush.bf16.msra.mxu3 %v4428_v31  ;;  %v5361_v3 = vld [vmem:[%s7674_s6 + $0xa4] sm:$0xf]  ;;  %v4619_v16 = vld [vmem:[%s7674_s6 + $0x410] sm:$0xf]  ;;  %v5472_v45 = vld [vmem:[%s7674_s6 + $0x414] sm:$0xf0] }
 0x31f   :  { %v1221_v37 = vsel %vm1034_vm10, %v1220_v34, %v1219_v32  ;;  %v4492_v32 = vor.u32 %v5440_v29, %v4491_v28  ;;  %v5406_v34 = vld [vmem:[%s7674_s6 + $0x204] sm:$0xf0]  ;;  %v4205_v28 = vld [vmem:[%s7674_s6 + $0xd8] sm:$0xf0]  ;;  %v5383_v29 = vld [vmem:[%s7674_s6 + $0x154] sm:$0xf] }
 0x320   :  { %1224 = vst.msk [vmem:[#allocation4 + $0x8] ss:$2 sm:$0x3] %vm6652_vm0, %v1221_v37  ;;  %v4419_v37 = vld [vmem:[%s7674_s6 + $0x280] sm:$0xf]  ;;  %2262 = vmatpush.bf16.msra.mxu2 %v4364_v27  ;;  %v4356_v43 = vor.u32 %v5406_v34, %v4355_v33  ;;  %2301 = vmatpush.bf16.msra.mxu1 %v4556_v36  ;;  %v4144_v33 = vor.u32 %v5351_v25, %v4141_v26 }
 0x321   :  { %2288 = vmatpush.bf16.msra.mxu0 %v4492_v32  ;;  %v4420_v44 = vor.u32 %v5422_v38, %v4419_v37  ;;  %v5367_v27 = vld [vmem:[%s7674_s6 + $0xd4] sm:$0xf]  ;;  %v4643_v34 = vld [vmem:[%s7674_s6 + $0x440] sm:$0xf]  ;;  %v5478_v36 = vld [vmem:[%s7674_s6 + $0x444] sm:$0xf0]  ;;  %v4272_v38 = vor.u32 %v5383_v29, %v4269_v30  ;;  %v4620_v26 = vor.u32 %v5472_v45, %v4619_v16 }
 0x322   :  { %v4208_v37 = vor.u32 %v5367_v27, %v4205_v28  ;;  %v5343_v50 = vld [vmem:[%s7674_s6 + $0x14] sm:$0xf]  ;;  %v5470_v25 = vld [vmem:[%s7674_s6 + $0x404] sm:$0xf0]  ;;  %v5341_v28 = vld [vmem:[%s7674_s6 + $0x4] sm:$0xf] }
 0x323   :  { %2276 = vmatpush.bf16.msra.mxu3 %v4420_v44  ;;  %v5381_v44 = vld [vmem:[%s7674_s6 + $0x144] sm:$0xf]  ;;  %v4101_v29 = vld [vmem:[%s7674_s6 + $0x8] sm:$0xf0]  ;;  %v5403_v30 = vld [vmem:[%s7674_s6 + $0x1f4] sm:$0xf] }
 0x324   :  { %2263 = vmatpush.bf16.msra.mxu2 %v4356_v43  ;;  %2302 = vmatpush.bf16.msra.mxu1 %v4548_v47  ;;  %v4197_v43 = vld [vmem:[%s7674_s6 + $0xc8] sm:$0xf0]  ;;  %v4644_v47 = vor.u32 %v5478_v36, %v4643_v34  ;;  %v5401_v57 = vld [vmem:[%s7674_s6 + $0x1e4] sm:$0xf] }
 0x325   :  { %2289 = vmatpush.bf16.msra.mxu0 %v4484_v46  ;;  %v4261_v46 = vld [vmem:[%s7674_s6 + $0x148] sm:$0xf0] }
 0x326   :  { %v4341_v58 = vld [vmem:[%s7674_s6 + $0x1e8] sm:$0xf0] }
 0x340   :  { %v1255_v48 = vpop.permute.xlu0 %1254 }
 0x341   :  { %v1256_v11 = vrot.slane %v1255_v48, 7 }
 0x343   :  { %v1257_v49 = vsel %vm1034_vm10, %v1256_v11, %v1255_v48  ;;  %v4136_v48 = vor.u32 %v5349_v39, %v4133_v40  ;;  %v4635_v11 = vld [vmem:[%s7674_s6 + $0x430] sm:$0xf]  ;;  %v5373_v39 = vld [vmem:[%s7674_s6 + $0x104] sm:$0xf] }
 0x344   :  { %1260 = vst.msk [vmem:[#allocation4 + $0x3] ss:$2 sm:$0x3] %vm6652_vm0, %v1257_v49  ;;  %v5476_v49 = vld [vmem:[%s7674_s6 + $0x434] sm:$0xf0] }
 0x345   :  { %v4636_v60 = vor.u32 %v5476_v49, %v4635_v11  ;;  %v4104_v11 = vor.u32 %v5341_v28, %v4101_v29  ;;  %v4229_v49 = vld [vmem:[%s7674_s6 + $0x108] sm:$0xf0]  ;;  %v5429_v29 = vld [vmem:[%s7674_s6 + $0x2c4] sm:$0xf] }
 0x349   :  { %v1273_v51 = vpop.permute.xlu0 %1272 }
 0x34a   :  { %v1274_v52 = vrot.slane %v1273_v51, 7 }
 0x34b   :  { %v1297_v53 = vld [vmem:[#allocation4] sm:$0xff] }
 0x34c   :  { %v1275_v55 = vsel %vm1034_vm10, %v1274_v52, %v1273_v51  ;;  %1303 = vst [vmem:[#allocation1] ss:$4 sm:$0xff] %v1297_v53  ;;  %v4200_v51 = vor.u32 %v5365_v41, %v4197_v43  ;;  %v4264_v52 = vor.u32 %v5381_v44, %v4261_v46  ;;  %v4125_v53 = vld [vmem:[%s7674_s6 + $0x38] sm:$0xf0] }
 0x34d   :  { %1278 = vst.msk [vmem:[#allocation4 + $0x9] ss:$2 sm:$0x3] %vm6652_vm0, %v1275_v55  ;;  %v5363_v55 = vld [vmem:[%s7674_s6 + $0xb4] sm:$0xf]  ;;  %v4128_v61 = vor.u32 %v5347_v35, %v4125_v53 }
 0x353   :  { %v1306_v0 = vld.sshfl [vmem:[#allocation1] sm:$0xff pattern:$0x73625140]  ;;  %v1307_v1 = vld.sshfl [vmem:[#allocation1 + $0x8] sm:$0xff pattern:$0x73625140] }
 0x354   :  { %v7085_v4 = vpack.c.bf16 %v1306_v0, %v1306_v0  ;;  %v7087_v5 = vpack.c.bf16 %v1307_v1, %v1307_v1  ;;  %v1308_v6 = vld.sshfl [vmem:[#allocation1 + $0x10] sm:$0xff pattern:$0x73625140]  ;;  %v1309_v7 = vld.sshfl [vmem:[#allocation1 + $0x18] sm:$0xff pattern:$0x73625140]  ;;  %v4192_v1 = vor.u32 %v5363_v55, %v4189_v56 }
 0x355   :  { %v7089_v10 = vpack.c.bf16 %v1308_v6, %v1308_v6  ;;  %v7091_v12 = vpack.c.bf16 %v1309_v7, %v1309_v7  ;;  %v4117_v0 = vld [vmem:[%s7674_s6 + $0x28] sm:$0xf0]  ;;  %v5377_v7 = vld [vmem:[%s7674_s6 + $0x124] sm:$0xf]  ;;  %v5451_v55 = vld [vmem:[%s7674_s6 + $0x374] sm:$0xf] }
 0x356   :  { %2212 = vmatmul.bf16.vlgmr.msrb.gmra.mxu2 %v7085_v4  ;;  %2225 = vmatmul.bf16.vlgmr.msrb.gmra.mxu3 %v7087_v5  ;;  %v4181_v6 = vld [vmem:[%s7674_s6 + $0xa8] sm:$0xf0]  ;;  %v4120_v15 = vor.u32 %v5345_v63, %v4117_v0  ;;  %v4541_v56 = vld [vmem:[%s7674_s6 + $0x378] sm:$0xf0] }
 0x357   :  { %2238 = vmatmul.bf16.vlgmr.msrb.gmra.mxu0 %v7089_v10  ;;  %2251 = vmatmul.bf16.vlgmr.msrb.gmra.mxu1 %v7091_v12  ;;  %v4184_v17 = vor.u32 %v5361_v3, %v4181_v6  ;;  %v4544_v0 = vor.u32 %v5451_v55, %v4541_v56  ;;  %v4344_v3 = vor.u32 %v5401_v57, %v4341_v58  ;;  %v5425_v56 = vld [vmem:[%s7674_s6 + $0x2a4] sm:$0xf]  ;;  %v4437_v57 = vld [vmem:[%s7674_s6 + $0x2a8] sm:$0xf0] }
 0x358   :  { %2308 = vmatpush.bf16.msrb.mxu2 %v4668_v8  ;;  %2321 = vmatpush.bf16.msrb.mxu3 %v4160_v9  ;;  %v5441_v58 = vld [vmem:[%s7674_s6 + $0x324] sm:$0xf] }
 0x359   :  { %2334 = vmatpush.bf16.msrb.mxu0 %v4224_v13  ;;  %2347 = vmatpush.bf16.msrb.mxu1 %v4288_v14  ;;  %v4245_v13 = vld [vmem:[%s7674_s6 + $0x128] sm:$0xf0]  ;;  %v4628_v14 = vor.u32 %v5474_v62, %v4627_v59  ;;  %v5417_v59 = vld [vmem:[%s7674_s6 + $0x264] sm:$0xf]  ;;  %v4232_v62 = vor.u32 %v5373_v39, %v4229_v49  ;;  %v4509_v49 = vld [vmem:[%s7674_s6 + $0x338] sm:$0xf0] }
 0x35a   :  { %v4248_v18 = vor.u32 %v5377_v7, %v4245_v13  ;;  %v5449_v7 = vld [vmem:[%s7674_s6 + $0x364] sm:$0xf]  ;;  %v4333_v13 = vld [vmem:[%s7674_s6 + $0x1d8] sm:$0xf0] }
 0x35b   :  { %v1291_v31 = vpop.permute.xlu1 %1290 }
 0x35c   :  { %v1292_v32 = vrot.slane %v1291_v31, 7  ;;  %2309 = vmatpush.bf16.msrb.mxu2 %v4660_v19  ;;  %2322 = vmatpush.bf16.msrb.mxu3 %v4152_v20  ;;  %v4109_v19 = vld [vmem:[%s7674_s6 + $0x18] sm:$0xf0]  ;;  %v5359_v20 = vld [vmem:[%s7674_s6 + $0x94] sm:$0xf] }
 0x35d   :  { %2335 = vmatpush.bf16.msrb.mxu0 %v4216_v54  ;;  %2348 = vmatpush.bf16.msrb.mxu1 %v4280_v24  ;;  %v4237_v54 = vld [vmem:[%s7674_s6 + $0x118] sm:$0xf0]  ;;  %v4611_v24 = vld [vmem:[%s7674_s6 + $0x400] sm:$0xf]  ;;  %v4112_v27 = vor.u32 %v5343_v50, %v4109_v19  ;;  %v4176_v36 = vor.u32 %v5359_v20, %v4173_v21  ;;  %v5447_v20 = vld [vmem:[%s7674_s6 + $0x354] sm:$0xf] }
 0x35e   :  { %v1293_v42 = vsel %vm1034_vm10, %v1292_v32, %v1291_v31  ;;  %v4349_v31 = vld [vmem:[%s7674_s6 + $0x1f8] sm:$0xf0]  ;;  %v5419_v32 = vld [vmem:[%s7674_s6 + $0x274] sm:$0xf]  ;;  %v4240_v44 = vor.u32 %v5375_v23, %v4237_v54  ;;  %v4612_v46 = vor.u32 %v5470_v25, %v4611_v24  ;;  %v5397_v23 = vld [vmem:[%s7674_s6 + $0x1c4] sm:$0xf] }
 0x35f   :  { %1296 = vst.msk [vmem:[#allocation4 + $0xf] ss:$2 sm:$0x3] %vm6652_vm0, %v1293_v42  ;;  %v4352_v35 = vor.u32 %v5403_v30, %v4349_v31  ;;  %v4461_v19 = vld [vmem:[%s7674_s6 + $0x2d8] sm:$0xf0] }
 0x360   :  { %2310 = vmatpush.bf16.msrb.mxu2 %v4652_v22  ;;  %2323 = vmatpush.bf16.msrb.mxu3 %v4144_v33  ;;  %v4413_v22 = vld [vmem:[%s7674_s6 + $0x278] sm:$0xf0]  ;;  %v4325_v54 = vld [vmem:[%s7674_s6 + $0x1c8] sm:$0xf0]  ;;  %v5413_v24 = vld [vmem:[%s7674_s6 + $0x244] sm:$0xf] }
 0x361   :  { %2336 = vmatpush.bf16.msrb.mxu0 %v4208_v37  ;;  %2349 = vmatpush.bf16.msrb.mxu1 %v4272_v38  ;;  %v5357_v37 = vld [vmem:[%s7674_s6 + $0x84] sm:$0xf]  ;;  %v4165_v38 = vld [vmem:[%s7674_s6 + $0x88] sm:$0xf0]  ;;  %v4416_v53 = vor.u32 %v5419_v32, %v4413_v22  ;;  %v4525_v21 = vld [vmem:[%s7674_s6 + $0x358] sm:$0xf0] }
 0x362   :  { %v4389_v25 = vld [vmem:[%s7674_s6 + $0x248] sm:$0xf0]  ;;  %v5445_v31 = vld [vmem:[%s7674_s6 + $0x344] sm:$0xf] }
 0x363   :  { %v4453_v30 = vld [vmem:[%s7674_s6 + $0x2c8] sm:$0xf0] }
 0x364   :  { %2311 = vmatpush.bf16.msrb.mxu2 %v4644_v47  ;;  %2324 = vmatpush.bf16.msrb.mxu3 %v4136_v48  ;;  %v4517_v32 = vld [vmem:[%s7674_s6 + $0x348] sm:$0xf0] }
 0x365   :  { %2337 = vmatpush.bf16.msrb.mxu0 %v4200_v51  ;;  %2350 = vmatpush.bf16.msrb.mxu1 %v4264_v52  ;;  %v5435_v51 = vld [vmem:[%s7674_s6 + $0x2f4] sm:$0xf]  ;;  %v4477_v52 = vld [vmem:[%s7674_s6 + $0x2f8] sm:$0xf0]  ;;  %v4520_v39 = vor.u32 %v5445_v31, %v4517_v32 }
 0x366   :  { %v1298_v8 = vld [vmem:[#allocation4 + $0x8] sm:$0xff]  ;;  %v1299_v9 = vld [vmem:[#allocation4 + $0x10] sm:$0x3]  ;;  %v4480_v63 = vor.u32 %v5435_v51, %v4477_v52  ;;  %v5393_v52 = vld [vmem:[%s7674_s6 + $0x1a4] sm:$0xf] }
 0x367   :  { %1305 = vst [vmem:[#allocation1 + $0x20] ss:$4 sm:$0xff] %v1298_v8  ;;  %v4533_v8 = vld [vmem:[%s7674_s6 + $0x368] sm:$0xf0] }
 0x368   :  { %1314 = vst [vmem:[#allocation1] ss:$4 sm:$0xff] %v1299_v9  ;;  %2312 = vmatpush.bf16.msrb.mxu2 %v4636_v60  ;;  %2325 = vmatpush.bf16.msrb.mxu3 %v4128_v61  ;;  %v4405_v60 = vld [vmem:[%s7674_s6 + $0x268] sm:$0xf0]  ;;  %v4168_v61 = vor.u32 %v5357_v37, %v4165_v38  ;;  %v5399_v9 = vld [vmem:[%s7674_s6 + $0x1d4] sm:$0xf]  ;;  %v4456_v38 = vor.u32 %v5429_v29, %v4453_v30 }
 0x369   :  { %2338 = vmatpush.bf16.msrb.mxu0 %v4192_v1  ;;  %2351 = vmatpush.bf16.msrb.mxu1 %v4256_v2  ;;  %v5433_v1 = vld [vmem:[%s7674_s6 + $0x2e4] sm:$0xf]  ;;  %v4469_v2 = vld [vmem:[%s7674_s6 + $0x2e8] sm:$0xf0]  ;;  %v4408_v6 = vor.u32 %v5417_v59, %v4405_v60  ;;  %v4336_v45 = vor.u32 %v5399_v9, %v4333_v13  ;;  %v4317_v37 = vld [vmem:[%s7674_s6 + $0x1b8] sm:$0xf0] }
 0x36a   :  { %v4472_v16 = vor.u32 %v5433_v1, %v4469_v2  ;;  %v4501_v59 = vld [vmem:[%s7674_s6 + $0x328] sm:$0xf0]  ;;  %v5407_v2 = vld [vmem:[%s7674_s6 + $0x214] sm:$0xf]  ;;  %v4493_v9 = vld [vmem:[%s7674_s6 + $0x318] sm:$0xf0] }
 0x36b   :  { %v4504_v1 = vor.u32 %v5441_v58, %v4501_v59  ;;  %v5389_v13 = vld [vmem:[%s7674_s6 + $0x184] sm:$0xf]  ;;  %v5483_v29 = vld [vmem:[%s7674_s6 + $0x474] sm:$0xf]  ;;  %v4669_v30 = vld [vmem:[%s7674_s6 + $0x478] sm:$0xf0] }
 0x36c   :  { %2313 = vmatpush.bf16.msrb.mxu2 %v4628_v14  ;;  %2326 = vmatpush.bf16.msrb.mxu3 %v4120_v15  ;;  %v5415_v14 = vld [vmem:[%s7674_s6 + $0x254] sm:$0xf]  ;;  %v4397_v15 = vld [vmem:[%s7674_s6 + $0x258] sm:$0xf0] }
 0x36d   :  { %2339 = vmatpush.bf16.msrb.mxu0 %v4184_v17  ;;  %2352 = vmatpush.bf16.msrb.mxu1 %v4248_v18  ;;  %v4536_v17 = vor.u32 %v5449_v7, %v4533_v8  ;;  %v5431_v18 = vld [vmem:[%s7674_s6 + $0x2d4] sm:$0xf]  ;;  %v4400_v50 = vor.u32 %v5415_v14, %v4397_v15  ;;  %v4429_v7 = vld [vmem:[%s7674_s6 + $0x298] sm:$0xf0]  ;;  %v2442_v14 = vld [vmem:[%s7676_s8] sm:$0xff] }
 0x36e   :  { %v1310_v33 = vld.sshfl [vmem:[#allocation1 + $0x20] sm:$0xff pattern:$0x73625140]  ;;  %v1311_v34 = vld.sshfl [vmem:[#allocation1 + $0x28] sm:$0xff pattern:$0x73625140] }
 0x36f   :  { %v7271_v40 = vpack.c.bf16 %v1310_v33, %v1310_v33  ;;  %v7273_v41 = vpack.c.bf16 %v1311_v34, %v1311_v34  ;;  %v1312_v42 = vld.sshfl [vmem:[#allocation1 + $0x30] sm:$0xff pattern:$0x73625140]  ;;  %v1313_v43 = vld.sshfl [vmem:[#allocation1 + $0x38] sm:$0xff pattern:$0x73625140]  ;;  %v4328_v33 = vor.u32 %v5397_v23, %v4325_v54  ;;  %v4392_v34 = vor.u32 %v5413_v24, %v4389_v25 }
 0x370   :  { %v7275_v47 = vpack.c.bf16 %v1312_v42, %v1312_v42  ;;  %v7277_v48 = vpack.c.bf16 %v1313_v43, %v1313_v43  ;;  %2314 = vmatpush.bf16.msrb.mxu2 %v4620_v26  ;;  %2327 = vmatpush.bf16.msrb.mxu3 %v4112_v27  ;;  %v4464_v26 = vor.u32 %v5431_v18, %v4461_v19  ;;  %v1315_v28 = vld.sshfl [vmem:[#allocation1] sm:$0xff pattern:$0x73625140]  ;;  %v5411_v42 = vld [vmem:[%s7674_s6 + $0x234] sm:$0xf]  ;;  %v2443_v23 = vld [vmem:[%s7676_s8 + $0x8] sm:$0xff] }
 0x371   :  { %2264 = vmatmul.bf16.vlgmr.msra.gmra.mxu2 %v7271_v40  ;;  %2277 = vmatmul.bf16.vlgmr.msra.gmra.mxu3 %v7273_v41  ;;  %v4528_v27 = vor.u32 %v5447_v20, %v4525_v21  ;;  %v7370_v22 = vpack.c.bf16 %v1315_v28, %v1315_v28  ;;  %v4381_v43 = vld [vmem:[%s7674_s6 + $0x238] sm:$0xf0]  ;;  %v5439_v8 = vld [vmem:[%s7674_s6 + $0x314] sm:$0xf]  ;;  %v5405_v18 = vld [vmem:[%s7674_s6 + $0x204] sm:$0xf] }
 0x372   :  { %2290 = vmatmul.bf16.vlgmr.msra.gmra.mxu0 %v7275_v47  ;;  %2303 = vmatmul.bf16.vlgmr.msra.gmra.mxu1 %v7277_v48  ;;  %v4496_v19 = vor.u32 %v5439_v8, %v4493_v9  ;;  %v5421_v20 = vld [vmem:[%s7674_s6 + $0x284] sm:$0xf]  ;;  %v4421_v21 = vld [vmem:[%s7674_s6 + $0x288] sm:$0xf0]  ;;  %v5467_v25 = vld [vmem:[%s7674_s6 + $0x3f4] sm:$0xf] }
 0x373   :  { %2340 = vmatpush.bf16.msrb.mxu0 %v4176_v36  ;;  %2353 = vmatpush.bf16.msrb.mxu1 %v4240_v44  ;;  %v5395_v36 = vld [vmem:[%s7674_s6 + $0x1b4] sm:$0xf]  ;;  %v5437_v54 = vld [vmem:[%s7674_s6 + $0x304] sm:$0xf]  ;;  %v4485_v24 = vld [vmem:[%s7674_s6 + $0x308] sm:$0xf0] }
 0x374   :  { %2315 = vmatpush.bf16.msrb.mxu2 %v4612_v46  ;;  %2328 = vmatpush.bf16.msrb.mxu3 %v4104_v11  ;;  %v5427_v44 = vld [vmem:[%s7674_s6 + $0x2b4] sm:$0xf]  ;;  %v4445_v46 = vld [vmem:[%s7674_s6 + $0x2b8] sm:$0xf0]  ;;  %v4320_v51 = vor.u32 %v5395_v36, %v4317_v37  ;;  %v4424_v36 = vor.u32 %v5421_v20, %v4421_v21  ;;  %v4488_v37 = vor.u32 %v5437_v54, %v4485_v24  ;;  %v5457_v9 = vld [vmem:[%s7674_s6 + $0x3a4] sm:$0xf] }
 0x375   :  { %v5443_v11 = vld [vmem:[%s7674_s6 + $0x334] sm:$0xf]  ;;  %v4605_v28 = vld [vmem:[%s7674_s6 + $0x3f8] sm:$0xf0]  ;;  %v5453_v54 = vld [vmem:[%s7674_s6 + $0x384] sm:$0xf] }
 0x376   :  { %v4512_v55 = vor.u32 %v5443_v11, %v4509_v49  ;;  %v5481_v11 = vld [vmem:[%s7674_s6 + $0x464] sm:$0xf]  ;;  %v4661_v49 = vld [vmem:[%s7674_s6 + $0x468] sm:$0xf0]  ;;  %v4621_v20 = vld [vmem:[%s7674_s6 + $0x418] sm:$0xf0] }
 0x377   :  { %2341 = vmatpush.bf16.msrb.mxu0 %v4168_v61  ;;  %2354 = vmatpush.bf16.msrb.mxu1 %v4232_v62  ;;  %v5391_v62 = vld [vmem:[%s7674_s6 + $0x194] sm:$0xf]  ;;  %v4549_v24 = vld [vmem:[%s7674_s6 + $0x388] sm:$0xf0] }
 0x378   :  { %2360 = vmatpush.bf16.msra.mxu2 %v4352_v35  ;;  %2373 = vmatpush.bf16.msra.mxu3 %v4416_v53  ;;  %v4309_v35 = vld [vmem:[%s7674_s6 + $0x1a8] sm:$0xf0]  ;;  %v4448_v53 = vor.u32 %v5427_v44, %v4445_v46 }
 0x379   :  { %v4312_v60 = vor.u32 %v5393_v52, %v4309_v35  ;;  %v4597_v44 = vld [vmem:[%s7674_s6 + $0x3e8] sm:$0xf0] }
 0x37b   :  { %2386 = vmatpush.bf16.msra.mxu0 %v4480_v63  ;;  %2399 = vmatpush.bf16.msra.mxu1 %v4544_v0  ;;  %v4301_v63 = vld [vmem:[%s7674_s6 + $0x198] sm:$0xf0]  ;;  %v4440_v0 = vor.u32 %v5425_v56, %v4437_v57  ;;  %v5479_v56 = vld [vmem:[%s7674_s6 + $0x454] sm:$0xf] }
 0x37c   :  { %2361 = vmatpush.bf16.msra.mxu2 %v4344_v3  ;;  %2374 = vmatpush.bf16.msra.mxu3 %v4408_v6  ;;  %v4365_v3 = vld [vmem:[%s7674_s6 + $0x218] sm:$0xf0]  ;;  %v5423_v6 = vld [vmem:[%s7674_s6 + $0x294] sm:$0xf]  ;;  %v4304_v15 = vor.u32 %v5391_v62, %v4301_v63 }
 0x37d   :  { %v4653_v57 = vld [vmem:[%s7674_s6 + $0x458] sm:$0xf0] }
 0x37e   :  { %v4656_v59 = vor.u32 %v5479_v56, %v4653_v57  ;;  %v4719_v56 = vld [vmem:[#allocation6 + $0x50] sm:$0xf]  ;;  %v5496_v57 = vld [vmem:[#allocation6 + $0x54] sm:$0xf0] }
 0x37f   :  { %2387 = vmatpush.bf16.msra.mxu0 %v4472_v16  ;;  %2400 = vmatpush.bf16.msra.mxu1 %v4536_v17  ;;  %v4368_v16 = vor.u32 %v5407_v2, %v4365_v3  ;;  %v4293_v17 = vld [vmem:[%s7674_s6 + $0x188] sm:$0xf0]  ;;  %v5475_v2 = vld [vmem:[%s7674_s6 + $0x434] sm:$0xf]  ;;  %v4637_v3 = vld [vmem:[%s7674_s6 + $0x438] sm:$0xf0] }
 0x380   :  { %2362 = vmatpush.bf16.msra.mxu2 %v4336_v45  ;;  %2375 = vmatpush.bf16.msra.mxu3 %v4400_v50  ;;  %v4357_v45 = vld [vmem:[%s7674_s6 + $0x208] sm:$0xf0]  ;;  %v4432_v50 = vor.u32 %v5423_v6, %v4429_v7  ;;  %v4296_v31 = vor.u32 %v5389_v13, %v4293_v17  ;;  %v2440_v6 = vld [vmem:[%s7669_s1] sm:$0x3]  ;;  %v4640_v8 = vor.u32 %v5475_v2, %v4637_v3  ;;  %v4703_v2 = vld [vmem:[#allocation6 + $0x30] sm:$0xf] }
 0x381   :  { %2316 = vmatmul.bf16.vlgmr.msrb.gmra.mxu2 %v7370_v22  ;;  %2329 = vmatmul.bf16.vlgmr.msrb.gmra.mxu3 %v7085_v4  ;;  %v4384_v4 = vor.u32 %v5411_v42, %v4381_v43  ;;  %v4360_v32 = vor.u32 %v5405_v18, %v4357_v45  ;;  %v5465_v43 = vld [vmem:[%s7674_s6 + $0x3e4] sm:$0xf]  ;;  %v4565_v13 = vld [vmem:[%s7674_s6 + $0x3a8] sm:$0xf0]  ;;  %v5455_v45 = vld [vmem:[%s7674_s6 + $0x394] sm:$0xf] }
 0x382   :  { %2342 = vmatmul.bf16.vlgmr.msrb.gmra.mxu0 %v7087_v5  ;;  %2355 = vmatmul.bf16.vlgmr.msrb.gmra.mxu1 %v7089_v10  ;;  %v5409_v5 = vld [vmem:[%s7674_s6 + $0x224] sm:$0xf]  ;;  %v4373_v10 = vld [vmem:[%s7674_s6 + $0x228] sm:$0xf0]  ;;  %v4600_v35 = vor.u32 %v5465_v43, %v4597_v44  ;;  %v4568_v17 = vor.u32 %v5457_v9, %v4565_v13  ;;  %v4799_v43 = vld [vmem:[#allocation6 + $0xf0] sm:$0xf] }
 0x383   :  { %2388 = vmatpush.bf16.msra.mxu0 %v4464_v26  ;;  %2401 = vmatpush.bf16.msra.mxu1 %v4528_v27  ;;  %v4376_v61 = vor.u32 %v5409_v5, %v4373_v10  ;;  %v2456_v26 = vunpack.c.l.b16 %v2442_v14  ;;  %v2457_v27 = vunpack.c.h.b16 %v2442_v14  ;;  %v5463_v5 = vld [vmem:[%s7674_s6 + $0x3d4] sm:$0xf]  ;;  %v4589_v10 = vld [vmem:[%s7674_s6 + $0x3d8] sm:$0xf0]  ;;  %v5473_v14 = vld [vmem:[%s7674_s6 + $0x424] sm:$0xf] }
 0x384   :  { %2363 = vmatpush.bf16.msra.mxu2 %v4328_v33  ;;  %2376 = vmatpush.bf16.msra.mxu3 %v4392_v34  ;;  %v2458_v33 = vunpack.c.l.b16 %v2443_v23  ;;  %v2459_v34 = vunpack.c.h.b16 %v2443_v23  ;;  %v4592_v58 = vor.u32 %v5463_v5, %v4589_v10  ;;  %v5514_v5 = vld [vmem:[#allocation6 + $0xe4] sm:$0xf0]  ;;  %v5492_v3 = vld [vmem:[#allocation6 + $0x34] sm:$0xf0]  ;;  %v4863_v9 = vld [vmem:[#allocation6 + $0x170] sm:$0xf] }
 0x385   :  { %v2460_v42 = vpack.c.b16 %v2456_v26, %v2456_v26  ;;  %v2461_v46 = vpack.c.b16 %v2457_v27, %v2457_v27  ;;  %v4613_v26 = vld [vmem:[%s7674_s6 + $0x408] sm:$0xf0]  ;;  %v4552_v27 = vor.u32 %v5453_v54, %v4549_v24  ;;  %v5532_v13 = vld [vmem:[#allocation6 + $0x174] sm:$0xf0]  ;;  %v5506_v24 = vld [vmem:[#allocation6 + $0xa4] sm:$0xf0] }
 0x387   :  { %2389 = vmatpush.bf16.msra.mxu0 %v4456_v38  ;;  %2402 = vmatpush.bf16.msra.mxu1 %v4520_v39  ;;  %v4608_v38 = vor.u32 %v5467_v25, %v4605_v28  ;;  %v4672_v39 = vor.u32 %v5483_v29, %v4669_v30  ;;  %v2470_v52 = vsel %vm2468_vm2, %v2460_v42, 0  ;;  %v5469_v25 = vld [vmem:[%s7674_s6 + $0x404] sm:$0xf]  ;;  %v7594_v29 = vld [vmem:[%s7675_s7] sm:$0x3] }
 0x388   :  { %2364 = vmatpush.bf16.msra.mxu2 %v4320_v51  ;;  %2377 = vmatpush.bf16.msra.mxu3 %v4384_v4  ;;  %v2462_v51 = vpack.c.b16 %v2458_v33, %v2458_v33  ;;  %v2463_v4 = vpack.c.b16 %v2459_v34, %v2459_v34  ;;  %v4616_v28 = vor.u32 %v5469_v25, %v4613_v26  ;;  %v5500_v42 = vld [vmem:[#allocation6 + $0x74] sm:$0xf0]  ;;  %v4855_v25 = vld [vmem:[#allocation6 + $0x160] sm:$0xf]  ;;  %v5530_v26 = vld [vmem:[#allocation6 + $0x164] sm:$0xf0] }
 0x38b   :  { %2390 = vmatpush.bf16.msra.mxu0 %v4448_v53  ;;  %2403 = vmatpush.bf16.msra.mxu1 %v4512_v55  ;;  %v4664_v53 = vor.u32 %v5481_v11, %v4661_v49  ;;  %v2473_v55 = vsel %vm2468_vm2, %v2461_v46, 0  ;;  %v5516_v11 = vld [vmem:[#allocation6 + $0xf4] sm:$0xf0] }
 0x38c   :  { %2365 = vmatpush.bf16.msra.mxu2 %v4312_v60  ;;  %2378 = vmatpush.bf16.msra.mxu3 %v4376_v61  ;;  %v5461_v60 = vld [vmem:[%s7674_s6 + $0x3c4] sm:$0xf]  ;;  %v4645_v61 = vld [vmem:[%s7674_s6 + $0x448] sm:$0xf0] }
 0x38f   :  { %2391 = vmatpush.bf16.msra.mxu0 %v4440_v0  ;;  %2404 = vmatpush.bf16.msra.mxu1 %v4504_v1  ;;  %v5459_v0 = vld [vmem:[%s7674_s6 + $0x3b4] sm:$0xf]  ;;  %v4573_v1 = vld [vmem:[%s7674_s6 + $0x3b8] sm:$0xf0] }
 0x390   :  { %2366 = vmatpush.bf16.msra.mxu2 %v4304_v15  ;;  %2379 = vmatpush.bf16.msra.mxu3 %v4368_v16  ;;  %v4576_v7 = vor.u32 %v5459_v0, %v4573_v1  ;;  %v4629_v15 = vld [vmem:[%s7674_s6 + $0x428] sm:$0xf0]  ;;  %v2441_v16 = vpack.c.bf16 %v2440_v6, %v2440_v6  ;;  %v4767_v6 = vld [vmem:[#allocation6 + $0xb0] sm:$0xf] }
 0x391   :  { %v4632_v18 = vor.u32 %v5473_v14, %v4629_v15  ;;  %v4864_v15 = vor.u32 %v5532_v13, %v4863_v9  ;;  %v4895_v13 = vld [vmem:[#allocation6 + $0x1b0] sm:$0xf] }
 0x393   :  { %2392 = vmatpush.bf16.msra.mxu0 %v4432_v50  ;;  %2405 = vmatpush.bf16.msra.mxu1 %v4496_v19  ;;  %v4557_v50 = vld [vmem:[%s7674_s6 + $0x398] sm:$0xf0]  ;;  %v5471_v19 = vld [vmem:[%s7674_s6 + $0x414] sm:$0xf] }
 0x394   :  { %2367 = vmatpush.bf16.msra.mxu2 %v4296_v31  ;;  %2380 = vmatpush.bf16.msra.mxu3 %v4360_v32  ;;  %v4560_v21 = vor.u32 %v5455_v45, %v4557_v50  ;;  %v4624_v23 = vor.u32 %v5471_v19, %v4621_v20  ;;  %v1480_v32 = vperm.slane %v7594_v29, 0  ;;  %v4695_v19 = vld [vmem:[#allocation6 + $0x20] sm:$0xf]  ;;  %v5490_v20 = vld [vmem:[#allocation6 + $0x24] sm:$0xf0] }
 0x395   :  { %v4696_v54 = vor.u32 %v5490_v20, %v4695_v19  ;;  %v4793_v20 = vld [vmem:[#allocation6 + $0xe8] sm:$0xf0] }
 0x397   :  { %2393 = vmatpush.bf16.msra.mxu0 %v4424_v36  ;;  %2406 = vmatpush.bf16.msra.mxu1 %v4488_v37 }
 0x398   :  { %2412 = vmatpush.bf16.msrb.mxu2 %v4608_v38  ;;  %2425 = vmatpush.bf16.msrb.mxu3 %v4672_v39  ;;  %v4735_v39 = vld [vmem:[#allocation6 + $0x70] sm:$0xf] }
 0x399   :  { %2368 = vmatmul.bf16.vlgmr.msra.gmra.mxu2 %v7091_v12  ;;  %2381 = vmatmul.bf16.vlgmr.msra.gmra.mxu3 %v7271_v40  ;;  %v2476_v12 = vsel %vm2468_vm2, %v2462_v51, 0  ;;  %v2479_v40 = vsel %vm2468_vm2, %v2463_v4, 0  ;;  %v4736_v46 = vor.u32 %v5500_v42, %v4735_v39  ;;  %v4800_v4 = vor.u32 %v5516_v11, %v4799_v43  ;;  %v5504_v42 = vld [vmem:[#allocation6 + $0x94] sm:$0xf0]  ;;  %v4847_v43 = vld [vmem:[#allocation6 + $0x150] sm:$0xf] }
 0x39a   :  { %2394 = vmatmul.bf16.vlgmr.msra.gmra.mxu0 %v7273_v41  ;;  %2407 = vmatmul.bf16.vlgmr.msra.gmra.mxu1 %v7275_v47  ;;  %v4581_v41 = vld [vmem:[%s7674_s6 + $0x3c8] sm:$0xf0]  ;;  %v5477_v47 = vld [vmem:[%s7674_s6 + $0x444] sm:$0xf] }
 0x39b   :  { %2488 = vmatpush.bf16.msrb.mxu0 %v2470_v52  ;;  %2501 = vmatpush.bf16.msrb.mxu1 %v2473_v55  ;;  %v4584_v62 = vor.u32 %v5461_v60, %v4581_v41  ;;  %v4648_v63 = vor.u32 %v5477_v47, %v4645_v61  ;;  %v4727_v52 = vld [vmem:[#allocation6 + $0x60] sm:$0xf]  ;;  %v5494_v41 = vld [vmem:[#allocation6 + $0x44] sm:$0xf0] }
 0x39c   :  { %2413 = vmatpush.bf16.msrb.mxu2 %v4600_v35  ;;  %2426 = vmatpush.bf16.msrb.mxu3 %v4664_v53  ;;  %v5498_v35 = vld [vmem:[#allocation6 + $0x64] sm:$0xf0]  ;;  %v4791_v55 = vld [vmem:[#allocation6 + $0xe0] sm:$0xf] }
 0x39d   :  { %v4728_v53 = vor.u32 %v5498_v35, %v4727_v52  ;;  %v4792_v10 = vor.u32 %v5514_v5, %v4791_v55  ;;  %v4711_v60 = vld [vmem:[#allocation6 + $0x40] sm:$0xf]  ;;  %v5486_v5 = vld [vmem:[#allocation6 + $0x4] sm:$0xf0] }
 0x39e   :  { %v4775_v47 = vld [vmem:[#allocation6 + $0xc0] sm:$0xf]  ;;  %v4712_v61 = vor.u32 %v5494_v41, %v4711_v60 }
 0x39f   :  { %2514 = vmatpush.bf16.msra.mxu0 %v2476_v12  ;;  %2527 = vmatpush.bf16.msra.mxu1 %v2479_v40  ;;  %v4783_v12 = vld [vmem:[#allocation6 + $0xd0] sm:$0xf]  ;;  %v4720_v40 = vor.u32 %v5496_v57, %v4719_v56  ;;  %v4679_v55 = vld [vmem:[#allocation6] sm:$0xf]  ;;  %v5502_v57 = vld [vmem:[#allocation6 + $0x84] sm:$0xf0] }
 0x3a0   :  { %2414 = vmatpush.bf16.msrb.mxu2 %v4592_v58  ;;  %2427 = vmatpush.bf16.msrb.mxu3 %v4656_v59  ;;  %v5512_v58 = vld [vmem:[#allocation6 + $0xd4] sm:$0xf0]  ;;  %v4680_v56 = vor.u32 %v5486_v5, %v4679_v55  ;;  %v4807_v55 = vld [vmem:[#allocation6 + $0x100] sm:$0xf]  ;;  %v5518_v5 = vld [vmem:[#allocation6 + $0x104] sm:$0xf0] }
 0x3a1   :  { %v4784_v59 = vor.u32 %v5512_v58, %v4783_v12  ;;  %v4839_v12 = vld [vmem:[#allocation6 + $0x140] sm:$0xf] }
 0x3a4   :  { %2415 = vmatpush.bf16.msrb.mxu2 %v4584_v62  ;;  %2428 = vmatpush.bf16.msrb.mxu3 %v4648_v63  ;;  %v5510_v62 = vld [vmem:[#allocation6 + $0xc4] sm:$0xf0] }
 0x3a5   :  { %v4776_v63 = vor.u32 %v5510_v62, %v4775_v47  ;;  %v4903_v47 = vld [vmem:[#allocation6 + $0x1c0] sm:$0xf]  ;;  %v5499_v62 = vld [vmem:[#allocation6 + $0x74] sm:$0xf] }
 0x3a8   :  { %2416 = vmatpush.bf16.msrb.mxu2 %v4576_v7  ;;  %2429 = vmatpush.bf16.msrb.mxu3 %v4640_v8  ;;  %v4704_v7 = vor.u32 %v5492_v3, %v4703_v2  ;;  %v5508_v8 = vld [vmem:[#allocation6 + $0xb4] sm:$0xf0]  ;;  %v4801_v2 = vld [vmem:[#allocation6 + $0xf8] sm:$0xf0] }
 0x3a9   :  { %v4768_v14 = vor.u32 %v5508_v8, %v4767_v6  ;;  %v5524_v8 = vld [vmem:[#allocation6 + $0x134] sm:$0xf0] }
 0x3aa   :  { %4673 = vmatmul.msk.bf16.vlgmr.msrb.gmra.mxu0 %vm2464_vm3, %v2441_v16  ;;  %4674 = vmatmul.msk.bf16.vlgmr.msrb.gmra.mxu1 %vm2464_vm3, %v2441_v16 }
 0x3ab   :  { %2957 = vmatpush.bf16.msrb.mxu0 %v4864_v15 }
 0x3ac   :  { %2417 = vmatpush.bf16.msrb.mxu2 %v4568_v17  ;;  %2430 = vmatpush.bf16.msrb.mxu3 %v4632_v18  ;;  %v5548_v17 = vld [vmem:[#allocation6 + $0x1f4] sm:$0xf0] }
 0x3b0   :  { %2418 = vmatpush.bf16.msrb.mxu2 %v4560_v21  ;;  %2431 = vmatpush.bf16.msrb.mxu3 %v4624_v23  ;;  %v4759_v21 = vld [vmem:[#allocation6 + $0xa0] sm:$0xf] }
 0x3b4   :  { %2419 = vmatpush.bf16.msrb.mxu2 %v4552_v27  ;;  %2432 = vmatpush.bf16.msrb.mxu3 %v4616_v28  ;;  %v4760_v27 = vor.u32 %v5506_v24, %v4759_v21  ;;  %v4856_v28 = vor.u32 %v5530_v26, %v4855_v25  ;;  %v4887_v24 = vld [vmem:[#allocation6 + $0x1a0] sm:$0xf] }
 0x3b6   :  { %2958 = vmatpush.bf16.msrb.mxu0 %v4856_v28  ;;  %v5538_v28 = vld [vmem:[#allocation6 + $0x1a4] sm:$0xf0] }
 0x3b7   :  { %2420 = vmatmul.bf16.vlgmr.msrb.gmra.mxu2 %v7277_v48  ;;  %2433 = vmatmul.bf16.vlgmr.msrb.gmra.mxu3 %v7370_v22 }
 0x3b8   :  { %2931 = vmatpush.bf16.msra.mxu2 %v4736_v46  ;;  %2944 = vmatpush.bf16.msra.mxu3 %v4800_v4  ;;  %v5544_v4 = vld [vmem:[#allocation6 + $0x1d4] sm:$0xf0] }
 0x3ba   :  { %4675 = vmatmul.msk.bf16.vlgmr.msra.gmra.mxu0 %vm2464_vm3, %v2441_v16  ;;  %4676 = vmatmul.msk.bf16.vlgmr.msra.gmra.mxu1 %vm2464_vm3, %v2441_v16  ;;  %v4927_v16 = vld [vmem:[#allocation6 + $0x1f0] sm:$0xf] }
 0x3bb   :  { %v4928_v50 = vor.u32 %v5548_v17, %v4927_v16 }
 0x3bc   :  { %2932 = vmatpush.bf16.msra.mxu2 %v4728_v53  ;;  %2945 = vmatpush.bf16.msra.mxu3 %v4792_v10  ;;  %v4743_v10 = vld [vmem:[#allocation6 + $0x80] sm:$0xf] }
 0x3bd   :  { %2970 = vmatpush.bf16.msrb.mxu1 %v4928_v50  ;;  %v4744_v60 = vor.u32 %v5502_v57, %v4743_v10  ;;  %v5513_v50 = vld [vmem:[#allocation6 + $0xe4] sm:$0xf]  ;;  %v4871_v10 = vld [vmem:[#allocation6 + $0x180] sm:$0xf]  ;;  %v5534_v57 = vld [vmem:[#allocation6 + $0x184] sm:$0xf0] }
 0x3be   :  { %v4796_v21 = vor.u32 %v5513_v50, %v4793_v20  ;;  %v5545_v20 = vld [vmem:[#allocation6 + $0x1e4] sm:$0xf] }
 0x3c0   :  { %2933 = vmatpush.bf16.msra.mxu2 %v4720_v40  ;;  %2946 = vmatpush.bf16.msra.mxu3 %v4784_v59  ;;  %v5526_v40 = vld [vmem:[#allocation6 + $0x144] sm:$0xf0] }
 0x3c1   :  { %v4840_v41 = vor.u32 %v5526_v40, %v4839_v12  ;;  %v5491_v12 = vld [vmem:[#allocation6 + $0x34] sm:$0xf]  ;;  %v4705_v40 = vld [vmem:[#allocation6 + $0x38] sm:$0xf0] }
 0x3c4   :  { %2934 = vmatpush.bf16.msra.mxu2 %v4712_v61  ;;  %2947 = vmatpush.bf16.msra.mxu3 %v4776_v63  ;;  %v5542_v61 = vld [vmem:[#allocation6 + $0x1c4] sm:$0xf0] }
 0x3c5   :  { %v4904_v63 = vor.u32 %v5542_v61, %v4903_v47  ;;  %v5507_v47 = vld [vmem:[#allocation6 + $0xb4] sm:$0xf]  ;;  %v4769_v61 = vld [vmem:[#allocation6 + $0xb8] sm:$0xf0] }
 0x3c8   :  { %2935 = vmatpush.bf16.msra.mxu2 %v4704_v7  ;;  %2948 = vmatpush.bf16.msra.mxu3 %v4768_v14  ;;  %v4831_v7 = vld [vmem:[#allocation6 + $0x130] sm:$0xf]  ;;  %v5540_v14 = vld [vmem:[#allocation6 + $0x1b4] sm:$0xf0] }
 0x3c9   :  { %v4832_v9 = vor.u32 %v5524_v8, %v4831_v7  ;;  %v4896_v17 = vor.u32 %v5540_v14, %v4895_v13  ;;  %v5489_v7 = vld [vmem:[#allocation6 + $0x24] sm:$0xf]  ;;  %v4697_v8 = vld [vmem:[#allocation6 + $0x28] sm:$0xf0] }
 0x3cc   :  { %2936 = vmatpush.bf16.msra.mxu2 %v4696_v54  ;;  %2949 = vmatpush.bf16.msra.mxu3 %v4760_v27  ;;  %v5522_v54 = vld [vmem:[#allocation6 + $0x124] sm:$0xf0] }
 0x3d4   :  { %v2239_v30 = vpop.f32.mrf.mxu0  ;;  %v2252_v31 = vpop.f32.mrf.mxu1 }
 0x3d9   :  { %v2213_v33 = vpop.f32.mrf.mxu2  ;;  %v2226_v34 = vpop.f32.mrf.mxu3 }
 0x3da   :  { %v2214_v36 = vadd.f32 %v2213_v33, %v1480_v32 }
 0x3dc   :  { %v2227_v37 = vadd.f32 %v2226_v34, %v2214_v36  ;;  %v2241_v48 = vpop.f32.mrf.mxu0  ;;  %v2254_v38 = vpop.f32.mrf.mxu1 }
 0x3dd   :  { %v4687_v48 = vld [vmem:[#allocation6 + $0x10] sm:$0xf]  ;;  %v5488_v38 = vld [vmem:[#allocation6 + $0x14] sm:$0xf0] }
 0x3de   :  { %v2240_v22 = vadd.f32 %v2239_v30, %v2227_v37  ;;  %v4919_v30 = vld [vmem:[#allocation6 + $0x1e0] sm:$0xf]  ;;  %v4688_v39 = vor.u32 %v5488_v38, %v4687_v48  ;;  %v4815_v48 = vld [vmem:[#allocation6 + $0x110] sm:$0xf]  ;;  %v5520_v38 = vld [vmem:[#allocation6 + $0x114] sm:$0xf0] }
 0x3e0   :  { %v2253_v44 = vadd.f32 %v2252_v31, %v2240_v22  ;;  %v5546_v31 = vld [vmem:[#allocation6 + $0x1e4] sm:$0xf0]  ;;  %v4751_v22 = vld [vmem:[#allocation6 + $0x90] sm:$0xf]  ;;  %2937 = vmatpush.bf16.msra.mxu2 %v4688_v39  ;;  %v4816_v39 = vor.u32 %v5520_v38, %v4815_v48  ;;  %v4913_v48 = vld [vmem:[#allocation6 + $0x1d8] sm:$0xf0] }
 0x3e1   :  { %v2215_v49 = vpop.f32.mrf.mxu2  ;;  %v2228_v51 = vpop.f32.mrf.mxu3  ;;  %v4920_v36 = vor.u32 %v5546_v31, %v4919_v30  ;;  %v4752_v11 = vor.u32 %v5504_v42, %v4751_v22  ;;  %v5495_v30 = vld [vmem:[#allocation6 + $0x54] sm:$0xf]  ;;  %v4721_v31 = vld [vmem:[#allocation6 + $0x58] sm:$0xf0]  ;;  %v4879_v22 = vld [vmem:[#allocation6 + $0x190] sm:$0xf] }
 0x3e2   :  { %v4911_v51 = vld [vmem:[#allocation6 + $0x1d0] sm:$0xf]  ;;  %v5536_v42 = vld [vmem:[#allocation6 + $0x194] sm:$0xf0]  ;;  %v1481_v38 = vperm.slane %v7594_v29, 1 }
 0x3e3   :  { %2971 = vmatpush.bf16.msrb.mxu1 %v4920_v36  ;;  %v4912_v53 = vor.u32 %v5544_v4, %v4911_v51  ;;  %2950 = vmatpush.bf16.msra.mxu3 %v4752_v11  ;;  %v4785_v36 = vld [vmem:[#allocation6 + $0xd8] sm:$0xf0]  ;;  %v4880_v51 = vor.u32 %v5536_v42, %v4879_v22  ;;  %v4681_v42 = vld [vmem:[#allocation6 + $0x8] sm:$0xf0]  ;;  %v7619_v29 = vld [vmem:[%s7677_s9] sm:$0xf] }
 0x3e4   :  { %2938 = vmatpush.bf16.msra.mxu2 %v4680_v56  ;;  %v4808_v56 = vor.u32 %v5518_v5, %v4807_v55  ;;  %v5541_v55 = vld [vmem:[#allocation6 + $0x1c4] sm:$0xf]  ;;  %v4905_v5 = vld [vmem:[#allocation6 + $0x1c8] sm:$0xf0] }
 0x3e7   :  { %2972 = vmatpush.bf16.msrb.mxu1 %v4912_v53  ;;  %2951 = vmatpush.bf16.msra.mxu3 %v4744_v60  ;;  %v4872_v60 = vor.u32 %v5534_v57, %v4871_v10  ;;  %v4908_v10 = vor.u32 %v5541_v55, %v4905_v5  ;;  %v4833_v57 = vld [vmem:[#allocation6 + $0x138] sm:$0xf0] }
 0x3eb   :  { %2973 = vmatpush.bf16.msrb.mxu1 %v4904_v63  ;;  %v4772_v63 = vor.u32 %v5507_v47, %v4769_v61 }
 0x3ef   :  { %v2291_v0 = vpop.f32.mrf.mxu0  ;;  %v2304_v1 = vpop.f32.mrf.mxu1  ;;  %2974 = vmatpush.bf16.msrb.mxu1 %v4896_v17  ;;  %v4700_v17 = vor.u32 %v5489_v7, %v4697_v8 }
 0x3f4   :  { %v2265_v18 = vpop.f32.mrf.mxu2  ;;  %v2278_v45 = vpop.f32.mrf.mxu3 }
 0x3f5   :  { %v2266_v23 = vadd.f32 %v2265_v18, %v2253_v44  ;;  %v5528_v44 = vld [vmem:[#allocation6 + $0x154] sm:$0xf0]  ;;  %v5497_v18 = vld [vmem:[#allocation6 + $0x64] sm:$0xf] }
 0x3f6   :  { %v4848_v49 = vor.u32 %v5528_v44, %v4847_v43  ;;  %v5493_v43 = vld [vmem:[#allocation6 + $0x44] sm:$0xf]  ;;  %v4713_v44 = vld [vmem:[#allocation6 + $0x48] sm:$0xf0] }
 0x3f7   :  { %v2279_v32 = vadd.f32 %v2278_v45, %v2266_v23  ;;  %v2293_v33 = vpop.f32.mrf.mxu0  ;;  %v2306_v34 = vpop.f32.mrf.mxu1  ;;  %v4729_v45 = vld [vmem:[#allocation6 + $0x68] sm:$0xf0]  ;;  %v4823_v23 = vld [vmem:[#allocation6 + $0x120] sm:$0xf]  ;;  %v4716_v4 = vor.u32 %v5493_v43, %v4713_v44  ;;  %v5501_v43 = vld [vmem:[#allocation6 + $0x84] sm:$0xf] }
 0x3f8   :  { %2959 = vmatpush.bf16.msrb.mxu0 %v4848_v49  ;;  %v4732_v19 = vor.u32 %v5497_v18, %v4729_v45  ;;  %v4824_v27 = vor.u32 %v5522_v54, %v4823_v23  ;;  %v4724_v33 = vor.u32 %v5495_v30, %v4721_v31  ;;  %v5511_v34 = vld [vmem:[#allocation6 + $0xd4] sm:$0xf]  ;;  %v4761_v18 = vld [vmem:[#allocation6 + $0xa8] sm:$0xf0]  ;;  %v5529_v45 = vld [vmem:[#allocation6 + $0x164] sm:$0xf] }
 0x3f9   :  { %v2292_v37 = vadd.f32 %v2291_v0, %v2279_v32  ;;  %v4737_v0 = vld [vmem:[#allocation6 + $0x78] sm:$0xf0]  ;;  %v4888_v32 = vor.u32 %v5538_v28, %v4887_v24  ;;  %v5487_v24 = vld [vmem:[#allocation6 + $0x14] sm:$0xf] }
 0x3fa   :  { %v4740_v3 = vor.u32 %v5499_v62, %v4737_v0  ;;  %v5531_v62 = vld [vmem:[#allocation6 + $0x174] sm:$0xf]  ;;  %v4865_v0 = vld [vmem:[#allocation6 + $0x178] sm:$0xf0] }
 0x3fb   :  { %v7597_v46 = vadd.f32 %v2304_v1, %v2292_v37  ;;  %v5515_v1 = vld [vmem:[#allocation6 + $0xf4] sm:$0xf]  ;;  %v4788_v37 = vor.u32 %v5511_v34, %v4785_v36  ;;  %2975 = vmatpush.bf16.msrb.mxu1 %v4888_v32  ;;  %v4753_v28 = vld [vmem:[#allocation6 + $0x98] sm:$0xf0] }
 0x3fc   :  { %v2267_v52 = vpop.f32.mrf.mxu2  ;;  %v2280_v35 = vpop.f32.mrf.mxu3  ;;  %2960 = vmatpush.bf16.msrb.mxu0 %v4840_v41  ;;  %v4804_v6 = vor.u32 %v5515_v1, %v4801_v2  ;;  %2983 = vmatpush.bf16.msrb.mxu2 %v4740_v3  ;;  %v4708_v41 = vor.u32 %v5491_v12, %v4705_v40  ;;  %v5547_v1 = vld [vmem:[#allocation6 + $0x1f4] sm:$0xf]  ;;  %v4929_v2 = vld [vmem:[#allocation6 + $0x1f8] sm:$0xf0]  ;;  %v4868_v3 = vor.u32 %v5531_v62, %v4865_v0  ;;  %v2446_v62 = vperm.slane %v7619_v29, 0 }
 0x3fd   :  { %v5509_v52 = vld [vmem:[#allocation6 + $0xc4] sm:$0xf]  ;;  %v4777_v35 = vld [vmem:[#allocation6 + $0xc8] sm:$0xf0]  ;;  %v5527_v30 = vld [vmem:[#allocation6 + $0x154] sm:$0xf] }
 0x3fe   :  { %2996 = vmatpush.bf16.msrb.mxu3 %v4804_v6  ;;  %v4780_v53 = vor.u32 %v5509_v52, %v4777_v35  ;;  %v4932_v6 = vor.u32 %v5547_v1, %v4929_v2  ;;  %v4849_v31 = vld [vmem:[#allocation6 + $0x158] sm:$0xf0]  ;;  %v4841_v52 = vld [vmem:[#allocation6 + $0x148] sm:$0xf0]  ;;  %v5539_v12 = vld [vmem:[#allocation6 + $0x1b4] sm:$0xf] }
 0x3ff   :  { %v7599_v58 = vpop.f32.mrf.mxu0  ;;  %v7601_v59 = vpop.f32.mrf.mxu1  ;;  %2976 = vmatpush.bf16.msrb.mxu1 %v4880_v51  ;;  %v4852_v36 = vor.u32 %v5527_v30, %v4849_v31  ;;  %v4745_v51 = vld [vmem:[#allocation6 + $0x88] sm:$0xf0]  ;;  %v5521_v1 = vld [vmem:[#allocation6 + $0x124] sm:$0xf] }
 0x400   :  { %2961 = vmatpush.bf16.msrb.mxu0 %v4832_v9  ;;  %2984 = vmatpush.bf16.msrb.mxu2 %v4732_v19  ;;  %v5505_v9 = vld [vmem:[#allocation6 + $0xa4] sm:$0xf]  ;;  %v4857_v19 = vld [vmem:[#allocation6 + $0x168] sm:$0xf0]  ;;  %v4748_v35 = vor.u32 %v5501_v43, %v4745_v51 }
 0x401   :  { %v4764_v50 = vor.u32 %v5505_v9, %v4761_v18  ;;  %v4860_v23 = vor.u32 %v5529_v45, %v4857_v19  ;;  %v4825_v2 = vld [vmem:[#allocation6 + $0x128] sm:$0xf0]  ;;  %v4817_v19 = vld [vmem:[#allocation6 + $0x118] sm:$0xf0] }
 0x402   :  { %2997 = vmatpush.bf16.msrb.mxu3 %v4796_v21  ;;  %v4921_v21 = vld [vmem:[#allocation6 + $0x1e8] sm:$0xf0] }
 0x403   :  { %2977 = vmatpush.bf16.msrb.mxu1 %v4872_v60  ;;  %v4924_v54 = vor.u32 %v5545_v20, %v4921_v21  ;;  %v4889_v9 = vld [vmem:[#allocation6 + $0x1a8] sm:$0xf0]  ;;  %v5535_v20 = vld [vmem:[#allocation6 + $0x194] sm:$0xf]  ;;  %v4881_v21 = vld [vmem:[#allocation6 + $0x198] sm:$0xf0] }
 0x404   :  { %v7603_v15 = vpop.f32.mrf.mxu2  ;;  %v7605_v16 = vpop.f32.mrf.mxu3  ;;  %2962 = vmatpush.bf16.msrb.mxu0 %v4824_v27  ;;  %2985 = vmatpush.bf16.msrb.mxu2 %v4724_v33 }
 0x405   :  { %v2331_v40 = vadd.f32 %v7605_v16, %v1481_v38  ;;  %v4828_v16 = vor.u32 %v5521_v1, %v4825_v2 }
 0x406   :  { %2998 = vmatpush.bf16.msrb.mxu3 %v4788_v37  ;;  %v5543_v37 = vld [vmem:[#allocation6 + $0x1d4] sm:$0xf] }
 0x407   :  { %v2345_v25 = vpop.f32.mrf.mxu0  ;;  %v2358_v26 = vpop.f32.mrf.mxu1  ;;  %3022 = vmatpush.bf16.msra.mxu1 %v4932_v6  ;;  %v4916_v22 = vor.u32 %v5543_v37, %v4913_v48  ;;  %v2344_v6 = vadd.f32 %v7599_v58, %v2331_v40  ;;  %v4884_v58 = vor.u32 %v5535_v20, %v4881_v21  ;;  %v5175_v21 = vld [vmem:[#allocation8 + $0x1e0] sm:$0xf] }
 0x408   :  { %2963 = vmatpush.bf16.msrb.mxu0 %v4816_v39  ;;  %2986 = vmatpush.bf16.msrb.mxu2 %v4716_v4  ;;  %v4689_v25 = vld [vmem:[#allocation6 + $0x18] sm:$0xf0]  ;;  %v5503_v26 = vld [vmem:[#allocation6 + $0x94] sm:$0xf]  ;;  %v5485_v39 = vld [vmem:[#allocation6 + $0x4] sm:$0xf] }
 0x409   :  { %v4692_v27 = vor.u32 %v5487_v24, %v4689_v25  ;;  %v4756_v34 = vor.u32 %v5503_v26, %v4753_v28  ;;  %v5525_v4 = vld [vmem:[#allocation6 + $0x144] sm:$0xf]  ;;  %v4809_v25 = vld [vmem:[#allocation6 + $0x108] sm:$0xf0] }
 0x40a   :  { %2999 = vmatpush.bf16.msrb.mxu3 %v4780_v53  ;;  %v4844_v53 = vor.u32 %v5525_v4, %v4841_v52  ;;  %v5517_v24 = vld [vmem:[#allocation6 + $0x104] sm:$0xf]  ;;  %v4873_v28 = vld [vmem:[#allocation6 + $0x188] sm:$0xf0] }
 0x40b   :  { %3023 = vmatpush.bf16.msra.mxu1 %v4924_v54 }
 0x40c   :  { %v2319_v11 = vpop.f32.mrf.mxu2  ;;  %v2332_v49 = vpop.f32.mrf.mxu3  ;;  %2964 = vmatpush.bf16.msrb.mxu0 %v4808_v56  ;;  %2987 = vmatpush.bf16.msrb.mxu2 %v4708_v41  ;;  %v5523_v56 = vld [vmem:[#allocation6 + $0x134] sm:$0xf]  ;;  %v4897_v41 = vld [vmem:[#allocation6 + $0x1b8] sm:$0xf0] }
 0x40d   :  { %v4684_v49 = vor.u32 %v5485_v39, %v4681_v42  ;;  %v4836_v60 = vor.u32 %v5523_v56, %v4833_v57  ;;  %v4900_v0 = vor.u32 %v5539_v12, %v4897_v41  ;;  %v2448_v39 = vperm.slane %v7619_v29, 2  ;;  %v5564_v41 = vld [vmem:[#allocation8 + $0x74] sm:$0xf0] }
 0x40e   :  { %3000 = vmatpush.bf16.msrb.mxu3 %v4772_v63  ;;  %v2447_v63 = vperm.slane %v7619_v29, 1 }
 0x40f   :  { %3024 = vmatpush.bf16.msra.mxu1 %v4916_v22 }
 0x410   :  { %3009 = vmatpush.bf16.msra.mxu0 %v4868_v3  ;;  %2988 = vmatpush.bf16.msrb.mxu2 %v4700_v17  ;;  %v5537_v3 = vld [vmem:[#allocation6 + $0x1a4] sm:$0xf] }
 0x411   :  { %v4892_v45 = vor.u32 %v5537_v3, %v4889_v9  ;;  %v5183_v3 = vld [vmem:[#allocation8 + $0x1f0] sm:$0xf]  ;;  %v5047_v9 = vld [vmem:[#allocation8 + $0xe0] sm:$0xf] }
 0x412   :  { %3001 = vmatpush.bf16.msrb.mxu3 %v4764_v50  ;;  %v5519_v50 = vld [vmem:[#allocation6 + $0x114] sm:$0xf] }
 0x413   :  { %3025 = vmatpush.bf16.msra.mxu1 %v4908_v10  ;;  %v4820_v54 = vor.u32 %v5519_v50, %v4817_v19  ;;  %v5594_v50 = vld [vmem:[#allocation8 + $0x164] sm:$0xf0] }
 0x414   :  { %3010 = vmatpush.bf16.msra.mxu0 %v4860_v23  ;;  %2989 = vmatpush.bf16.msrb.mxu2 %v4692_v27  ;;  %v2357_v23 = vadd.f32 %v7601_v59, %v2344_v6  ;;  %v5533_v27 = vld [vmem:[#allocation6 + $0x184] sm:$0xf]  ;;  %v5612_v6 = vld [vmem:[#allocation8 + $0x1f4] sm:$0xf0] }
 0x415   :  { %v4876_v37 = vor.u32 %v5533_v27, %v4873_v28 }
 0x416   :  { %3002 = vmatpush.bf16.msrb.mxu3 %v4756_v34  ;;  %v4812_v34 = vor.u32 %v5517_v24, %v4809_v25  ;;  %v5560_v24 = vld [vmem:[#allocation8 + $0x54] sm:$0xf0]  ;;  %v5039_v25 = vld [vmem:[#allocation8 + $0xd0] sm:$0xf] }
 0x417   :  { %v7607_v13 = vpop.f32.mrf.mxu0  ;;  %v7609_v14 = vpop.f32.mrf.mxu1  ;;  %3026 = vmatpush.bf16.msra.mxu1 %v4900_v0  ;;  %v5596_v0 = vld [vmem:[#allocation8 + $0x174] sm:$0xf0] }
 0x418   :  { %3011 = vmatpush.bf16.msra.mxu0 %v4852_v36  ;;  %2990 = vmatpush.bf16.msrb.mxu2 %v4684_v49 }
 0x41a   :  { %3003 = vmatpush.bf16.msrb.mxu3 %v4748_v35  ;;  %v2318_v35 = vadd.f32 %v7603_v15, %v7597_v46  ;;  %v4991_v15 = vld [vmem:[#allocation8 + $0x70] sm:$0xf] }
 0x41b   :  { %3027 = vmatpush.bf16.msra.mxu1 %v4892_v45  ;;  %v5111_v45 = vld [vmem:[#allocation8 + $0x160] sm:$0xf] }
 0x41c   :  { %v7611_v32 = vpop.f32.mrf.mxu2  ;;  %v7613_v33 = vpop.f32.mrf.mxu3  ;;  %3012 = vmatpush.bf16.msra.mxu0 %v4844_v53  ;;  %v5112_v20 = vor.u32 %v5594_v50, %v5111_v45  ;;  %v5584_v45 = vld [vmem:[#allocation8 + $0x114] sm:$0xf0] }
 0x41d   :  { %v2370_v26 = vadd.f32 %v7611_v32, %v2357_v23  ;;  %v2449_v32 = vperm.slane %v7619_v29, 3  ;;  %v5610_v23 = vld [vmem:[#allocation8 + $0x1e4] sm:$0xf0] }
 0x41f   :  { %v2397_v44 = vpop.f32.mrf.mxu0  ;;  %v2410_v11 = vpop.f32.mrf.mxu1  ;;  %3028 = vmatpush.bf16.msra.mxu1 %v4884_v58  ;;  %v2383_v59 = vadd.f32 %v7613_v33, %v2370_v26  ;;  %v5176_v58 = vor.u32 %v5610_v23, %v5175_v21  ;;  %v5576_v26 = vld [vmem:[#allocation8 + $0xd4] sm:$0xf0] }
 0x420   :  { %3013 = vmatpush.bf16.msra.mxu0 %v4836_v60  ;;  %v5040_v28 = vor.u32 %v5576_v26, %v5039_v25  ;;  %v5600_v21 = vld [vmem:[#allocation8 + $0x194] sm:$0xf0]  ;;  %v4935_v26 = vld [vmem:[#allocation8] sm:$0xf] }
 0x421   :  { %v2396_v42 = vadd.f32 %v7607_v13, %v2383_v59  ;;  %v4967_v59 = vld [vmem:[#allocation8 + $0x40] sm:$0xf] }
 0x423   :  { %3029 = vmatpush.bf16.msra.mxu1 %v4876_v37  ;;  %v2409_v51 = vadd.f32 %v7609_v14, %v2396_v42  ;;  %v5608_v37 = vld [vmem:[#allocation8 + $0x1d4] sm:$0xf0]  ;;  %v5095_v42 = vld [vmem:[#allocation8 + $0x140] sm:$0xf] }
 0x424   :  { %v2371_v47 = vpop.f32.mrf.mxu2  ;;  %v2384_v61 = vpop.f32.mrf.mxu3  ;;  %3014 = vmatpush.bf16.msra.mxu0 %v4828_v16  ;;  %v5562_v16 = vld [vmem:[#allocation8 + $0x64] sm:$0xf0] }
 0x425   :  { %v5055_v47 = vld [vmem:[#allocation8 + $0xf0] sm:$0xf]  ;;  %v4992_v61 = vor.u32 %v5564_v41, %v4991_v15  ;;  %v5015_v15 = vld [vmem:[#allocation8 + $0xa0] sm:$0xf] }
 0x427   :  { %v2490_v7 = vpop.f32.mrf.mxu0  ;;  %v2503_v8 = vpop.f32.mrf.mxu1 }
 0x428   :  { %v2491_v17 = vadd.f32 %v2490_v7, %v2446_v62  ;;  %v2504_v18 = vadd.f32 %v2503_v8, %v2447_v63  ;;  %3015 = vmatpush.bf16.msra.mxu0 %v4820_v54  ;;  %v5580_v62 = vld [vmem:[#allocation8 + $0xf4] sm:$0xf0]  ;;  %v5119_v63 = vld [vmem:[#allocation8 + $0x170] sm:$0xf]  ;;  %v5184_v7 = vor.u32 %v5612_v6, %v5183_v3  ;;  %v4983_v8 = vld [vmem:[#allocation8 + $0x60] sm:$0xf] }
 0x429   :  { %v5056_v1 = vor.u32 %v5580_v62, %v5055_v47  ;;  %v5120_v2 = vor.u32 %v5596_v0, %v5119_v63  ;;  %v4975_v54 = vld [vmem:[#allocation8 + $0x50] sm:$0xf]  ;;  %v5570_v47 = vld [vmem:[#allocation8 + $0xa4] sm:$0xf0]  ;;  %v7642_v3 = vld [vmem:[%s7679_s11] sm:$0x3] }
 0x42a   :  { %5663 = vtanh.f32 %v2491_v17  ;;  %v4984_v17 = vor.u32 %v5562_v16, %v4983_v8  ;;  %v4976_v27 = vor.u32 %v5560_v24, %v4975_v54  ;;  %v5586_v62 = vld [vmem:[#allocation8 + $0x124] sm:$0xf0]  ;;  %v5016_v63 = vor.u32 %v5570_v47, %v5015_v15  ;;  %v5552_v8 = vld [vmem:[#allocation8 + $0x14] sm:$0xf0]  ;;  %v5007_v16 = vld [vmem:[#allocation8 + $0x90] sm:$0xf] }
 0x42b   :  { %5665 = vtanh.f32 %v2504_v18  ;;  %v5578_v18 = vld [vmem:[#allocation8 + $0xe4] sm:$0xf0]  ;;  %v2607_v23 = vperm.slane %v7642_v3, 0  ;;  %v5609_v15 = vld [vmem:[#allocation8 + $0x1e4] sm:$0xf] }
 0x42c   :  { %3016 = vmatpush.bf16.msra.mxu0 %v4812_v34  ;;  %v5048_v19 = vor.u32 %v5578_v18, %v5047_v9  ;;  %v5167_v34 = vld [vmem:[#allocation8 + $0x1d0] sm:$0xf] }
 0x42d   :  { %v5071_v18 = vld [vmem:[#allocation8 + $0x110] sm:$0xf] }
 0x42f   :  { %v2492_v30 = vpop.f32.mrf.mxu0  ;;  %v2505_v31 = vpop.f32.mrf.mxu1 }
 0x430   :  { %v5664_v36 = vpop.eup %5663  ;;  %v5103_v30 = vld [vmem:[#allocation8 + $0x150] sm:$0xf]  ;;  %v5592_v31 = vld [vmem:[#allocation8 + $0x154] sm:$0xf0] }
 0x431   :  { %v5666_v48 = vpop.eup %5665  ;;  %v2537_v38 = vpack.c.bf16 %v5664_v36, %v5664_v36  ;;  %v5104_v36 = vor.u32 %v5592_v31, %v5103_v30 }
 0x432   :  { %v2538_v22 = vpack.c.bf16 %v5666_v48, %v5666_v48  ;;  %v5168_v48 = vor.u32 %v5608_v37, %v5167_v34  ;;  %v5566_v34 = vld [vmem:[#allocation8 + $0x84] sm:$0xf0] }
 0x433   :  { %2939 = vmatmul.bf16.vlgmr.msra.gmra.mxu2 %v2537_v38  ;;  %v5582_v37 = vld [vmem:[#allocation8 + $0x104] sm:$0xf0] }
 0x434   :  { %2952 = vmatmul.bf16.vlgmr.msra.gmra.mxu3 %v2538_v22  ;;  %3454 = vmatpush.bf16.msra.mxu2 %v4992_v61  ;;  %v5079_v61 = vld [vmem:[#allocation8 + $0x120] sm:$0xf] }
 0x435   :  { %3467 = vmatpush.bf16.msra.mxu3 %v5056_v1  ;;  %v5080_v0 = vor.u32 %v5586_v62, %v5079_v61  ;;  %v5143_v1 = vld [vmem:[#allocation8 + $0x1a0] sm:$0xf] }
 0x437   :  { %v2516_v43 = vpop.f32.mrf.mxu0  ;;  %v2529_v44 = vpop.f32.mrf.mxu1 }
 0x438   :  { %v2517_v11 = vadd.f32 %v2516_v43, %v2448_v39  ;;  %v2530_v49 = vadd.f32 %v2529_v44, %v2449_v32  ;;  %3455 = vmatpush.bf16.msra.mxu2 %v4984_v17  ;;  %v5574_v32 = vld [vmem:[#allocation8 + $0xc4] sm:$0xf0]  ;;  %v5568_v17 = vld [vmem:[#allocation8 + $0x94] sm:$0xf0] }
 0x439   :  { %3468 = vmatpush.bf16.msra.mxu3 %v5048_v19  ;;  %v5590_v43 = vld [vmem:[#allocation8 + $0x144] sm:$0xf0]  ;;  %v5008_v50 = vor.u32 %v5568_v17, %v5007_v16  ;;  %v5072_v19 = vor.u32 %v5584_v45, %v5071_v18  ;;  %v5607_v45 = vld [vmem:[#allocation8 + $0x1d4] sm:$0xf] }
 0x43a   :  { %5667 = vtanh.f32 %v2517_v11  ;;  %v2421_v33 = vpop.f32.mrf.mxu2  ;;  %v2434_v4 = vpop.f32.mrf.mxu3  ;;  %v5096_v11 = vor.u32 %v5590_v43, %v5095_v42  ;;  %v4993_v43 = vld [vmem:[#allocation8 + $0x78] sm:$0xf0] }
 0x43b   :  { %5669 = vtanh.f32 %v2530_v49  ;;  %v2422_v52 = vadd.f32 %v2421_v33, %v2409_v51  ;;  %v5159_v49 = vld [vmem:[#allocation8 + $0x1c0] sm:$0xf]  ;;  %v5606_v51 = vld [vmem:[#allocation8 + $0x1c4] sm:$0xf0] }
 0x43c   :  { %3456 = vmatpush.bf16.msra.mxu2 %v4976_v27  ;;  %v5160_v33 = vor.u32 %v5606_v51, %v5159_v49  ;;  %v5550_v27 = vld [vmem:[#allocation8 + $0x4] sm:$0xf0] }
 0x43d   :  { %v2435_v53 = vadd.f32 %v2434_v4, %v2422_v52  ;;  %3469 = vmatpush.bf16.msra.mxu3 %v5040_v28  ;;  %v4959_v4 = vld [vmem:[#allocation8 + $0x30] sm:$0xf]  ;;  %v5556_v52 = vld [vmem:[#allocation8 + $0x34] sm:$0xf0]  ;;  %v4999_v28 = vld [vmem:[#allocation8 + $0x80] sm:$0xf]  ;;  %v4936_v31 = vor.u32 %v5550_v27, %v4935_v26 }
 0x43e   :  { %v5589_v27 = vld [vmem:[#allocation8 + $0x144] sm:$0xf] }
 0x43f   :  { %5671 = vtanh.f32 %v2435_v53  ;;  %v2518_v55 = vpop.f32.mrf.mxu0  ;;  %v2531_v5 = vpop.f32.mrf.mxu1  ;;  %v4960_v53 = vor.u32 %v5556_v52, %v4959_v4  ;;  %v5121_v4 = vld [vmem:[#allocation8 + $0x178] sm:$0xf0]  ;;  %v5611_v52 = vld [vmem:[#allocation8 + $0x1f4] sm:$0xf] }
 0x440   :  { %v5668_v29 = vpop.eup %5667  ;;  %5673 = vtanh.f32 %v2318_v35  ;;  %v5023_v35 = vld [vmem:[#allocation8 + $0xb0] sm:$0xf]  ;;  %v5572_v55 = vld [vmem:[#allocation8 + $0xb4] sm:$0xf0] }
 0x441   :  { %v5670_v13 = vpop.eup %5669  ;;  %v2539_v10 = vpack.c.bf16 %v5668_v29, %v5668_v29  ;;  %v5087_v5 = vld [vmem:[#allocation8 + $0x130] sm:$0xf]  ;;  %v5588_v29 = vld [vmem:[#allocation8 + $0x134] sm:$0xf0] }
 0x442   :  { %v2540_v56 = vpack.c.bf16 %v5670_v13, %v5670_v13  ;;  %v2423_v57 = vpop.f32.mrf.mxu2  ;;  %v2436_v12 = vpop.f32.mrf.mxu3  ;;  %v5024_v13 = vor.u32 %v5572_v55, %v5023_v35  ;;  %v5561_v55 = vld [vmem:[#allocation8 + $0x64] sm:$0xf] }
 0x443   :  { %2965 = vmatmul.bf16.vlgmr.msrb.gmra.mxu0 %v2539_v10  ;;  %2991 = vmatmul.bf16.vlgmr.msrb.gmra.mxu2 %v2537_v38  ;;  %v5558_v38 = vld [vmem:[#allocation8 + $0x44] sm:$0xf0]  ;;  %v5604_v57 = vld [vmem:[#allocation8 + $0x1b4] sm:$0xf0] }
 0x444   :  { %2978 = vmatmul.bf16.vlgmr.msrb.gmra.mxu1 %v2540_v56  ;;  %3004 = vmatmul.bf16.vlgmr.msrb.gmra.mxu3 %v2538_v22  ;;  %v5031_v22 = vld [vmem:[#allocation8 + $0xc0] sm:$0xf]  ;;  %v4968_v39 = vor.u32 %v5558_v38, %v4967_v59  ;;  %v5000_v59 = vor.u32 %v5566_v34, %v4999_v28  ;;  %v5161_v28 = vld [vmem:[#allocation8 + $0x1c8] sm:$0xf0] }
 0x445   :  { %v5672_v14 = vpop.eup %5671  ;;  %3480 = vmatpush.bf16.msrb.mxu0 %v5120_v2  ;;  %3493 = vmatpush.bf16.msrb.mxu1 %v5184_v7  ;;  %v5032_v44 = vor.u32 %v5574_v32, %v5031_v22  ;;  %v5602_v2 = vld [vmem:[#allocation8 + $0x1a4] sm:$0xf0]  ;;  %v4943_v7 = vld [vmem:[#allocation8 + $0x10] sm:$0xf]  ;;  %v5127_v22 = vld [vmem:[#allocation8 + $0x180] sm:$0xf] }
 0x446   :  { %v3039_v40 = vrot.slane %v5672_v14, 6  ;;  %v5674_v60 = vpop.eup %5673  ;;  %3457 = vmatpush.bf16.msra.mxu2 %v4968_v39  ;;  %v5144_v6 = vor.u32 %v5602_v2, %v5143_v1  ;;  %v4944_v9 = vor.u32 %v5552_v8, %v4943_v7  ;;  %v5598_v39 = vld [vmem:[#allocation8 + $0x184] sm:$0xf0]  ;;  %v5563_v32 = vld [vmem:[#allocation8 + $0x74] sm:$0xf] }
 0x447   :  { %3470 = vmatpush.bf16.msra.mxu3 %v5032_v44  ;;  %v5128_v42 = vor.u32 %v5598_v39, %v5127_v22  ;;  %v5579_v44 = vld [vmem:[#allocation8 + $0xf4] sm:$0xf]  ;;  %v4996_v49 = vor.u32 %v5563_v32, %v4993_v43  ;;  %v5105_v8 = vld [vmem:[#allocation8 + $0x158] sm:$0xf0] }
 0x448   :  { %v3040_v46 = vsel %vm552_vm5, %v5674_v60, %v3039_v40  ;;  %v4951_v60 = vld [vmem:[#allocation8 + $0x20] sm:$0xf]  ;;  %v5575_v1 = vld [vmem:[#allocation8 + $0xd4] sm:$0xf] }
 0x449   :  { %3042 = vst [vmem:[#allocation5] sm:$0xf] %v3040_v46  ;;  %3481 = vmatpush.bf16.msrb.mxu0 %v5112_v20  ;;  %3494 = vmatpush.bf16.msrb.mxu1 %v5176_v58  ;;  %v5554_v46 = vld [vmem:[#allocation8 + $0x24] sm:$0xf0]  ;;  %v5135_v20 = vld [vmem:[#allocation8 + $0x190] sm:$0xf] }
 0x44a   :  { %3458 = vmatpush.bf16.msra.mxu2 %v4960_v53  ;;  %v4952_v41 = vor.u32 %v5554_v46, %v4951_v60  ;;  %v2608_v58 = vperm.slane %v7642_v3, 1  ;;  %v5136_v24 = vor.u32 %v5600_v21, %v5135_v20  ;;  %v5185_v53 = vld [vmem:[#allocation8 + $0x1f8] sm:$0xf0]  ;;  %v5113_v46 = vld [vmem:[#allocation8 + $0x168] sm:$0xf0] }
 0x44b   :  { %3471 = vmatpush.bf16.msra.mxu3 %v5024_v13  ;;  %v5591_v7 = vld [vmem:[#allocation8 + $0x154] sm:$0xf]  ;;  %v4969_v21 = vld [vmem:[#allocation8 + $0x48] sm:$0xf0] }
 0x44c   :  { %v5108_v20 = vor.u32 %v5591_v7, %v5105_v8  ;;  %v5555_v32 = vld [vmem:[#allocation8 + $0x34] sm:$0xf]  ;;  %v5137_v8 = vld [vmem:[#allocation8 + $0x198] sm:$0xf0] }
 0x44d   :  { %3482 = vmatpush.bf16.msrb.mxu0 %v5104_v36  ;;  %3495 = vmatpush.bf16.msrb.mxu1 %v5168_v48  ;;  %v5063_v36 = vld [vmem:[#allocation8 + $0x100] sm:$0xf]  ;;  %v5571_v43 = vld [vmem:[#allocation8 + $0xb4] sm:$0xf] }
 0x44e   :  { %3459 = vmatpush.bf16.msra.mxu2 %v4952_v41  ;;  %v5064_v38 = vor.u32 %v5582_v37, %v5063_v36  ;;  %v5177_v41 = vld [vmem:[#allocation8 + $0x1e8] sm:$0xf0]  ;;  %v5599_v7 = vld [vmem:[#allocation8 + $0x194] sm:$0xf] }
 0x44f   :  { %3472 = vmatpush.bf16.msra.mxu3 %v5016_v63  ;;  %v5180_v62 = vor.u32 %v5609_v15, %v5177_v41  ;;  %v5559_v63 = vld [vmem:[#allocation8 + $0x54] sm:$0xf]  ;;  %v5145_v41 = vld [vmem:[#allocation8 + $0x1a8] sm:$0xf0] }
 0x451   :  { %3483 = vmatpush.bf16.msrb.mxu0 %v5096_v11  ;;  %3496 = vmatpush.bf16.msrb.mxu1 %v5160_v33  ;;  %v5057_v11 = vld [vmem:[#allocation8 + $0xf8] sm:$0xf0]  ;;  %v5595_v33 = vld [vmem:[#allocation8 + $0x174] sm:$0xf] }
 0x452   :  { %3460 = vmatpush.bf16.msra.mxu2 %v4944_v9  ;;  %v5060_v51 = vor.u32 %v5579_v44, %v5057_v11  ;;  %v5124_v35 = vor.u32 %v5595_v33, %v5121_v4  ;;  %v5089_v33 = vld [vmem:[#allocation8 + $0x138] sm:$0xf0] }
 0x453   :  { %3017 = vmatmul.bf16.vlgmr.msra.gmra.mxu0 %v2539_v10  ;;  %v5088_v10 = vor.u32 %v5588_v29, %v5087_v5  ;;  %3473 = vmatpush.bf16.msra.mxu3 %v5008_v50  ;;  %v4985_v5 = vld [vmem:[#allocation8 + $0x68] sm:$0xf0]  ;;  %v5188_v29 = vor.u32 %v5611_v52, %v5185_v53  ;;  %v5169_v50 = vld [vmem:[#allocation8 + $0x1d8] sm:$0xf0]  ;;  %v5553_v53 = vld [vmem:[#allocation8 + $0x24] sm:$0xf] }
 0x454   :  { %3030 = vmatmul.bf16.vlgmr.msra.gmra.mxu1 %v2540_v56  ;;  %v5151_v56 = vld [vmem:[#allocation8 + $0x1b0] sm:$0xf]  ;;  %v4988_v13 = vor.u32 %v5561_v55, %v4985_v5  ;;  %v5172_v26 = vor.u32 %v5607_v45, %v5169_v50  ;;  %v4937_v50 = vld [vmem:[#allocation8 + $0x8] sm:$0xf0] }
 0x455   :  { %v5152_v14 = vor.u32 %v5604_v57, %v5151_v56  ;;  %3484 = vmatpush.bf16.msrb.mxu0 %v5088_v10  ;;  %v5577_v10 = vld [vmem:[#allocation8 + $0xe4] sm:$0xf]  ;;  %v5049_v56 = vld [vmem:[#allocation8 + $0xe8] sm:$0xf0] }
 0x456   :  { %3461 = vmatpush.bf16.msra.mxu2 %v4936_v31  ;;  %v5593_v57 = vld [vmem:[#allocation8 + $0x164] sm:$0xf]  ;;  %v5052_v60 = vor.u32 %v5577_v10, %v5049_v56  ;;  %v5017_v56 = vld [vmem:[#allocation8 + $0xa8] sm:$0xf0] }
 0x457   :  { %3497 = vmatpush.bf16.msrb.mxu1 %v5152_v14  ;;  %3474 = vmatpush.bf16.msra.mxu3 %v5000_v59  ;;  %v5116_v61 = vor.u32 %v5593_v57, %v5113_v46  ;;  %v5569_v10 = vld [vmem:[#allocation8 + $0xa4] sm:$0xf] }
 0x458   :  { %v5585_v57 = vld [vmem:[#allocation8 + $0x124] sm:$0xf]  ;;  %v5020_v15 = vor.u32 %v5569_v10, %v5017_v56  ;;  %v5622_v10 = vld [vmem:[#allocation10 + $0x48] sm:$0xff] }
 0x459   :  { %3485 = vmatpush.bf16.msrb.mxu0 %v5080_v0  ;;  %v4977_v0 = vld [vmem:[#allocation8 + $0x58] sm:$0xf0] }
 0x45a   :  { %3506 = vmatpush.bf16.msrb.mxu2 %v4996_v49  ;;  %v4980_v17 = vor.u32 %v5559_v63, %v4977_v0  ;;  %v5025_v49 = vld [vmem:[#allocation8 + $0xb8] sm:$0xf0] }
 0x45b   :  { %3498 = vmatpush.bf16.msrb.mxu1 %v5144_v6  ;;  %3519 = vmatpush.bf16.msrb.mxu3 %v5060_v51  ;;  %v5041_v6 = vld [vmem:[#allocation8 + $0xd8] sm:$0xf0]  ;;  %v5587_v51 = vld [vmem:[#allocation8 + $0x134] sm:$0xf]  ;;  %v5028_v4 = vor.u32 %v5571_v43, %v5025_v49  ;;  %v5617_v49 = vld [vmem:[#allocation10 + $0x20] sm:$0xff] }
 0x45c   :  { %v5044_v18 = vor.u32 %v5575_v1, %v5041_v6  ;;  %v5092_v52 = vor.u32 %v5587_v51, %v5089_v33  ;;  %v5009_v63 = vld [vmem:[#allocation8 + $0x98] sm:$0xf0]  ;;  %v5583_v1 = vld [vmem:[#allocation8 + $0x114] sm:$0xf] }
 0x45d   :  { %3486 = vmatpush.bf16.msrb.mxu0 %v5072_v19  ;;  %v5557_v19 = vld [vmem:[#allocation8 + $0x44] sm:$0xf]  ;;  %v5616_v51 = vld [vmem:[#allocation10 + $0x18] sm:$0xff] }
 0x45e   :  { %3507 = vmatpush.bf16.msrb.mxu2 %v4988_v13  ;;  %v4972_v34 = vor.u32 %v5557_v19, %v4969_v21  ;;  %v4953_v13 = vld [vmem:[#allocation8 + $0x28] sm:$0xf0]  ;;  %v5565_v19 = vld [vmem:[#allocation8 + $0x84] sm:$0xf]  ;;  %v5628_v33 = vld [vmem:[#allocation10 + $0x78] sm:$0xff] }
 0x45f   :  { %3499 = vmatpush.bf16.msrb.mxu1 %v5136_v24  ;;  %3520 = vmatpush.bf16.msrb.mxu3 %v5052_v60  ;;  %v5033_v24 = vld [vmem:[#allocation8 + $0xc8] sm:$0xf0]  ;;  %v5601_v60 = vld [vmem:[#allocation8 + $0x1a4] sm:$0xf]  ;;  %v4956_v46 = vor.u32 %v5553_v53, %v4953_v13  ;;  %v3128_v13 = vld [vmem:[%s7681_s13] sm:$0x3] }
 0x460   :  { %v5148_v0 = vor.u32 %v5601_v60, %v5145_v41  ;;  %v5613_v53 = vld [vmem:[#allocation10] sm:$0xff] }
 0x461   :  { %3487 = vmatpush.bf16.msrb.mxu0 %v5064_v38  ;;  %v5621_v60 = vld [vmem:[#allocation10 + $0x40] sm:$0xff] }
 0x462   :  { %3508 = vmatpush.bf16.msrb.mxu2 %v4980_v17 }
 0x463   :  { %3500 = vmatpush.bf16.msrb.mxu1 %v5128_v42  ;;  %3521 = vmatpush.bf16.msrb.mxu3 %v5044_v18  ;;  %v4961_v42 = vld [vmem:[#allocation8 + $0x38] sm:$0xf0]  ;;  %v5549_v18 = vld [vmem:[#allocation8 + $0x4] sm:$0xf] }
 0x465   :  { %3532 = vmatpush.bf16.msra.mxu0 %v5124_v35  ;;  %v5153_v35 = vld [vmem:[#allocation8 + $0x1b8] sm:$0xf0] }
 0x466   :  { %3509 = vmatpush.bf16.msrb.mxu2 %v4972_v34 }
 0x467   :  { %3545 = vmatpush.bf16.msra.mxu1 %v5188_v29 }
 0x469   :  { %3533 = vmatpush.bf16.msra.mxu0 %v5116_v61 }
 0x46b   :  { %3546 = vmatpush.bf16.msra.mxu1 %v5180_v62  ;;  %v4945_v62 = vld [vmem:[#allocation8 + $0x18] sm:$0xf0] }
 0x46d   :  { %3534 = vmatpush.bf16.msra.mxu0 %v5108_v20  ;;  %v5001_v20 = vld [vmem:[#allocation8 + $0x88] sm:$0xf0] }
 0x46f   :  { %3547 = vmatpush.bf16.msra.mxu1 %v5172_v26 }
 0x4b6   :  { %v7635_v12 = vpop.f32.mrf.mxu2 }
 0x4b7   :  { %v7637_v40 = vpop.f32.mrf.mxu3  ;;  %v2941_v16 = vadd.f32 %v7635_v12, %v2607_v23  ;;  %v5097_v12 = vld [vmem:[#allocation8 + $0x148] sm:$0xf0]  ;;  %v5605_v23 = vld [vmem:[#allocation8 + $0x1c4] sm:$0xf] }
 0x4b8   :  { %v5100_v59 = vor.u32 %v5589_v27, %v5097_v12  ;;  %v5597_v27 = vld [vmem:[#allocation8 + $0x184] sm:$0xf]  ;;  %v5129_v12 = vld [vmem:[#allocation8 + $0x188] sm:$0xf0] }
 0x4b9   :  { %v2954_v31 = vadd.f32 %v7637_v40, %v2941_v16  ;;  %v4964_v40 = vor.u32 %v5555_v32, %v4961_v42 }
 0x4ba   :  { %3535 = vmatpush.bf16.msra.mxu0 %v5100_v59 }
 0x4bb   :  { %3510 = vmatpush.bf16.msrb.mxu2 %v4964_v40  ;;  %v5618_v40 = vld [vmem:[#allocation10 + $0x28] sm:$0xff] }
 0x4be   :  { %v2942_v54 = vpop.f32.mrf.mxu2  ;;  %3536 = vmatpush.bf16.msra.mxu0 %v5092_v52  ;;  %v5627_v52 = vld [vmem:[#allocation10 + $0x70] sm:$0xff] }
 0x4bf   :  { %v2955_v25 = vpop.f32.mrf.mxu3  ;;  %v5573_v54 = vld [vmem:[#allocation8 + $0xc4] sm:$0xf]  ;;  %3511 = vmatpush.bf16.msrb.mxu2 %v4956_v46 }
 0x4c0   :  { %v7646_v30 = vpop.f32.mrf.mxu0  ;;  %v5036_v36 = vor.u32 %v5573_v54, %v5033_v24  ;;  %v5140_v54 = vor.u32 %v5599_v7, %v5137_v8  ;;  %v5581_v24 = vld [vmem:[#allocation8 + $0x104] sm:$0xf]  ;;  %v3131_v7 = vperm.slane %v3128_v13, 1 }
 0x4c1   :  { %v7648_v48 = vpop.f32.mrf.mxu1  ;;  %v2967_v38 = vadd.f32 %v7646_v30, %v2954_v31  ;;  %v5603_v30 = vld [vmem:[#allocation8 + $0x1b4] sm:$0xf]  ;;  %v5004_v31 = vor.u32 %v5565_v19, %v5001_v20 }
 0x4c2   :  { %3522 = vmatpush.bf16.msrb.mxu3 %v5036_v36  ;;  %v5156_v29 = vor.u32 %v5603_v30, %v5153_v35  ;;  %v5614_v30 = vld [vmem:[#allocation10 + $0x8] sm:$0xff] }
 0x4c3   :  { %v2980_v55 = vadd.f32 %v7648_v48, %v2967_v38  ;;  %v5567_v48 = vld [vmem:[#allocation8 + $0x94] sm:$0xf]  ;;  %v5620_v38 = vld [vmem:[#allocation10 + $0x38] sm:$0xff]  ;;  %v5626_v35 = vld [vmem:[#allocation10 + $0x68] sm:$0xff] }
 0x4c4   :  { %v5012_v17 = vor.u32 %v5567_v48, %v5009_v63 }
 0x4c6   :  { %v2992_v14 = vpop.f32.mrf.mxu2  ;;  %3523 = vmatpush.bf16.msrb.mxu3 %v5028_v4  ;;  %v5615_v4 = vld [vmem:[#allocation10 + $0x10] sm:$0xff] }
 0x4c7   :  { %v3005_v47 = vpop.f32.mrf.mxu3  ;;  %v2993_v25 = vadd.f32 %v2992_v14, %v2608_v58  ;;  %v5164_v58 = vor.u32 %v5605_v23, %v5161_v28  ;;  %v5081_v14 = vld [vmem:[#allocation8 + $0x128] sm:$0xf0]  ;;  %v4940_v28 = vor.u32 %v5549_v18, %v4937_v50 }
 0x4c8   :  { %v2968_v2 = vpop.f32.mrf.mxu0  ;;  %v5084_v61 = vor.u32 %v5585_v57, %v5081_v14  ;;  %v3130_v14 = vperm.slane %v3128_v13, 0 }
 0x4c9   :  { %v2981_v9 = vpop.f32.mrf.mxu1  ;;  %v3006_v22 = vadd.f32 %v3005_v47, %v2993_v25  ;;  %3548 = vmatpush.bf16.msra.mxu1 %v5164_v58  ;;  %v5551_v47 = vld [vmem:[#allocation8 + $0x14] sm:$0xf]  ;;  %v5073_v2 = vld [vmem:[#allocation8 + $0x118] sm:$0xf0]  ;;  %v5065_v25 = vld [vmem:[#allocation8 + $0x108] sm:$0xf0] }
 0x4ca   :  { %3524 = vmatpush.bf16.msrb.mxu3 %v5020_v15  ;;  %v4948_v9 = vor.u32 %v5551_v47, %v4945_v62  ;;  %3537 = vmatpush.bf16.msra.mxu0 %v5084_v61  ;;  %v5076_v45 = vor.u32 %v5583_v1, %v5073_v2  ;;  %v5068_v36 = vor.u32 %v5581_v24, %v5065_v25 }
 0x4cc   :  { %3512 = vmatpush.bf16.msrb.mxu2 %v4948_v9 }
 0x4cd   :  { %3549 = vmatpush.bf16.msra.mxu1 %v5156_v29  ;;  %v5623_v29 = vld [vmem:[#allocation10 + $0x50] sm:$0xff] }
 0x4ce   :  { %v2994_v37 = vpop.f32.mrf.mxu2  ;;  %3525 = vmatpush.bf16.msrb.mxu3 %v5012_v17  ;;  %3538 = vmatpush.bf16.msra.mxu0 %v5076_v45 }
 0x4cf   :  { %v3007_v3 = vpop.f32.mrf.mxu3  ;;  %v5132_v37 = vor.u32 %v5597_v27, %v5129_v12 }
 0x4d0   :  { %v3018_v39 = vpop.f32.mrf.mxu0  ;;  %3513 = vmatpush.bf16.msrb.mxu2 %v4940_v28 }
 0x4d1   :  { %v3019_v44 = vadd.f32 %v3018_v39, %v3006_v22  ;;  %v3031_v11 = vpop.f32.mrf.mxu1  ;;  %3550 = vmatpush.bf16.msra.mxu1 %v5148_v0 }
 0x4d2   :  { %3526 = vmatpush.bf16.msrb.mxu3 %v5004_v31  ;;  %3539 = vmatpush.bf16.msra.mxu0 %v5068_v36 }
 0x4d3   :  { %v3032_v5 = vadd.f32 %v3031_v11, %v3019_v44  ;;  %v5619_v11 = vld [vmem:[#allocation10 + $0x30] sm:$0xff] }
 0x4d5   :  { %5675 = vtanh.f32 %v3032_v5  ;;  %3551 = vmatpush.bf16.msra.mxu1 %v5140_v54  ;;  %v5624_v5 = vld [vmem:[#allocation10 + $0x58] sm:$0xff] }
 0x4d6   :  { %5677 = vtanh.f32 %v2980_v55  ;;  %v5625_v55 = vld [vmem:[#allocation10 + $0x60] sm:$0xff] }
 0x4d8   :  { %v3020_v6 = vpop.f32.mrf.mxu0 }
 0x4d9   :  { %v3033_v16 = vpop.f32.mrf.mxu1  ;;  %3552 = vmatpush.bf16.msra.mxu1 %v5132_v37 }
 0x4db   :  { %v5676_v21 = vpop.eup %5675 }
 0x4dc   :  { %v3045_v26 = vrot.slane %v5676_v21, 6  ;;  %v5678_v23 = vpop.eup %5677 }
 0x4de   :  { %v3046_v34 = vsel %vm552_vm5, %v5678_v23, %v3045_v26  ;;  %v5642_v23 = vld [vmem:[%s7683_s15] ss:$0 sm:$0xff] }
 0x4df   :  { %3048 = vst [vmem:[#allocation5 + $0x4] sm:$0xf] %v3046_v34 }
 0x4e6   :  { %v3049_v59 = vld [vmem:[#allocation5] sm:$0xff] }
 0x4e7   :  { %3051 = vst [vmem:[#allocation1] ss:$4 sm:$0xff] %v3049_v59 }
 0x4ee   :  { %v3052_v22 = vld.sshfl [vmem:[#allocation1] sm:$0xff pattern:$0x73625140]  ;;  %v3053_v3 = vld.sshfl [vmem:[#allocation1 + $0x8] sm:$0xff pattern:$0x73625140] }
 0x4ef   :  { %v3060_v58 = vpack.c.bf16 %v3052_v22, %v3052_v22  ;;  %v3061_v39 = vpack.c.bf16 %v3053_v3, %v3053_v3  ;;  %v3054_v32 = vld.sshfl [vmem:[#allocation1 + $0x10] sm:$0xff pattern:$0x73625140]  ;;  %v3055_v42 = vld.sshfl [vmem:[#allocation1 + $0x18] sm:$0xff pattern:$0x73625140] }
 0x4f0   :  { %v3062_v43 = vpack.c.bf16 %v3054_v32, %v3054_v32  ;;  %v3063_v44 = vpack.c.bf16 %v3055_v42, %v3055_v42 }
 0x4f1   :  { %3462 = vmatmul.bf16.vlgmr.msra.gmra.mxu2 %v3060_v58  ;;  %3475 = vmatmul.bf16.vlgmr.msra.gmra.mxu3 %v3061_v39 }
 0x4f2   :  { %3488 = vmatmul.bf16.vlgmr.msrb.gmra.mxu0 %v3062_v43  ;;  %3501 = vmatmul.bf16.vlgmr.msrb.gmra.mxu1 %v3063_v44 }
 0x4f3   :  { %3694 = vmatpush.bf16.msra.mxu2 %v5620_v38  ;;  %3707 = vmatpush.bf16.msra.mxu3 %v5628_v33 }
 0x4f7   :  { %3695 = vmatpush.bf16.msra.mxu2 %v5619_v11  ;;  %3708 = vmatpush.bf16.msra.mxu3 %v5627_v52 }
 0x4fb   :  { %3696 = vmatpush.bf16.msra.mxu2 %v5618_v40  ;;  %3709 = vmatpush.bf16.msra.mxu3 %v5626_v35 }
 0x4ff   :  { %3697 = vmatpush.bf16.msra.mxu2 %v5617_v49  ;;  %3710 = vmatpush.bf16.msra.mxu3 %v5625_v55 }
 0x501   :  { %3514 = vmatmul.bf16.vlgmr.msrb.gmra.mxu2 %v3060_v58  ;;  %3527 = vmatmul.bf16.vlgmr.msrb.gmra.mxu3 %v3061_v39 }
 0x502   :  { %3540 = vmatmul.bf16.vlgmr.msra.gmra.mxu0 %v3062_v43  ;;  %3553 = vmatmul.bf16.vlgmr.msra.gmra.mxu1 %v3063_v44 }
 0x503   :  { %3698 = vmatpush.bf16.msra.mxu2 %v5616_v51  ;;  %3711 = vmatpush.bf16.msra.mxu3 %v5624_v5 }
 0x507   :  { %3699 = vmatpush.bf16.msra.mxu2 %v5615_v4  ;;  %3712 = vmatpush.bf16.msra.mxu3 %v5623_v29 }
 0x50b   :  { %3700 = vmatpush.bf16.msra.mxu2 %v5614_v30  ;;  %3713 = vmatpush.bf16.msra.mxu3 %v5622_v10 }
 0x50f   :  { %3701 = vmatpush.bf16.msra.mxu2 %v5613_v53  ;;  %3714 = vmatpush.bf16.msra.mxu3 %v5621_v60 }
 0x56f   :  { %v3489_v56 = vpop.f32.mrf.mxu0  ;;  %v3502_v57 = vpop.f32.mrf.mxu1 }
 0x574   :  { %v3463_v46 = vpop.f32.mrf.mxu2  ;;  %v3476_v15 = vpop.f32.mrf.mxu3 }
 0x575   :  { %v3464_v41 = vadd.f32 %v3463_v46, %v3130_v14 }
 0x577   :  { %v3477_v47 = vadd.f32 %v3476_v15, %v3464_v41  ;;  %v3491_v61 = vpop.f32.mrf.mxu0  ;;  %v3504_v62 = vpop.f32.mrf.mxu1 }
 0x579   :  { %v3490_v48 = vadd.f32 %v3489_v56, %v3477_v47 }
 0x57b   :  { %v3503_v63 = vadd.f32 %v3502_v57, %v3490_v48 }
 0x57c   :  { %v3465_v0 = vpop.f32.mrf.mxu2  ;;  %v3478_v1 = vpop.f32.mrf.mxu3 }
 0x57d   :  { %5679 = vtanh.f32 %v3503_v63 }
 0x57f   :  { %v3541_v2 = vpop.f32.mrf.mxu0  ;;  %v3554_v6 = vpop.f32.mrf.mxu1 }
 0x583   :  { %v5680_v8 = vpop.eup %5679 }
 0x584   :  { %v3560_v16 = vpack.c.bf16 %v5680_v8, %v5680_v8  ;;  %v3515_v9 = vpop.f32.mrf.mxu2  ;;  %v3528_v17 = vpop.f32.mrf.mxu3 }
 0x585   :  { %v3516_v18 = vadd.f32 %v3515_v9, %v3131_v7 }
 0x586   :  { %3702 = vmatmul.bf16.vlgmr.msra.gmra.mxu2 %v3560_v16 }
 0x587   :  { %v3529_v45 = vadd.f32 %v3528_v17, %v3516_v18  ;;  %v3543_v50 = vpop.f32.mrf.mxu0  ;;  %v3556_v19 = vpop.f32.mrf.mxu1 }
 0x589   :  { %v3542_v20 = vadd.f32 %v3541_v2, %v3529_v45 }
 0x58b   :  { %v3555_v21 = vadd.f32 %v3554_v6, %v3542_v20 }
 0x58c   :  { %v3517_v54 = vpop.f32.mrf.mxu2  ;;  %v3530_v24 = vpop.f32.mrf.mxu3 }
 0x58d   :  { %5681 = vtanh.f32 %v3555_v21 }
 0x593   :  { %v5682_v25 = vpop.eup %5681 }
 0x594   :  { %v3561_v26 = vpack.c.bf16 %v5682_v25, %v5682_v25 }
 0x596   :  { %3715 = vmatmul.bf16.vlgmr.msra.gmra.mxu3 %v3561_v26 }
 0x609   :  { %v3703_v27 = vpop.f32.mrf.mxu2 }
 0x60a   :  { %v3704_v28 = vadd.f32 %v5642_v23, %v3703_v27 }
 0x611   :  { %v3705_v12 = vpop.f32.mrf.mxu2 }
 0x619   :  { %v3716_v31 = vpop.f32.mrf.mxu3 }
 0x61a   :  { %v3717_v34 = vadd.f32 %v3716_v31, %v3704_v28 }
 0x61c   :  { %3720 = vst [vmem:[%s7684_s16] sm:$0x3] %v3717_v34 }
 0x621   :  { %v3718_v36 = vpop.f32.mrf.mxu3 }
 0x622   :  { %3725 = vsyncpa [#allocation7], 1 }
 0x623   :  { %3726 = vsyncpa [#allocation9], 1 }

</bundles_post_ra>
